<compile_context>
chip_gen: v7x
topology: tpu7x:2x2x1
jax: 0.10.0
libtpu: 0.0.40
codegen_flags: <defaults>
</compile_context>

<pallas_src>
import functools
import math

import jax
import jax.numpy as jnp
from jax.experimental import pallas as pl
from jax.experimental.pallas import tpu as pltpu

_VMEM_LIMIT = 32 * 1024 * 1024   # v7x-safe (64 MiB physical); also overrides v5e's 16 MiB scoped default
_TM_MAX = 2048                   # row tile for the matmul grid
_ROW_ALIGN = 16                  # bf16 sublane pack


def _round_up(x, m):
    return ((x + m - 1) // m) * m


def _choose_tm(m):
    """Row tile: as large as possible (HBM-roofline), but split into >=2 grid
    steps whenever M allows so v7x can shard the 'parallel' axis across its
    two TensorCores."""
    if m <= 2 * _ROW_ALIGN:
        return _round_up(m, _ROW_ALIGN)
    return min(_TM_MAX, _round_up((m + 1) // 2, _ROW_ALIGN))


# ----------------------------------------------------------------------------
# Pallas kernel: out = cast(LeakyReLU(x @ w + b, slope), out_dtype)
#   x tile [tm, K] bf16, w [K, cout] bf16 (resident), b [1, cout] f32.
#   slope is a trace-time Python float (identity layers drop the select).
# ----------------------------------------------------------------------------
def _mm_bias_lrelu_kernel(x_ref, w_ref, b_ref, o_ref, *, slope):
    acc = jnp.dot(x_ref[...], w_ref[...], preferred_element_type=jnp.float32)
    acc = acc + b_ref[...]
    if slope != 1.0:
        acc = jnp.where(acc >= 0.0, acc, acc * slope)
    o_ref[...] = acc.astype(o_ref.dtype)


def _matmul_bias_lrelu(xm, wm, bm, slope, tm, out_dtype):
    """xm: [Mp, K] bf16 (Mp % tm == 0); wm: [K, cout] bf16; bm: [1, cout] f32."""
    mp, k = xm.shape
    cout = wm.shape[1]
    kernel = functools.partial(_mm_bias_lrelu_kernel, slope=slope)
    return pl.pallas_call(
        kernel,
        out_shape=jax.ShapeDtypeStruct((mp, cout), out_dtype),
        grid=(mp // tm,),
        in_specs=[
            pl.BlockSpec((tm, k), lambda i: (i, 0)),      # row tile, full K
            pl.BlockSpec((k, cout), lambda i: (0, 0)),    # weights resident
            pl.BlockSpec((1, cout), lambda i: (0, 0)),    # bias resident
        ],
        out_specs=pl.BlockSpec((tm, cout), lambda i: (i, 0)),   # true cout, no 128 pad
        compiler_params=pltpu.CompilerParams(
            dimension_semantics=("parallel",),
            vmem_limit_bytes=_VMEM_LIMIT,
        ),
    )(xm, wm, bm)


# ----------------------------------------------------------------------------
# JAX glue (data movement only: padding, im2col, pooling reshape, transposes)
# ----------------------------------------------------------------------------
def conv2d_3x3_lrelu(x, w, b, slope=0.2, out_dtype=jnp.float32):
    """3x3, stride 1, pad 1 conv fused with bias + LeakyReLU.

    x: [B,H,W,Cin] NHWC (any float dtype); w: [Cout,Cin,3,3] (PyTorch layout);
    b: [Cout].  Returns [B,H,W,Cout] in out_dtype.
    """
    bsz, h, wd, cin = x.shape
    cout = w.shape[0]

    # im2col in bf16 (halves HBM traffic of the patch matrix); stride 1, pad 1.
    xp = jnp.pad(x.astype(jnp.bfloat16), ((0, 0), (1, 1), (1, 1), (0, 0)))
    cols = [xp[:, dy:dy + h, dx:dx + wd, :] for dy in range(3) for dx in range(3)]
    m = bsz * h * wd
    k = 9 * cin
    xmat = jnp.stack(cols, axis=3).reshape(m, k)

    tm = _choose_tm(m)
    mp = _round_up(m, tm)
    if mp != m:
        xmat = jnp.pad(xmat, ((0, mp - m), (0, 0)))   # padded rows sliced off below

    # Weights/bias kept at true K x cout (no padding; K and cout are full-dim blocks).
    wmat = jnp.transpose(w, (2, 3, 1, 0)).reshape(k, cout).astype(jnp.bfloat16)
    bmat = b.astype(jnp.float32).reshape(1, cout)

    out = _matmul_bias_lrelu(xmat, wmat, bmat, slope, tm, out_dtype)
    return out[:m].reshape(bsz, h, wd, cout)


def avg_pool2(x):
    """2x2 average pool, stride 2, no padding (floor mode), NHWC.

    Pure XLA reshape-mean: it fuses into the next conv's im2col, avoiding the
    [4,M,C] HBM intermediate + masked-lane stores a dedicated pool kernel needs.
    """
    bsz, h, w, c = x.shape
    ho, wo = h // 2, w // 2
    x = x[:, :2 * ho, :2 * wo, :]
    return x.reshape(bsz, ho, 2, wo, 2, c).mean(axis=(2, 4))


# ----------------------------------------------------------------------------
# Deterministic parameter construction (matches nn.Conv2d default init scheme)
# ----------------------------------------------------------------------------
def _init_conv(key, cout, cin, ksize=3):
    k1, k2 = jax.random.split(key)
    fan_in = cin * ksize * ksize
    bound = 1.0 / math.sqrt(fan_in)
    w = jax.random.uniform(k1, (cout, cin, ksize, ksize), jnp.float32, -bound, bound)
    b = jax.random.uniform(k2, (cout,), jnp.float32, -bound, bound)
    return {'w': w, 'b': b}


def init_encoder_depth(seed=1):
    key = jax.random.PRNGKey(seed)
    cfg = [('In', 1, 4), ('d0', 4, 8), ('d1', 8, 16),
           ('d2', 16, 32), ('d3', 32, 64), ('d4', 64, 64)]
    params = {}
    for i, (name, cin, cout) in enumerate(cfg):
        ka = jax.random.fold_in(key, 2 * i)
        kb = jax.random.fold_in(key, 2 * i + 1)
        params[name] = {'A': _init_conv(ka, cout, cin),
                        'B': _init_conv(kb, cout, cout)}
    return params


# ----------------------------------------------------------------------------
# Forward pass (Encoder_Depth)
# ----------------------------------------------------------------------------
def _conv_block(x, p):
    # convA -> LeakyReLU(0.2) -> convB -> LeakyReLU(0.2), each fused in one kernel.
    # convA output is a pure intermediate -> bf16; convB output is returned -> f32.
    y = conv2d_3x3_lrelu(x, p['A']['w'], p['A']['b'], slope=0.2, out_dtype=jnp.bfloat16)
    return conv2d_3x3_lrelu(y, p['B']['w'], p['B']['b'], slope=0.2, out_dtype=jnp.float32)


def encoder_depth_fwd(features_nchw, params):
    x = jnp.transpose(features_nchw.astype(jnp.float32), (0, 2, 3, 1))  # NCHW -> NHWC
    x_in = _conv_block(x, params['In'])                                 # InBlock
    feats = [x_in]
    cur = x_in
    for name in ('d0', 'd1', 'd2', 'd3', 'd4'):                         # DownBlocks
        cur = _conv_block(avg_pool2(cur), params[name])
        feats.append(cur)
    return [jnp.transpose(f, (0, 3, 1, 2)) for f in feats]              # NHWC -> NCHW


encoder_depth = jax.jit(encoder_depth_fwd)


# ----------------------------------------------------------------------------
if __name__ == "__main__":
    B, C, H, W = 2, 1, 32, 32       # depth input; /32 keeps the last feature >= 1x1
    x = jax.random.normal(jax.random.PRNGKey(0), (B, C, H, W), jnp.float32)
    params = init_encoder_depth(seed=1)

    feats = encoder_depth(x, params)
    feats = jax.block_until_ready(feats)

    expected = [(B, 4, H, W),
                (B, 8, H // 2, W // 2),
                (B, 16, H // 4, W // 4),
                (B, 32, H // 8, W // 8),
                (B, 64, H // 16, W // 16),
                (B, 64, H // 32, W // 32)]
    got = [tuple(int(d) for d in f.shape) for f in feats]
    assert got == expected, (got, expected)
    assert all(bool(jnp.all(jnp.isfinite(f))) for f in feats)
    assert all(f.dtype == jnp.float32 for f in feats)
    print("KERNEL_OK")
</pallas_src>

<mosaic_0001>
module attributes {stable_mosaic.version = 11 : i64} {
  func.func @_mm_bias_lrelu_kernel(%arg0: i32, %arg1: memref<1024x9xbf16, #tpu.memory_space<vmem>>, %arg2: memref<9x4xbf16, #tpu.memory_space<vmem>>, %arg3: memref<1x4xf32, #tpu.memory_space<vmem>>, %arg4: memref<1024x4xbf16, #tpu.memory_space<vmem>>) attributes {dimension_semantics = [#tpu.dimension_semantics<parallel>], iteration_bounds = array<i64: 2>, scalar_prefetch = 0 : i64, scratch_operands = 0 : i64, tpu.core_type = #tpu.core_type<tc>, window_params = [{transform_indices = @transform_0, window_bounds = array<i64: 1024, 9>}, {pipeline_mode = #tpu.pipeline_mode<synchronous>, transform_indices = @transform_1, window_bounds = array<i64: 9, 4>}, {pipeline_mode = #tpu.pipeline_mode<synchronous>, transform_indices = @transform_2, window_bounds = array<i64: 1, 4>}, {transform_indices = @transform_3, window_bounds = array<i64: 1024, 4>}]} {
    %c0 = arith.constant 0 : index
    %c0_0 = arith.constant 0 : index
    %0 = vector.load %arg1[%c0, %c0_0] : memref<1024x9xbf16, #tpu.memory_space<vmem>>, vector<1024x9xbf16>
    %c0_1 = arith.constant 0 : index
    %c0_2 = arith.constant 0 : index
    %1 = vector.load %arg2[%c0_1, %c0_2] : memref<9x4xbf16, #tpu.memory_space<vmem>>, vector<9x4xbf16>
    %cst = arith.constant dense<0.000000e+00> : vector<1024x4xf32>
    %2 = tpu.matmul %0, %1, %cst {dimension_numbers = #tpu.dot_dimension_numbers<[1], [0], [0], [1], [0, 0, 1, 1], [], []>} : vector<1024x9xbf16>, vector<9x4xbf16>, vector<1024x4xf32> -> vector<1024x4xf32>
    %c0_3 = arith.constant 0 : index
    %c0_4 = arith.constant 0 : index
    %3 = vector.load %arg3[%c0_3, %c0_4] : memref<1x4xf32, #tpu.memory_space<vmem>>, vector<1x4xf32>
    %4 = vector.broadcast %3 : vector<1x4xf32> to vector<1024x4xf32>
    %5 = arith.addf %2, %4 : vector<1024x4xf32>
    %cst_5 = arith.constant 0.000000e+00 : f32
    %6 = vector.broadcast %cst_5 : f32 to vector<1024x4xf32>
    %7 = arith.cmpf oge, %5, %6 : vector<1024x4xf32>
    %cst_6 = arith.constant 2.000000e-01 : f32
    %8 = vector.broadcast %cst_6 : f32 to vector<1024x4xf32>
    %9 = arith.mulf %5, %8 : vector<1024x4xf32>
    %10 = arith.select %7, %5, %9 : vector<1024x4xi1>, vector<1024x4xf32>
    %11 = arith.truncf %10 : vector<1024x4xf32> to vector<1024x4xbf16>
    %c0_7 = arith.constant 0 : index
    %c0_8 = arith.constant 0 : index
    %12 = vector.load %arg4[%c0_7, %c0_8] : memref<1024x4xbf16, #tpu.memory_space<vmem>>, vector<1024x4xbf16>
    tpu.vector_store %arg4[%c0_7, %c0_8], %11 {strides = array<i32>} : memref<1024x4xbf16, #tpu.memory_space<vmem>>, vector<1024x4xbf16>,
    return
  }
  func.func @transform_0(%arg0: i32) -> (i32, i32) {
    %c0_i32 = arith.constant 0 : i32
    %c0_i32_0 = arith.constant 0 : i32
    return %arg0, %c0_i32 : i32, i32
  }
  func.func @transform_1(%arg0: i32) -> (i32, i32) {
    %c0_i32 = arith.constant 0 : i32
    %c0_i32_0 = arith.constant 0 : i32
    %c0_i32_1 = arith.constant 0 : i32
    return %c0_i32, %c0_i32_0 : i32, i32
  }
  func.func @transform_2(%arg0: i32) -> (i32, i32) {
    %c0_i32 = arith.constant 0 : i32
    %c0_i32_0 = arith.constant 0 : i32
    %c0_i32_1 = arith.constant 0 : i32
    return %c0_i32, %c0_i32_0 : i32, i32
  }
  func.func @transform_3(%arg0: i32) -> (i32, i32) {
    %c0_i32 = arith.constant 0 : i32
    %c0_i32_0 = arith.constant 0 : i32
    return %arg0, %c0_i32 : i32, i32
  }
}

module attributes {stable_mosaic.version = 11 : i64} {
  func.func @_mm_bias_lrelu_kernel(%arg0: i32, %arg1: memref<1024x36xbf16, #tpu.memory_space<vmem>>, %arg2: memref<36x4xbf16, #tpu.memory_space<vmem>>, %arg3: memref<1x4xf32, #tpu.memory_space<vmem>>, %arg4: memref<1024x4xf32, #tpu.memory_space<vmem>>) attributes {dimension_semantics = [#tpu.dimension_semantics<parallel>], iteration_bounds = array<i64: 2>, scalar_prefetch = 0 : i64, scratch_operands = 0 : i64, tpu.core_type = #tpu.core_type<tc>, window_params = [{transform_indices = @transform_0, window_bounds = array<i64: 1024, 36>}, {pipeline_mode = #tpu.pipeline_mode<synchronous>, transform_indices = @transform_1, window_bounds = array<i64: 36, 4>}, {pipeline_mode = #tpu.pipeline_mode<synchronous>, transform_indices = @transform_2, window_bounds = array<i64: 1, 4>}, {transform_indices = @transform_3, window_bounds = array<i64: 1024, 4>}]} {
    %c0 = arith.constant 0 : index
    %c0_0 = arith.constant 0 : index
    %0 = vector.load %arg1[%c0, %c0_0] : memref<1024x36xbf16, #tpu.memory_space<vmem>>, vector<1024x36xbf16>
    %c0_1 = arith.constant 0 : index
    %c0_2 = arith.constant 0 : index
    %1 = vector.load %arg2[%c0_1, %c0_2] : memref<36x4xbf16, #tpu.memory_space<vmem>>, vector<36x4xbf16>
    %cst = arith.constant dense<0.000000e+00> : vector<1024x4xf32>
    %2 = tpu.matmul %0, %1, %cst {dimension_numbers = #tpu.dot_dimension_numbers<[1], [0], [0], [1], [0, 0, 1, 1], [], []>} : vector<1024x36xbf16>, vector<36x4xbf16>, vector<1024x4xf32> -> vector<1024x4xf32>
    %c0_3 = arith.constant 0 : index
    %c0_4 = arith.constant 0 : index
    %3 = vector.load %arg3[%c0_3, %c0_4] : memref<1x4xf32, #tpu.memory_space<vmem>>, vector<1x4xf32>
    %4 = vector.broadcast %3 : vector<1x4xf32> to vector<1024x4xf32>
    %5 = arith.addf %2, %4 : vector<1024x4xf32>
    %cst_5 = arith.constant 0.000000e+00 : f32
    %6 = vector.broadcast %cst_5 : f32 to vector<1024x4xf32>
    %7 = arith.cmpf oge, %5, %6 : vector<1024x4xf32>
    %cst_6 = arith.constant 2.000000e-01 : f32
    %8 = vector.broadcast %cst_6 : f32 to vector<1024x4xf32>
    %9 = arith.mulf %5, %8 : vector<1024x4xf32>
    %10 = arith.select %7, %5, %9 : vector<1024x4xi1>, vector<1024x4xf32>
    %c0_7 = arith.constant 0 : index
    %c0_8 = arith.constant 0 : index
    %11 = vector.load %arg4[%c0_7, %c0_8] : memref<1024x4xf32, #tpu.memory_space<vmem>>, vector<1024x4xf32>
    tpu.vector_store %arg4[%c0_7, %c0_8], %10 {strides = array<i32>} : memref<1024x4xf32, #tpu.memory_space<vmem>>, vector<1024x4xf32>,
    return
  }
  func.func @transform_0(%arg0: i32) -> (i32, i32) {
    %c0_i32 = arith.constant 0 : i32
    %c0_i32_0 = arith.constant 0 : i32
    return %arg0, %c0_i32 : i32, i32
  }
  func.func @transform_1(%arg0: i32) -> (i32, i32) {
    %c0_i32 = arith.constant 0 : i32
    %c0_i32_0 = arith.constant 0 : i32
    %c0_i32_1 = arith.constant 0 : i32
    return %c0_i32, %c0_i32_0 : i32, i32
  }
  func.func @transform_2(%arg0: i32) -> (i32, i32) {
    %c0_i32 = arith.constant 0 : i32
    %c0_i32_0 = arith.constant 0 : i32
    %c0_i32_1 = arith.constant 0 : i32
    return %c0_i32, %c0_i32_0 : i32, i32
  }
  func.func @transform_3(%arg0: i32) -> (i32, i32) {
    %c0_i32 = arith.constant 0 : i32
    %c0_i32_0 = arith.constant 0 : i32
    return %arg0, %c0_i32 : i32, i32
  }
}

module attributes {stable_mosaic.version = 11 : i64} {
  func.func @_mm_bias_lrelu_kernel(%arg0: i32, %arg1: memref<256x36xbf16, #tpu.memory_space<vmem>>, %arg2: memref<36x8xbf16, #tpu.memory_space<vmem>>, %arg3: memref<1x8xf32, #tpu.memory_space<vmem>>, %arg4: memref<256x8xbf16, #tpu.memory_space<vmem>>) attributes {dimension_semantics = [#tpu.dimension_semantics<parallel>], iteration_bounds = array<i64: 2>, scalar_prefetch = 0 : i64, scratch_operands = 0 : i64, tpu.core_type = #tpu.core_type<tc>, window_params = [{transform_indices = @transform_0, window_bounds = array<i64: 256, 36>}, {pipeline_mode = #tpu.pipeline_mode<synchronous>, transform_indices = @transform_1, window_bounds = array<i64: 36, 8>}, {pipeline_mode = #tpu.pipeline_mode<synchronous>, transform_indices = @transform_2, window_bounds = array<i64: 1, 8>}, {transform_indices = @transform_3, window_bounds = array<i64: 256, 8>}]} {
    %c0 = arith.constant 0 : index
    %c0_0 = arith.constant 0 : index
    %0 = vector.load %arg1[%c0, %c0_0] : memref<256x36xbf16, #tpu.memory_space<vmem>>, vector<256x36xbf16>
    %c0_1 = arith.constant 0 : index
    %c0_2 = arith.constant 0 : index
    %1 = vector.load %arg2[%c0_1, %c0_2] : memref<36x8xbf16, #tpu.memory_space<vmem>>, vector<36x8xbf16>
    %cst = arith.constant dense<0.000000e+00> : vector<256x8xf32>
    %2 = tpu.matmul %0, %1, %cst {dimension_numbers = #tpu.dot_dimension_numbers<[1], [0], [0], [1], [0, 0, 1, 1], [], []>} : vector<256x36xbf16>, vector<36x8xbf16>, vector<256x8xf32> -> vector<256x8xf32>
    %c0_3 = arith.constant 0 : index
    %c0_4 = arith.constant 0 : index
    %3 = vector.load %arg3[%c0_3, %c0_4] : memref<1x8xf32, #tpu.memory_space<vmem>>, vector<1x8xf32>
    %4 = vector.broadcast %3 : vector<1x8xf32> to vector<256x8xf32>
    %5 = arith.addf %2, %4 : vector<256x8xf32>
    %cst_5 = arith.constant 0.000000e+00 : f32
    %6 = vector.broadcast %cst_5 : f32 to vector<256x8xf32>
    %7 = arith.cmpf oge, %5, %6 : vector<256x8xf32>
    %cst_6 = arith.constant 2.000000e-01 : f32
    %8 = vector.broadcast %cst_6 : f32 to vector<256x8xf32>
    %9 = arith.mulf %5, %8 : vector<256x8xf32>
    %10 = arith.select %7, %5, %9 : vector<256x8xi1>, vector<256x8xf32>
    %11 = arith.truncf %10 : vector<256x8xf32> to vector<256x8xbf16>
    %c0_7 = arith.constant 0 : index
    %c0_8 = arith.constant 0 : index
    %12 = vector.load %arg4[%c0_7, %c0_8] : memref<256x8xbf16, #tpu.memory_space<vmem>>, vector<256x8xbf16>
    tpu.vector_store %arg4[%c0_7, %c0_8], %11 {strides = array<i32>} : memref<256x8xbf16, #tpu.memory_space<vmem>>, vector<256x8xbf16>,
    return
  }
  func.func @transform_0(%arg0: i32) -> (i32, i32) {
    %c0_i32 = arith.constant 0 : i32
    %c0_i32_0 = arith.constant 0 : i32
    return %arg0, %c0_i32 : i32, i32
  }
  func.func @transform_1(%arg0: i32) -> (i32, i32) {
    %c0_i32 = arith.constant 0 : i32
    %c0_i32_0 = arith.constant 0 : i32
    %c0_i32_1 = arith.constant 0 : i32
    return %c0_i32, %c0_i32_0 : i32, i32
  }
  func.func @transform_2(%arg0: i32) -> (i32, i32) {
    %c0_i32 = arith.constant 0 : i32
    %c0_i32_0 = arith.constant 0 : i32
    %c0_i32_1 = arith.constant 0 : i32
    return %c0_i32, %c0_i32_0 : i32, i32
  }
  func.func @transform_3(%arg0: i32) -> (i32, i32) {
    %c0_i32 = arith.constant 0 : i32
    %c0_i32_0 = arith.constant 0 : i32
    return %arg0, %c0_i32 : i32, i32
  }
}

module attributes {stable_mosaic.version = 11 : i64} {
  func.func @_mm_bias_lrelu_kernel(%arg0: i32, %arg1: memref<256x72xbf16, #tpu.memory_space<vmem>>, %arg2: memref<72x8xbf16, #tpu.memory_space<vmem>>, %arg3: memref<1x8xf32, #tpu.memory_space<vmem>>, %arg4: memref<256x8xf32, #tpu.memory_space<vmem>>) attributes {dimension_semantics = [#tpu.dimension_semantics<parallel>], iteration_bounds = array<i64: 2>, scalar_prefetch = 0 : i64, scratch_operands = 0 : i64, tpu.core_type = #tpu.core_type<tc>, window_params = [{transform_indices = @transform_0, window_bounds = array<i64: 256, 72>}, {pipeline_mode = #tpu.pipeline_mode<synchronous>, transform_indices = @transform_1, window_bounds = array<i64: 72, 8>}, {pipeline_mode = #tpu.pipeline_mode<synchronous>, transform_indices = @transform_2, window_bounds = array<i64: 1, 8>}, {transform_indices = @transform_3, window_bounds = array<i64: 256, 8>}]} {
    %c0 = arith.constant 0 : index
    %c0_0 = arith.constant 0 : index
    %0 = vector.load %arg1[%c0, %c0_0] : memref<256x72xbf16, #tpu.memory_space<vmem>>, vector<256x72xbf16>
    %c0_1 = arith.constant 0 : index
    %c0_2 = arith.constant 0 : index
    %1 = vector.load %arg2[%c0_1, %c0_2] : memref<72x8xbf16, #tpu.memory_space<vmem>>, vector<72x8xbf16>
    %cst = arith.constant dense<0.000000e+00> : vector<256x8xf32>
    %2 = tpu.matmul %0, %1, %cst {dimension_numbers = #tpu.dot_dimension_numbers<[1], [0], [0], [1], [0, 0, 1, 1], [], []>} : vector<256x72xbf16>, vector<72x8xbf16>, vector<256x8xf32> -> vector<256x8xf32>
    %c0_3 = arith.constant 0 : index
    %c0_4 = arith.constant 0 : index
    %3 = vector.load %arg3[%c0_3, %c0_4] : memref<1x8xf32, #tpu.memory_space<vmem>>, vector<1x8xf32>
    %4 = vector.broadcast %3 : vector<1x8xf32> to vector<256x8xf32>
    %5 = arith.addf %2, %4 : vector<256x8xf32>
    %cst_5 = arith.constant 0.000000e+00 : f32
    %6 = vector.broadcast %cst_5 : f32 to vector<256x8xf32>
    %7 = arith.cmpf oge, %5, %6 : vector<256x8xf32>
    %cst_6 = arith.constant 2.000000e-01 : f32
    %8 = vector.broadcast %cst_6 : f32 to vector<256x8xf32>
    %9 = arith.mulf %5, %8 : vector<256x8xf32>
    %10 = arith.select %7, %5, %9 : vector<256x8xi1>, vector<256x8xf32>
    %c0_7 = arith.constant 0 : index
    %c0_8 = arith.constant 0 : index
    %11 = vector.load %arg4[%c0_7, %c0_8] : memref<256x8xf32, #tpu.memory_space<vmem>>, vector<256x8xf32>
    tpu.vector_store %arg4[%c0_7, %c0_8], %10 {strides = array<i32>} : memref<256x8xf32, #tpu.memory_space<vmem>>, vector<256x8xf32>,
    return
  }
  func.func @transform_0(%arg0: i32) -> (i32, i32) {
    %c0_i32 = arith.constant 0 : i32
    %c0_i32_0 = arith.constant 0 : i32
    return %arg0, %c0_i32 : i32, i32
  }
  func.func @transform_1(%arg0: i32) -> (i32, i32) {
    %c0_i32 = arith.constant 0 : i32
    %c0_i32_0 = arith.constant 0 : i32
    %c0_i32_1 = arith.constant 0 : i32
    return %c0_i32, %c0_i32_0 : i32, i32
  }
  func.func @transform_2(%arg0: i32) -> (i32, i32) {
    %c0_i32 = arith.constant 0 : i32
    %c0_i32_0 = arith.constant 0 : i32
    %c0_i32_1 = arith.constant 0 : i32
    return %c0_i32, %c0_i32_0 : i32, i32
  }
  func.func @transform_3(%arg0: i32) -> (i32, i32) {
    %c0_i32 = arith.constant 0 : i32
    %c0_i32_0 = arith.constant 0 : i32
    return %arg0, %c0_i32 : i32, i32
  }
}

module attributes {stable_mosaic.version = 11 : i64} {
  func.func @_mm_bias_lrelu_kernel(%arg0: i32, %arg1: memref<64x72xbf16, #tpu.memory_space<vmem>>, %arg2: memref<72x16xbf16, #tpu.memory_space<vmem>>, %arg3: memref<1x16xf32, #tpu.memory_space<vmem>>, %arg4: memref<64x16xbf16, #tpu.memory_space<vmem>>) attributes {dimension_semantics = [#tpu.dimension_semantics<parallel>], iteration_bounds = array<i64: 2>, scalar_prefetch = 0 : i64, scratch_operands = 0 : i64, tpu.core_type = #tpu.core_type<tc>, window_params = [{transform_indices = @transform_0, window_bounds = array<i64: 64, 72>}, {pipeline_mode = #tpu.pipeline_mode<synchronous>, transform_indices = @transform_1, window_bounds = array<i64: 72, 16>}, {pipeline_mode = #tpu.pipeline_mode<synchronous>, transform_indices = @transform_2, window_bounds = array<i64: 1, 16>}, {transform_indices = @transform_3, window_bounds = array<i64: 64, 16>}]} {
    %c0 = arith.constant 0 : index
    %c0_0 = arith.constant 0 : index
    %0 = vector.load %arg1[%c0, %c0_0] : memref<64x72xbf16, #tpu.memory_space<vmem>>, vector<64x72xbf16>
    %c0_1 = arith.constant 0 : index
    %c0_2 = arith.constant 0 : index
    %1 = vector.load %arg2[%c0_1, %c0_2] : memref<72x16xbf16, #tpu.memory_space<vmem>>, vector<72x16xbf16>
    %cst = arith.constant dense<0.000000e+00> : vector<64x16xf32>
    %2 = tpu.matmul %0, %1, %cst {dimension_numbers = #tpu.dot_dimension_numbers<[1], [0], [0], [1], [0, 0, 1, 1], [], []>} : vector<64x72xbf16>, vector<72x16xbf16>, vector<64x16xf32> -> vector<64x16xf32>
    %c0_3 = arith.constant 0 : index
    %c0_4 = arith.constant 0 : index
    %3 = vector.load %arg3[%c0_3, %c0_4] : memref<1x16xf32, #tpu.memory_space<vmem>>, vector<1x16xf32>
    %4 = vector.broadcast %3 : vector<1x16xf32> to vector<64x16xf32>
    %5 = arith.addf %2, %4 : vector<64x16xf32>
    %cst_5 = arith.constant 0.000000e+00 : f32
    %6 = vector.broadcast %cst_5 : f32 to vector<64x16xf32>
    %7 = arith.cmpf oge, %5, %6 : vector<64x16xf32>
    %cst_6 = arith.constant 2.000000e-01 : f32
    %8 = vector.broadcast %cst_6 : f32 to vector<64x16xf32>
    %9 = arith.mulf %5, %8 : vector<64x16xf32>
    %10 = arith.select %7, %5, %9 : vector<64x16xi1>, vector<64x16xf32>
    %11 = arith.truncf %10 : vector<64x16xf32> to vector<64x16xbf16>
    %c0_7 = arith.constant 0 : index
    %c0_8 = arith.constant 0 : index
    %12 = vector.load %arg4[%c0_7, %c0_8] : memref<64x16xbf16, #tpu.memory_space<vmem>>, vector<64x16xbf16>
    tpu.vector_store %arg4[%c0_7, %c0_8], %11 {strides = array<i32>} : memref<64x16xbf16, #tpu.memory_space<vmem>>, vector<64x16xbf16>,
    return
  }
  func.func @transform_0(%arg0: i32) -> (i32, i32) {
    %c0_i32 = arith.constant 0 : i32
    %c0_i32_0 = arith.constant 0 : i32
    return %arg0, %c0_i32 : i32, i32
  }
  func.func @transform_1(%arg0: i32) -> (i32, i32) {
    %c0_i32 = arith.constant 0 : i32
    %c0_i32_0 = arith.constant 0 : i32
    %c0_i32_1 = arith.constant 0 : i32
    return %c0_i32, %c0_i32_0 : i32, i32
  }
  func.func @transform_2(%arg0: i32) -> (i32, i32) {
    %c0_i32 = arith.constant 0 : i32
    %c0_i32_0 = arith.constant 0 : i32
    %c0_i32_1 = arith.constant 0 : i32
    return %c0_i32, %c0_i32_0 : i32, i32
  }
  func.func @transform_3(%arg0: i32) -> (i32, i32) {
    %c0_i32 = arith.constant 0 : i32
    %c0_i32_0 = arith.constant 0 : i32
    return %arg0, %c0_i32 : i32, i32
  }
}

module attributes {stable_mosaic.version = 11 : i64} {
  func.func @_mm_bias_lrelu_kernel(%arg0: i32, %arg1: memref<64x144xbf16, #tpu.memory_space<vmem>>, %arg2: memref<144x16xbf16, #tpu.memory_space<vmem>>, %arg3: memref<1x16xf32, #tpu.memory_space<vmem>>, %arg4: memref<64x16xf32, #tpu.memory_space<vmem>>) attributes {dimension_semantics = [#tpu.dimension_semantics<parallel>], iteration_bounds = array<i64: 2>, scalar_prefetch = 0 : i64, scratch_operands = 0 : i64, tpu.core_type = #tpu.core_type<tc>, window_params = [{transform_indices = @transform_0, window_bounds = array<i64: 64, 144>}, {pipeline_mode = #tpu.pipeline_mode<synchronous>, transform_indices = @transform_1, window_bounds = array<i64: 144, 16>}, {pipeline_mode = #tpu.pipeline_mode<synchronous>, transform_indices = @transform_2, window_bounds = array<i64: 1, 16>}, {transform_indices = @transform_3, window_bounds = array<i64: 64, 16>}]} {
    %c0 = arith.constant 0 : index
    %c0_0 = arith.constant 0 : index
    %0 = vector.load %arg1[%c0, %c0_0] : memref<64x144xbf16, #tpu.memory_space<vmem>>, vector<64x144xbf16>
    %c0_1 = arith.constant 0 : index
    %c0_2 = arith.constant 0 : index
    %1 = vector.load %arg2[%c0_1, %c0_2] : memref<144x16xbf16, #tpu.memory_space<vmem>>, vector<144x16xbf16>
    %cst = arith.constant dense<0.000000e+00> : vector<64x16xf32>
    %2 = tpu.matmul %0, %1, %cst {dimension_numbers = #tpu.dot_dimension_numbers<[1], [0], [0], [1], [0, 0, 1, 1], [], []>} : vector<64x144xbf16>, vector<144x16xbf16>, vector<64x16xf32> -> vector<64x16xf32>
    %c0_3 = arith.constant 0 : index
    %c0_4 = arith.constant 0 : index
    %3 = vector.load %arg3[%c0_3, %c0_4] : memref<1x16xf32, #tpu.memory_space<vmem>>, vector<1x16xf32>
    %4 = vector.broadcast %3 : vector<1x16xf32> to vector<64x16xf32>
    %5 = arith.addf %2, %4 : vector<64x16xf32>
    %cst_5 = arith.constant 0.000000e+00 : f32
    %6 = vector.broadcast %cst_5 : f32 to vector<64x16xf32>
    %7 = arith.cmpf oge, %5, %6 : vector<64x16xf32>
    %cst_6 = arith.constant 2.000000e-01 : f32
    %8 = vector.broadcast %cst_6 : f32 to vector<64x16xf32>
    %9 = arith.mulf %5, %8 : vector<64x16xf32>
    %10 = arith.select %7, %5, %9 : vector<64x16xi1>, vector<64x16xf32>
    %c0_7 = arith.constant 0 : index
    %c0_8 = arith.constant 0 : index
    %11 = vector.load %arg4[%c0_7, %c0_8] : memref<64x16xf32, #tpu.memory_space<vmem>>, vector<64x16xf32>
    tpu.vector_store %arg4[%c0_7, %c0_8], %10 {strides = array<i32>} : memref<64x16xf32, #tpu.memory_space<vmem>>, vector<64x16xf32>,
    return
  }
  func.func @transform_0(%arg0: i32) -> (i32, i32) {
    %c0_i32 = arith.constant 0 : i32
    %c0_i32_0 = arith.constant 0 : i32
    return %arg0, %c0_i32 : i32, i32
  }
  func.func @transform_1(%arg0: i32) -> (i32, i32) {
    %c0_i32 = arith.constant 0 : i32
    %c0_i32_0 = arith.constant 0 : i32
    %c0_i32_1 = arith.constant 0 : i32
    return %c0_i32, %c0_i32_0 : i32, i32
  }
  func.func @transform_2(%arg0: i32) -> (i32, i32) {
    %c0_i32 = arith.constant 0 : i32
    %c0_i32_0 = arith.constant 0 : i32
    %c0_i32_1 = arith.constant 0 : i32
    return %c0_i32, %c0_i32_0 : i32, i32
  }
  func.func @transform_3(%arg0: i32) -> (i32, i32) {
    %c0_i32 = arith.constant 0 : i32
    %c0_i32_0 = arith.constant 0 : i32
    return %arg0, %c0_i32 : i32, i32
  }
}

module attributes {stable_mosaic.version = 11 : i64} {
  func.func @_mm_bias_lrelu_kernel(%arg0: i32, %arg1: memref<32x144xbf16, #tpu.memory_space<vmem>>, %arg2: memref<144x32xbf16, #tpu.memory_space<vmem>>, %arg3: memref<1x32xf32, #tpu.memory_space<vmem>>, %arg4: memref<32x32xbf16, #tpu.memory_space<vmem>>) attributes {dimension_semantics = [#tpu.dimension_semantics<parallel>], iteration_bounds = array<i64: 1>, scalar_prefetch = 0 : i64, scratch_operands = 0 : i64, tpu.core_type = #tpu.core_type<tc>, window_params = [{transform_indices = @transform_0, window_bounds = array<i64: 32, 144>}, {pipeline_mode = #tpu.pipeline_mode<synchronous>, transform_indices = @transform_1, window_bounds = array<i64: 144, 32>}, {pipeline_mode = #tpu.pipeline_mode<synchronous>, transform_indices = @transform_2, window_bounds = array<i64: 1, 32>}, {transform_indices = @transform_3, window_bounds = array<i64: 32, 32>}]} {
    %c0 = arith.constant 0 : index
    %c0_0 = arith.constant 0 : index
    %0 = vector.load %arg1[%c0, %c0_0] : memref<32x144xbf16, #tpu.memory_space<vmem>>, vector<32x144xbf16>
    %c0_1 = arith.constant 0 : index
    %c0_2 = arith.constant 0 : index
    %1 = vector.load %arg2[%c0_1, %c0_2] : memref<144x32xbf16, #tpu.memory_space<vmem>>, vector<144x32xbf16>
    %cst = arith.constant dense<0.000000e+00> : vector<32x32xf32>
    %2 = tpu.matmul %0, %1, %cst {dimension_numbers = #tpu.dot_dimension_numbers<[1], [0], [0], [1], [0, 0, 1, 1], [], []>} : vector<32x144xbf16>, vector<144x32xbf16>, vector<32x32xf32> -> vector<32x32xf32>
    %c0_3 = arith.constant 0 : index
    %c0_4 = arith.constant 0 : index
    %3 = vector.load %arg3[%c0_3, %c0_4] : memref<1x32xf32, #tpu.memory_space<vmem>>, vector<1x32xf32>
    %4 = vector.broadcast %3 : vector<1x32xf32> to vector<32x32xf32>
    %5 = arith.addf %2, %4 : vector<32x32xf32>
    %cst_5 = arith.constant 0.000000e+00 : f32
    %6 = vector.broadcast %cst_5 : f32 to vector<32x32xf32>
    %7 = arith.cmpf oge, %5, %6 : vector<32x32xf32>
    %cst_6 = arith.constant 2.000000e-01 : f32
    %8 = vector.broadcast %cst_6 : f32 to vector<32x32xf32>
    %9 = arith.mulf %5, %8 : vector<32x32xf32>
    %10 = arith.select %7, %5, %9 : vector<32x32xi1>, vector<32x32xf32>
    %11 = arith.truncf %10 : vector<32x32xf32> to vector<32x32xbf16>
    %c0_7 = arith.constant 0 : index
    %c0_8 = arith.constant 0 : index
    %12 = vector.load %arg4[%c0_7, %c0_8] : memref<32x32xbf16, #tpu.memory_space<vmem>>, vector<32x32xbf16>
    tpu.vector_store %arg4[%c0_7, %c0_8], %11 {strides = array<i32>} : memref<32x32xbf16, #tpu.memory_space<vmem>>, vector<32x32xbf16>,
    return
  }
  func.func @transform_0(%arg0: i32) -> (i32, i32) {
    %c0_i32 = arith.constant 0 : i32
    %c0_i32_0 = arith.constant 0 : i32
    return %arg0, %c0_i32 : i32, i32
  }
  func.func @transform_1(%arg0: i32) -> (i32, i32) {
    %c0_i32 = arith.constant 0 : i32
    %c0_i32_0 = arith.constant 0 : i32
    %c0_i32_1 = arith.constant 0 : i32
    return %c0_i32, %c0_i32_0 : i32, i32
  }
  func.func @transform_2(%arg0: i32) -> (i32, i32) {
    %c0_i32 = arith.constant 0 : i32
    %c0_i32_0 = arith.constant 0 : i32
    %c0_i32_1 = arith.constant 0 : i32
    return %c0_i32, %c0_i32_0 : i32, i32
  }
  func.func @transform_3(%arg0: i32) -> (i32, i32) {
    %c0_i32 = arith.constant 0 : i32
    %c0_i32_0 = arith.constant 0 : i32
    return %arg0, %c0_i32 : i32, i32
  }
}

module attributes {stable_mosaic.version = 11 : i64} {
  func.func @_mm_bias_lrelu_kernel(%arg0: i32, %arg1: memref<32x288xbf16, #tpu.memory_space<vmem>>, %arg2: memref<288x32xbf16, #tpu.memory_space<vmem>>, %arg3: memref<1x32xf32, #tpu.memory_space<vmem>>, %arg4: memref<32x32xf32, #tpu.memory_space<vmem>>) attributes {dimension_semantics = [#tpu.dimension_semantics<parallel>], iteration_bounds = array<i64: 1>, scalar_prefetch = 0 : i64, scratch_operands = 0 : i64, tpu.core_type = #tpu.core_type<tc>, window_params = [{transform_indices = @transform_0, window_bounds = array<i64: 32, 288>}, {pipeline_mode = #tpu.pipeline_mode<synchronous>, transform_indices = @transform_1, window_bounds = array<i64: 288, 32>}, {pipeline_mode = #tpu.pipeline_mode<synchronous>, transform_indices = @transform_2, window_bounds = array<i64: 1, 32>}, {transform_indices = @transform_3, window_bounds = array<i64: 32, 32>}]} {
    %c0 = arith.constant 0 : index
    %c0_0 = arith.constant 0 : index
    %0 = vector.load %arg1[%c0, %c0_0] : memref<32x288xbf16, #tpu.memory_space<vmem>>, vector<32x288xbf16>
    %c0_1 = arith.constant 0 : index
    %c0_2 = arith.constant 0 : index
    %1 = vector.load %arg2[%c0_1, %c0_2] : memref<288x32xbf16, #tpu.memory_space<vmem>>, vector<288x32xbf16>
    %cst = arith.constant dense<0.000000e+00> : vector<32x32xf32>
    %2 = tpu.matmul %0, %1, %cst {dimension_numbers = #tpu.dot_dimension_numbers<[1], [0], [0], [1], [0, 0, 1, 1], [], []>} : vector<32x288xbf16>, vector<288x32xbf16>, vector<32x32xf32> -> vector<32x32xf32>
    %c0_3 = arith.constant 0 : index
    %c0_4 = arith.constant 0 : index
    %3 = vector.load %arg3[%c0_3, %c0_4] : memref<1x32xf32, #tpu.memory_space<vmem>>, vector<1x32xf32>
    %4 = vector.broadcast %3 : vector<1x32xf32> to vector<32x32xf32>
    %5 = arith.addf %2, %4 : vector<32x32xf32>
    %cst_5 = arith.constant 0.000000e+00 : f32
    %6 = vector.broadcast %cst_5 : f32 to vector<32x32xf32>
    %7 = arith.cmpf oge, %5, %6 : vector<32x32xf32>
    %cst_6 = arith.constant 2.000000e-01 : f32
    %8 = vector.broadcast %cst_6 : f32 to vector<32x32xf32>
    %9 = arith.mulf %5, %8 : vector<32x32xf32>
    %10 = arith.select %7, %5, %9 : vector<32x32xi1>, vector<32x32xf32>
    %c0_7 = arith.constant 0 : index
    %c0_8 = arith.constant 0 : index
    %11 = vector.load %arg4[%c0_7, %c0_8] : memref<32x32xf32, #tpu.memory_space<vmem>>, vector<32x32xf32>
    tpu.vector_store %arg4[%c0_7, %c0_8], %10 {strides = array<i32>} : memref<32x32xf32, #tpu.memory_space<vmem>>, vector<32x32xf32>,
    return
  }
  func.func @transform_0(%arg0: i32) -> (i32, i32) {
    %c0_i32 = arith.constant 0 : i32
    %c0_i32_0 = arith.constant 0 : i32
    return %arg0, %c0_i32 : i32, i32
  }
  func.func @transform_1(%arg0: i32) -> (i32, i32) {
    %c0_i32 = arith.constant 0 : i32
    %c0_i32_0 = arith.constant 0 : i32
    %c0_i32_1 = arith.constant 0 : i32
    return %c0_i32, %c0_i32_0 : i32, i32
  }
  func.func @transform_2(%arg0: i32) -> (i32, i32) {
    %c0_i32 = arith.constant 0 : i32
    %c0_i32_0 = arith.constant 0 : i32
    %c0_i32_1 = arith.constant 0 : i32
    return %c0_i32, %c0_i32_0 : i32, i32
  }
  func.func @transform_3(%arg0: i32) -> (i32, i32) {
    %c0_i32 = arith.constant 0 : i32
    %c0_i32_0 = arith.constant 0 : i32
    return %arg0, %c0_i32 : i32, i32
  }
}

module attributes {stable_mosaic.version = 11 : i64} {
  func.func @_mm_bias_lrelu_kernel(%arg0: i32, %arg1: memref<16x288xbf16, #tpu.memory_space<vmem>>, %arg2: memref<288x64xbf16, #tpu.memory_space<vmem>>, %arg3: memref<1x64xf32, #tpu.memory_space<vmem>>, %arg4: memref<16x64xbf16, #tpu.memory_space<vmem>>) attributes {dimension_semantics = [#tpu.dimension_semantics<parallel>], iteration_bounds = array<i64: 1>, scalar_prefetch = 0 : i64, scratch_operands = 0 : i64, tpu.core_type = #tpu.core_type<tc>, window_params = [{transform_indices = @transform_0, window_bounds = array<i64: 16, 288>}, {pipeline_mode = #tpu.pipeline_mode<synchronous>, transform_indices = @transform_1, window_bounds = array<i64: 288, 64>}, {pipeline_mode = #tpu.pipeline_mode<synchronous>, transform_indices = @transform_2, window_bounds = array<i64: 1, 64>}, {transform_indices = @transform_3, window_bounds = array<i64: 16, 64>}]} {
    %c0 = arith.constant 0 : index
    %c0_0 = arith.constant 0 : index
    %0 = vector.load %arg1[%c0, %c0_0] : memref<16x288xbf16, #tpu.memory_space<vmem>>, vector<16x288xbf16>
    %c0_1 = arith.constant 0 : index
    %c0_2 = arith.constant 0 : index
    %1 = vector.load %arg2[%c0_1, %c0_2] : memref<288x64xbf16, #tpu.memory_space<vmem>>, vector<288x64xbf16>
    %cst = arith.constant dense<0.000000e+00> : vector<16x64xf32>
    %2 = tpu.matmul %0, %1, %cst {dimension_numbers = #tpu.dot_dimension_numbers<[1], [0], [0], [1], [0, 0, 1, 1], [], []>} : vector<16x288xbf16>, vector<288x64xbf16>, vector<16x64xf32> -> vector<16x64xf32>
    %c0_3 = arith.constant 0 : index
    %c0_4 = arith.constant 0 : index
    %3 = vector.load %arg3[%c0_3, %c0_4] : memref<1x64xf32, #tpu.memory_space<vmem>>, vector<1x64xf32>
    %4 = vector.broadcast %3 : vector<1x64xf32> to vector<16x64xf32>
    %5 = arith.addf %2, %4 : vector<16x64xf32>
    %cst_5 = arith.constant 0.000000e+00 : f32
    %6 = vector.broadcast %cst_5 : f32 to vector<16x64xf32>
    %7 = arith.cmpf oge, %5, %6 : vector<16x64xf32>
    %cst_6 = arith.constant 2.000000e-01 : f32
    %8 = vector.broadcast %cst_6 : f32 to vector<16x64xf32>
    %9 = arith.mulf %5, %8 : vector<16x64xf32>
    %10 = arith.select %7, %5, %9 : vector<16x64xi1>, vector<16x64xf32>
    %11 = arith.truncf %10 : vector<16x64xf32> to vector<16x64xbf16>
    %c0_7 = arith.constant 0 : index
    %c0_8 = arith.constant 0 : index
    %12 = vector.load %arg4[%c0_7, %c0_8] : memref<16x64xbf16, #tpu.memory_space<vmem>>, vector<16x64xbf16>
    tpu.vector_store %arg4[%c0_7, %c0_8], %11 {strides = array<i32>} : memref<16x64xbf16, #tpu.memory_space<vmem>>, vector<16x64xbf16>,
    return
  }
  func.func @transform_0(%arg0: i32) -> (i32, i32) {
    %c0_i32 = arith.constant 0 : i32
    %c0_i32_0 = arith.constant 0 : i32
    return %arg0, %c0_i32 : i32, i32
  }
  func.func @transform_1(%arg0: i32) -> (i32, i32) {
    %c0_i32 = arith.constant 0 : i32
    %c0_i32_0 = arith.constant 0 : i32
    %c0_i32_1 = arith.constant 0 : i32
    return %c0_i32, %c0_i32_0 : i32, i32
  }
  func.func @transform_2(%arg0: i32) -> (i32, i32) {
    %c0_i32 = arith.constant 0 : i32
    %c0_i32_0 = arith.constant 0 : i32
    %c0_i32_1 = arith.constant 0 : i32
    return %c0_i32, %c0_i32_0 : i32, i32
  }
  func.func @transform_3(%arg0: i32) -> (i32, i32) {
    %c0_i32 = arith.constant 0 : i32
    %c0_i32_0 = arith.constant 0 : i32
    return %arg0, %c0_i32 : i32, i32
  }
}

module attributes {stable_mosaic.version = 11 : i64} {
  func.func @_mm_bias_lrelu_kernel(%arg0: i32, %arg1: memref<16x576xbf16, #tpu.memory_space<vmem>>, %arg2: memref<576x64xbf16, #tpu.memory_space<vmem>>, %arg3: memref<1x64xf32, #tpu.memory_space<vmem>>, %arg4: memref<16x64xf32, #tpu.memory_space<vmem>>) attributes {dimension_semantics = [#tpu.dimension_semantics<parallel>], iteration_bounds = array<i64: 1>, scalar_prefetch = 0 : i64, scratch_operands = 0 : i64, tpu.core_type = #tpu.core_type<tc>, window_params = [{transform_indices = @transform_0, window_bounds = array<i64: 16, 576>}, {pipeline_mode = #tpu.pipeline_mode<synchronous>, transform_indices = @transform_1, window_bounds = array<i64: 576, 64>}, {pipeline_mode = #tpu.pipeline_mode<synchronous>, transform_indices = @transform_2, window_bounds = array<i64: 1, 64>}, {transform_indices = @transform_3, window_bounds = array<i64: 16, 64>}]} {
    %c0 = arith.constant 0 : index
    %c0_0 = arith.constant 0 : index
    %0 = vector.load %arg1[%c0, %c0_0] : memref<16x576xbf16, #tpu.memory_space<vmem>>, vector<16x576xbf16>
    %c0_1 = arith.constant 0 : index
    %c0_2 = arith.constant 0 : index
    %1 = vector.load %arg2[%c0_1, %c0_2] : memref<576x64xbf16, #tpu.memory_space<vmem>>, vector<576x64xbf16>
    %cst = arith.constant dense<0.000000e+00> : vector<16x64xf32>
    %2 = tpu.matmul %0, %1, %cst {dimension_numbers = #tpu.dot_dimension_numbers<[1], [0], [0], [1], [0, 0, 1, 1], [], []>} : vector<16x576xbf16>, vector<576x64xbf16>, vector<16x64xf32> -> vector<16x64xf32>
    %c0_3 = arith.constant 0 : index
    %c0_4 = arith.constant 0 : index
    %3 = vector.load %arg3[%c0_3, %c0_4] : memref<1x64xf32, #tpu.memory_space<vmem>>, vector<1x64xf32>
    %4 = vector.broadcast %3 : vector<1x64xf32> to vector<16x64xf32>
    %5 = arith.addf %2, %4 : vector<16x64xf32>
    %cst_5 = arith.constant 0.000000e+00 : f32
    %6 = vector.broadcast %cst_5 : f32 to vector<16x64xf32>
    %7 = arith.cmpf oge, %5, %6 : vector<16x64xf32>
    %cst_6 = arith.constant 2.000000e-01 : f32
    %8 = vector.broadcast %cst_6 : f32 to vector<16x64xf32>
    %9 = arith.mulf %5, %8 : vector<16x64xf32>
    %10 = arith.select %7, %5, %9 : vector<16x64xi1>, vector<16x64xf32>
    %c0_7 = arith.constant 0 : index
    %c0_8 = arith.constant 0 : index
    %11 = vector.load %arg4[%c0_7, %c0_8] : memref<16x64xf32, #tpu.memory_space<vmem>>, vector<16x64xf32>
    tpu.vector_store %arg4[%c0_7, %c0_8], %10 {strides = array<i32>} : memref<16x64xf32, #tpu.memory_space<vmem>>, vector<16x64xf32>,
    return
  }
  func.func @transform_0(%arg0: i32) -> (i32, i32) {
    %c0_i32 = arith.constant 0 : i32
    %c0_i32_0 = arith.constant 0 : i32
    return %arg0, %c0_i32 : i32, i32
  }
  func.func @transform_1(%arg0: i32) -> (i32, i32) {
    %c0_i32 = arith.constant 0 : i32
    %c0_i32_0 = arith.constant 0 : i32
    %c0_i32_1 = arith.constant 0 : i32
    return %c0_i32, %c0_i32_0 : i32, i32
  }
  func.func @transform_2(%arg0: i32) -> (i32, i32) {
    %c0_i32 = arith.constant 0 : i32
    %c0_i32_0 = arith.constant 0 : i32
    %c0_i32_1 = arith.constant 0 : i32
    return %c0_i32, %c0_i32_0 : i32, i32
  }
  func.func @transform_3(%arg0: i32) -> (i32, i32) {
    %c0_i32 = arith.constant 0 : i32
    %c0_i32_0 = arith.constant 0 : i32
    return %arg0, %c0_i32 : i32, i32
  }
}

module attributes {stable_mosaic.version = 11 : i64} {
  func.func @_mm_bias_lrelu_kernel(%arg0: i32, %arg1: memref<16x576xbf16, #tpu.memory_space<vmem>>, %arg2: memref<576x64xbf16, #tpu.memory_space<vmem>>, %arg3: memref<1x64xf32, #tpu.memory_space<vmem>>, %arg4: memref<16x64xbf16, #tpu.memory_space<vmem>>) attributes {dimension_semantics = [#tpu.dimension_semantics<parallel>], iteration_bounds = array<i64: 1>, scalar_prefetch = 0 : i64, scratch_operands = 0 : i64, tpu.core_type = #tpu.core_type<tc>, window_params = [{transform_indices = @transform_0, window_bounds = array<i64: 16, 576>}, {pipeline_mode = #tpu.pipeline_mode<synchronous>, transform_indices = @transform_1, window_bounds = array<i64: 576, 64>}, {pipeline_mode = #tpu.pipeline_mode<synchronous>, transform_indices = @transform_2, window_bounds = array<i64: 1, 64>}, {transform_indices = @transform_3, window_bounds = array<i64: 16, 64>}]} {
    %c0 = arith.constant 0 : index
    %c0_0 = arith.constant 0 : index
    %0 = vector.load %arg1[%c0, %c0_0] : memref<16x576xbf16, #tpu.memory_space<vmem>>, vector<16x576xbf16>
    %c0_1 = arith.constant 0 : index
    %c0_2 = arith.constant 0 : index
    %1 = vector.load %arg2[%c0_1, %c0_2] : memref<576x64xbf16, #tpu.memory_space<vmem>>, vector<576x64xbf16>
    %cst = arith.constant dense<0.000000e+00> : vector<16x64xf32>
    %2 = tpu.matmul %0, %1, %cst {dimension_numbers = #tpu.dot_dimension_numbers<[1], [0], [0], [1], [0, 0, 1, 1], [], []>} : vector<16x576xbf16>, vector<576x64xbf16>, vector<16x64xf32> -> vector<16x64xf32>
    %c0_3 = arith.constant 0 : index
    %c0_4 = arith.constant 0 : index
    %3 = vector.load %arg3[%c0_3, %c0_4] : memref<1x64xf32, #tpu.memory_space<vmem>>, vector<1x64xf32>
    %4 = vector.broadcast %3 : vector<1x64xf32> to vector<16x64xf32>
    %5 = arith.addf %2, %4 : vector<16x64xf32>
    %cst_5 = arith.constant 0.000000e+00 : f32
    %6 = vector.broadcast %cst_5 : f32 to vector<16x64xf32>
    %7 = arith.cmpf oge, %5, %6 : vector<16x64xf32>
    %cst_6 = arith.constant 2.000000e-01 : f32
    %8 = vector.broadcast %cst_6 : f32 to vector<16x64xf32>
    %9 = arith.mulf %5, %8 : vector<16x64xf32>
    %10 = arith.select %7, %5, %9 : vector<16x64xi1>, vector<16x64xf32>
    %11 = arith.truncf %10 : vector<16x64xf32> to vector<16x64xbf16>
    %c0_7 = arith.constant 0 : index
    %c0_8 = arith.constant 0 : index
    %12 = vector.load %arg4[%c0_7, %c0_8] : memref<16x64xbf16, #tpu.memory_space<vmem>>, vector<16x64xbf16>
    tpu.vector_store %arg4[%c0_7, %c0_8], %11 {strides = array<i32>} : memref<16x64xbf16, #tpu.memory_space<vmem>>, vector<16x64xbf16>,
    return
  }
  func.func @transform_0(%arg0: i32) -> (i32, i32) {
    %c0_i32 = arith.constant 0 : i32
    %c0_i32_0 = arith.constant 0 : i32
    return %arg0, %c0_i32 : i32, i32
  }
  func.func @transform_1(%arg0: i32) -> (i32, i32) {
    %c0_i32 = arith.constant 0 : i32
    %c0_i32_0 = arith.constant 0 : i32
    %c0_i32_1 = arith.constant 0 : i32
    return %c0_i32, %c0_i32_0 : i32, i32
  }
  func.func @transform_2(%arg0: i32) -> (i32, i32) {
    %c0_i32 = arith.constant 0 : i32
    %c0_i32_0 = arith.constant 0 : i32
    %c0_i32_1 = arith.constant 0 : i32
    return %c0_i32, %c0_i32_0 : i32, i32
  }
  func.func @transform_3(%arg0: i32) -> (i32, i32) {
    %c0_i32 = arith.constant 0 : i32
    %c0_i32_0 = arith.constant 0 : i32
    return %arg0, %c0_i32 : i32, i32
  }
}

</mosaic_0001>

<bundles_post_ra>
// kernel: encoder_depth_fwd.12
= control target key start
LH: loop header
LB: loop body
LE: loop exit
PB: predicated region body
PF: predicated region fallthrough
CT: control target
= control target key end

     0   :  { %s3161_s12 = smov 0   ;;  %s3977_s0 = inlined_call_operand.vmem [shape: bf16[2048,9], index: 0, kind: input, shape index: {}]   ;;  %s3978_s1 = inlined_call_operand.vmem [shape: bf16[9,4], index: 1, kind: input, shape index: {}]   ;;  %s3979_s2 = inlined_call_operand.vmem [shape: f32[1,4], index: 2, kind: input, shape index: {}]   ;;  %s3980_s3 = inlined_call_operand.vmem [shape: bf16[2048,4], index: 3, kind: output, shape index: {}]  }
   0x1 LB: > { %s2463_s13 = sadd.s32 4294967295, %s3138_s12   ;;  %p2467_p0 = scmp.ge.s32.totalorder %s3138_s12, 1  ;;  %s3138_s12 = sphi %s3161_s12, %s13_s12  }
   0x2   : > { %p138_p1 = scmp.lt.s32.totalorder %s3138_s12, 3 }
   0x4   : > { %p139_p2 = pnand %p2467_p0, %p138_p1 }
   0x5   : > { %v3066_v0 = vld [vmem:[%s3978_s1] sm:$0x1f] (!%p139_p2)   ;;  %vm830_vm0 = vcmask (!%p139_p2), 1043456   ;;  %vm831_vm1 = vcmask (!%p139_p2), 1044480   ;;  %s2468_s16 = sshll.u32 (!%p139_p2), %s2463_s13, 7  ;;  %v3140_v1 = vmov (!%p139_p2), 65535  }
   0x6   : > { %142 = sbr.rel (%p139_p2) target bundleno = 397 (0x18d), region = 32  ;;  %v832_v2 = vsel (!%p139_p2), %vm830_vm0, 4294967295, %v3140_v1  ;;  %p163_p3 = scmp.lt.s32.totalorder (!%p139_p2), %s2468_s16, 255  ;;  %vm637_vm2 = vcmask (!%p139_p2), 72704   ;;  %vm2278_vm3 = vcmask (!%p139_p2), 27648  }
   0x7   : > { %v833_v3 = vsel (!%p139_p2), %vm831_vm1, %v832_v2, 0 }
   0x8   : > { %v835_v4 = vand.u32 (!%p139_p2), %v3066_v0, %v833_v3 }
   0xa   : > { %2925 = vmatprep.subr.bf16.mxu0 (!%p139_p2), %v835_v4  ;;  %3055 = vmatprep.subr.bf16.mxu1 (!%p139_p2), %v835_v4 }
   0xb   : > { %2926 = vmatpush3.bf16.msra.mxu0 (!%p139_p2), %v835_v4  ;;  %3056 = vmatpush3.bf16.msra.mxu1 (!%p139_p2), %v835_v4 }
   0xd   : > { %s3982_s16 = smov (!%p163_p3, %s2468_s16), 255 }
   0xe   : > { %s2469_s17 = sshll.u32 %s3982_s16, 2 }
   0xf   : > { %s3180_s20 = scalar_lea.vmem %s3977_s0, %s2469_s17  ;;  %s3325_s25 = scalar_lea.vmem %s3980_s3, %s2469_s17 }
  0x10   : > { %v3067_v5 = vld [vmem:[%s3180_s20] sm:$0xff]   ;;  %v3069_v7 = vld [vmem:[%s3180_s20 + $0x8] sm:$0xff]   ;;  %v3071_v9 = vld [vmem:[%s3180_s20 + $0x10] sm:$0xff]  }
  0x11   : > { %v3068_v6 = vld [vmem:[%s3180_s20 + $0x100] sm:$0xff]   ;;  %2927 = vmatprep.mubr.msk.bf16.mxu0 %vm637_vm2, %v3067_v5  ;;  %v3070_v8 = vld [vmem:[%s3180_s20 + $0x108] sm:$0xff]   ;;  %v3072_v10 = vld [vmem:[%s3180_s20 + $0x110] sm:$0xff]  }
  0x12   : > { %2991 = vmatprep.mubr.msk.bf16.mxu1 %vm637_vm2, %v3068_v6  ;;  %2928 = vmatmul.mubr.msk.bf16.vlgmr.msra.gmra.mrb[0].mxu0 %vm637_vm2, %v3069_v7  ;;  %v3073_v11 = vld [vmem:[%s3180_s20 + $0x18] sm:$0xff]   ;;  %v3075_v13 = vld [vmem:[%s3180_s20 + $0x20] sm:$0xff]   ;;  %v3077_v15 = vld [vmem:[%s3180_s20 + $0x28] sm:$0xff]  }
  0x13   : > { %2992 = vmatmul.mubr.msk.bf16.vlgmr.msra.gmra.mrb[0].mxu1 %vm637_vm2, %v3070_v8  ;;  %2931 = vmatprep.mubr.msk.bf16.mxu0 %vm637_vm2, %v3071_v9  ;;  %v3074_v12 = vld [vmem:[%s3180_s20 + $0x118] sm:$0xff]   ;;  %v3076_v14 = vld [vmem:[%s3180_s20 + $0x120] sm:$0xff]   ;;  %v3078_v16 = vld [vmem:[%s3180_s20 + $0x128] sm:$0xff]  }
  0x14   : > { %2995 = vmatprep.mubr.msk.bf16.mxu1 %vm637_vm2, %v3072_v10  ;;  %v3079_v17 = vld [vmem:[%s3180_s20 + $0x30] sm:$0xff]   ;;  %v3081_v19 = vld [vmem:[%s3180_s20 + $0x38] sm:$0xff]   ;;  %v3083_v21 = vld [vmem:[%s3180_s20 + $0x40] sm:$0xff]  }
  0x15   : > { %v3080_v18 = vld [vmem:[%s3180_s20 + $0x130] sm:$0xff]   ;;  %v3082_v20 = vld [vmem:[%s3180_s20 + $0x138] sm:$0xff]   ;;  %v3084_v22 = vld [vmem:[%s3180_s20 + $0x140] sm:$0xff]  }
  0x16   : > { %v3085_v23 = vld [vmem:[%s3180_s20 + $0x48] sm:$0xff]   ;;  %v3087_v25 = vld [vmem:[%s3180_s20 + $0x50] sm:$0xff]   ;;  %v3089_v27 = vld [vmem:[%s3180_s20 + $0x58] sm:$0xff]  }
  0x17   : > { %v3086_v24 = vld [vmem:[%s3180_s20 + $0x148] sm:$0xff]   ;;  %v3088_v26 = vld [vmem:[%s3180_s20 + $0x150] sm:$0xff]   ;;  %v3090_v28 = vld [vmem:[%s3180_s20 + $0x158] sm:$0xff]  }
  0x18   : > { %v3091_v29 = vld [vmem:[%s3180_s20 + $0x60] sm:$0xff]   ;;  %v3093_v31 = vld [vmem:[%s3180_s20 + $0x68] sm:$0xff]   ;;  %v3095_v33 = vld [vmem:[%s3180_s20 + $0x70] sm:$0xff]  }
  0x19   : > { %v3092_v30 = vld [vmem:[%s3180_s20 + $0x160] sm:$0xff]   ;;  %v3094_v32 = vld [vmem:[%s3180_s20 + $0x168] sm:$0xff]   ;;  %v3096_v34 = vld [vmem:[%s3180_s20 + $0x170] sm:$0xff]  }
  0x1a   : > { %2932 = vmatmul.mubr.msk.bf16.gmra.mrb[4].mxu0 %vm637_vm2, %v3073_v11  ;;  %v3097_v35 = vld [vmem:[%s3180_s20 + $0x78] sm:$0xff]   ;;  %v3099_v37 = vld [vmem:[%s3180_s20 + $0x80] sm:$0xff]   ;;  %v3101_v39 = vld [vmem:[%s3180_s20 + $0x88] sm:$0xff]  }
  0x1b   : > { %2996 = vmatmul.mubr.msk.bf16.gmra.mrb[4].mxu1 %vm637_vm2, %v3074_v12  ;;  %2935 = vmatprep.mubr.msk.bf16.mxu0 %vm637_vm2, %v3075_v13  ;;  %v3098_v36 = vld [vmem:[%s3180_s20 + $0x178] sm:$0xff]   ;;  %v3100_v38 = vld [vmem:[%s3180_s20 + $0x180] sm:$0xff]   ;;  %v3102_v40 = vld [vmem:[%s3180_s20 + $0x188] sm:$0xff]  }
  0x1c   : > { %2999 = vmatprep.mubr.msk.bf16.mxu1 %vm637_vm2, %v3076_v14  ;;  %v3103_v41 = vld [vmem:[%s3180_s20 + $0x90] sm:$0xff]   ;;  %v3105_v43 = vld [vmem:[%s3180_s20 + $0x98] sm:$0xff]   ;;  %v3107_v45 = vld [vmem:[%s3180_s20 + $0xa0] sm:$0xff]  }
  0x1d   : > { %v3104_v42 = vld [vmem:[%s3180_s20 + $0x190] sm:$0xff]   ;;  %v3106_v44 = vld [vmem:[%s3180_s20 + $0x198] sm:$0xff]   ;;  %v3108_v46 = vld [vmem:[%s3180_s20 + $0x1a0] sm:$0xff]  }
  0x1e   : > { %v3109_v47 = vld [vmem:[%s3180_s20 + $0xa8] sm:$0xff]   ;;  %v3111_v49 = vld [vmem:[%s3180_s20 + $0xb0] sm:$0xff]   ;;  %v3113_v51 = vld [vmem:[%s3180_s20 + $0xb8] sm:$0xff]  }
  0x1f   : > { %v3110_v48 = vld [vmem:[%s3180_s20 + $0x1a8] sm:$0xff]   ;;  %v3112_v50 = vld [vmem:[%s3180_s20 + $0x1b0] sm:$0xff]   ;;  %v3114_v52 = vld [vmem:[%s3180_s20 + $0x1b8] sm:$0xff]  }
  0x20   : > { %v3115_v53 = vld [vmem:[%s3180_s20 + $0xc0] sm:$0xff]   ;;  %v3117_v55 = vld [vmem:[%s3180_s20 + $0xc8] sm:$0xff]   ;;  %v3119_v57 = vld [vmem:[%s3180_s20 + $0xd0] sm:$0xff]  }
  0x21   : > { %v3116_v54 = vld [vmem:[%s3180_s20 + $0x1c0] sm:$0xff]   ;;  %v3118_v56 = vld [vmem:[%s3180_s20 + $0x1c8] sm:$0xff]   ;;  %v3120_v58 = vld [vmem:[%s3180_s20 + $0x1d0] sm:$0xff]  }
  0x22   : > { %2936 = vmatmul.mubr.msk.bf16.gmra.mrb[8].mxu0 %vm637_vm2, %v3077_v15  ;;  %v3121_v59 = vld [vmem:[%s3180_s20 + $0xd8] sm:$0xff]   ;;  %v3123_v61 = vld [vmem:[%s3180_s20 + $0xe0] sm:$0xff]   ;;  %v3125_v63 = vld [vmem:[%s3180_s20 + $0xe8] sm:$0xff]  }
  0x23   : > { %3000 = vmatmul.mubr.msk.bf16.gmra.mrb[8].mxu1 %vm637_vm2, %v3078_v16  ;;  %2939 = vmatprep.mubr.msk.bf16.mxu0 %vm637_vm2, %v3079_v17  ;;  %v3122_v60 = vld [vmem:[%s3180_s20 + $0x1d8] sm:$0xff]   ;;  %v3124_v62 = vld [vmem:[%s3180_s20 + $0x1e0] sm:$0xff]   ;;  %v3126_v0 = vld [vmem:[%s3180_s20 + $0x1e8] sm:$0xff]  }
  0x24   : > { %3003 = vmatprep.mubr.msk.bf16.mxu1 %vm637_vm2, %v3080_v18  ;;  %v3127_v1 = vld [vmem:[%s3180_s20 + $0xf0] sm:$0xff]   ;;  %v3129_v3 = vld [vmem:[%s3180_s20 + $0xf8] sm:$0xff]   ;;  %v3313_v5 = vld [vmem:[%s3979_s2] ss:$0 sm:$0xff] }
  0x25   : > { %v3128_v2 = vld [vmem:[%s3180_s20 + $0x1f0] sm:$0xff]   ;;  %v3130_v4 = vld [vmem:[%s3180_s20 + $0x1f8] sm:$0xff]  }
  0x2a   : > { %2940 = vmatmul.mubr.msk.bf16.gmra.mrb[12].mxu0 %vm637_vm2, %v3081_v19 }
  0x2b   : > { %3004 = vmatmul.mubr.msk.bf16.gmra.mrb[12].mxu1 %vm637_vm2, %v3082_v20  ;;  %2943 = vmatprep.mubr.msk.bf16.mxu0 %vm637_vm2, %v3083_v21 }
  0x2c   : > { %3007 = vmatprep.mubr.msk.bf16.mxu1 %vm637_vm2, %v3084_v22 }
  0x32   : > { %2944 = vmatmul.mubr.msk.bf16.gmra.mrb[16].mxu0 %vm637_vm2, %v3085_v23 }
  0x33   : > { %3008 = vmatmul.mubr.msk.bf16.gmra.mrb[16].mxu1 %vm637_vm2, %v3086_v24  ;;  %2947 = vmatprep.mubr.msk.bf16.mxu0 %vm637_vm2, %v3087_v25 }
  0x34   : > { %3011 = vmatprep.mubr.msk.bf16.mxu1 %vm637_vm2, %v3088_v26 }
  0x3a   : > { %2948 = vmatmul.mubr.msk.bf16.gmra.mrb[20].mxu0 %vm637_vm2, %v3089_v27 }
  0x3b   : > { %3012 = vmatmul.mubr.msk.bf16.gmra.mrb[20].mxu1 %vm637_vm2, %v3090_v28  ;;  %2951 = vmatprep.mubr.msk.bf16.mxu0 %vm637_vm2, %v3091_v29 }
  0x3c   : > { %3015 = vmatprep.mubr.msk.bf16.mxu1 %vm637_vm2, %v3092_v30 }
  0x42   : > { %2952 = vmatmul.mubr.msk.bf16.gmra.mrb[24].mxu0 %vm637_vm2, %v3093_v31 }
  0x43   : > { %3016 = vmatmul.mubr.msk.bf16.gmra.mrb[24].mxu1 %vm637_vm2, %v3094_v32  ;;  %2955 = vmatprep.mubr.msk.bf16.mxu0 %vm637_vm2, %v3095_v33 }
  0x44   : > { %3019 = vmatprep.mubr.msk.bf16.mxu1 %vm637_vm2, %v3096_v34 }
  0x4a   : > { %2956 = vmatmul.mubr.msk.bf16.gmra.mrb[28].mxu0 %vm637_vm2, %v3097_v35 }
  0x4b   : > { %3020 = vmatmul.mubr.msk.bf16.gmra.mrb[28].mxu1 %vm637_vm2, %v3098_v36  ;;  %2959 = vmatprep.mubr.msk.bf16.mxu0 %vm637_vm2, %v3099_v37 }
  0x4c   : > { %3023 = vmatprep.mubr.msk.bf16.mxu1 %vm637_vm2, %v3100_v38 }
  0x52   : > { %2960 = vmatmul.mubr.msk.bf16.gmra.mrb[32].mxu0 %vm637_vm2, %v3101_v39 }
  0x53   : > { %3024 = vmatmul.mubr.msk.bf16.gmra.mrb[32].mxu1 %vm637_vm2, %v3102_v40  ;;  %2963 = vmatprep.mubr.msk.bf16.mxu0 %vm637_vm2, %v3103_v41 }
  0x54   : > { %3027 = vmatprep.mubr.msk.bf16.mxu1 %vm637_vm2, %v3104_v42 }
  0x5a   : > { %2964 = vmatmul.mubr.msk.bf16.gmra.mrb[36].mxu0 %vm637_vm2, %v3105_v43 }
  0x5b   : > { %3028 = vmatmul.mubr.msk.bf16.gmra.mrb[36].mxu1 %vm637_vm2, %v3106_v44  ;;  %2967 = vmatprep.mubr.msk.bf16.mxu0 %vm637_vm2, %v3107_v45 }
  0x5c   : > { %3031 = vmatprep.mubr.msk.bf16.mxu1 %vm637_vm2, %v3108_v46 }
  0x62   : > { %2968 = vmatmul.mubr.msk.bf16.gmra.mrb[40].mxu0 %vm637_vm2, %v3109_v47 }
  0x63   : > { %3032 = vmatmul.mubr.msk.bf16.gmra.mrb[40].mxu1 %vm637_vm2, %v3110_v48  ;;  %2971 = vmatprep.mubr.msk.bf16.mxu0 %vm637_vm2, %v3111_v49 }
  0x64   : > { %3035 = vmatprep.mubr.msk.bf16.mxu1 %vm637_vm2, %v3112_v50 }
  0x6a   : > { %2972 = vmatmul.mubr.msk.bf16.gmra.mrb[44].mxu0 %vm637_vm2, %v3113_v51 }
  0x6b   : > { %3036 = vmatmul.mubr.msk.bf16.gmra.mrb[44].mxu1 %vm637_vm2, %v3114_v52  ;;  %2975 = vmatprep.mubr.msk.bf16.mxu0 %vm637_vm2, %v3115_v53 }
  0x6c   : > { %3039 = vmatprep.mubr.msk.bf16.mxu1 %vm637_vm2, %v3116_v54 }
  0x72   : > { %2976 = vmatmul.mubr.msk.bf16.gmra.mrb[48].mxu0 %vm637_vm2, %v3117_v55 }
  0x73   : > { %3040 = vmatmul.mubr.msk.bf16.gmra.mrb[48].mxu1 %vm637_vm2, %v3118_v56  ;;  %2979 = vmatprep.mubr.msk.bf16.mxu0 %vm637_vm2, %v3119_v57 }
  0x74   : > { %3043 = vmatprep.mubr.msk.bf16.mxu1 %vm637_vm2, %v3120_v58 }
  0x7a   : > { %2980 = vmatmul.mubr.msk.bf16.gmra.mrb[52].mxu0 %vm637_vm2, %v3121_v59 }
  0x7b   : > { %3044 = vmatmul.mubr.msk.bf16.gmra.mrb[52].mxu1 %vm637_vm2, %v3122_v60  ;;  %2983 = vmatprep.mubr.msk.bf16.mxu0 %vm637_vm2, %v3123_v61 }
  0x7c   : > { %3047 = vmatprep.mubr.msk.bf16.mxu1 %vm637_vm2, %v3124_v62 }
  0x82   : > { %2984 = vmatmul.mubr.msk.bf16.gmra.mrb[56].mxu0 %vm637_vm2, %v3125_v63 }
  0x83   : > { %3048 = vmatmul.mubr.msk.bf16.gmra.mrb[56].mxu1 %vm637_vm2, %v3126_v0  ;;  %2987 = vmatprep.mubr.msk.bf16.mxu0 %vm637_vm2, %v3127_v1 }
  0x84   : > { %3051 = vmatprep.mubr.msk.bf16.mxu1 %vm637_vm2, %v3128_v2 }
  0x8a   : > { %2988 = vmatmul.mubr.msk.bf16.gmra.mrb[60].mxu0 %vm637_vm2, %v3129_v3 }
  0x8b   : > { %3052 = vmatmul.mubr.msk.bf16.gmra.mrb[60].mxu1 %vm637_vm2, %v3130_v4 }
  0xe5   : > { %v2929_v6 = vpop.f32.mrb[0].mxu0 }
  0xe6   : > { %v880_v7 = vadd.f32 %v2929_v6, %v3313_v5  ;;  %v2993_v8 = vpop.f32.mrb[0].mxu1  ;;  %v871_v9 = vpop.f32.mrb[1].mxu0 }
  0xe7   : > { %v1136_v10 = vadd.f32 %v2993_v8, %v3313_v5  ;;  %v872_v11 = vadd.f32 %v3313_v5, %v871_v9  ;;  %v1127_v12 = vpop.f32.mrb[1].mxu1  ;;  %v2930_v13 = vpop.f32.mrb[2].mxu0 }
  0xe8   : > { %vm1384_vm4 = vcmp.ge.f32.partialorder %v880_v7, 0.0  ;;  %v1512_v14 = vmul.f32 0.2, %v880_v7  ;;  %v1128_v15 = vadd.f32 %v3313_v5, %v1127_v12  ;;  %v883_v16 = vadd.f32 %v2930_v13, %v3313_v5  ;;  %v2994_v17 = vpop.f32.mrb[2].mxu1  ;;  %v874_v18 = vpop.f32.mrb[3].mxu0 }
  0xe9   : > { %vm1448_vm5 = vcmp.ge.f32.partialorder %v1136_v10, 0.0  ;;  %v1576_v19 = vmul.f32 0.2, %v1136_v10  ;;  %vm1382_vm6 = vcmp.ge.f32.partialorder %v872_v11, 0.0  ;;  %v1510_v20 = vmul.f32 0.2, %v872_v11 }
  0xea   : > { %v1640_v21 = vsel %vm1384_vm4, %v880_v7, %v1512_v14  ;;  %vm1446_vm7 = vcmp.ge.f32.partialorder %v1128_v15, 0.0  ;;  %v1574_v22 = vmul.f32 0.2, %v1128_v15  ;;  %vm1385_vm8 = vcmp.ge.f32.partialorder %v883_v16, 0.0  ;;  %v1130_v23 = vpop.f32.mrb[3].mxu1 }
  0xeb   : > { %v2734_v24 = vpack.c.bf16 %v1640_v21, %v1640_v21  ;;  %v1704_v25 = vsel %vm1448_vm5, %v1136_v10, %v1576_v19  ;;  %v1638_v26 = vsel %vm1382_vm6, %v872_v11, %v1510_v20  ;;  %v1513_v27 = vmul.f32 0.2, %v883_v16 }
  0xec   : > { %v2798_v28 = vpack.c.bf16 %v1704_v25, %v1704_v25  ;;  %v2732_v29 = vpack.c.bf16 %v1638_v26, %v1638_v26  ;;  %v1702_v30 = vsel %vm1446_vm7, %v1128_v15, %v1574_v22  ;;  %v1139_v31 = vadd.f32 %v2994_v17, %v3313_v5 }
  0xed   : > { %2281 = vst.msk [vmem:[%s3325_s25 + $0x8] sm:$0xf] %vm2278_vm3, %v2734_v24  ;;  %v2796_v32 = vpack.c.bf16 %v1702_v30, %v1702_v30  ;;  %v1641_v33 = vsel %vm1385_vm8, %v883_v16, %v1513_v27  ;;  %v875_v34 = vadd.f32 %v3313_v5, %v874_v18  ;;  %v1131_v35 = vadd.f32 %v3313_v5, %v1130_v23  ;;  %v2933_v36 = vpop.f32.mrb[4].mxu0 }
  0xee   : > { %2345 = vst.msk [vmem:[%s3325_s25 + $0x108] sm:$0xf] %vm2278_vm3, %v2798_v28  ;;  %2279 = vst.msk [vmem:[%s3325_s25] sm:$0xf] %vm2278_vm3, %v2732_v29  ;;  %v2735_v37 = vpack.c.bf16 %v1641_v33, %v1641_v33  ;;  %vm1449_vm9 = vcmp.ge.f32.partialorder %v1139_v31, 0.0  ;;  %v896_v39 = vadd.f32 %v2933_v36, %v3313_v5  ;;  %v2997_v40 = vpop.f32.mrb[4].mxu1 }
  0xef   : > { %v1577_v38 = vmul.f32 0.2, %v1139_v31  ;;  %v887_v41 = vpop.f32.mrb[5].mxu0  ;;  %2343 = vst.msk [vmem:[%s3325_s25 + $0x100] sm:$0xf] %vm2278_vm3, %v2796_v32  ;;  %vm1383_vm10 = vcmp.ge.f32.partialorder %v875_v34, 0.0  ;;  %v1152_v46 = vadd.f32 %v2997_v40, %v3313_v5 }
  0xf0   : > { %v1511_v42 = vmul.f32 0.2, %v875_v34  ;;  %vm1447_vm11 = vcmp.ge.f32.partialorder %v1131_v35, 0.0  ;;  %v1575_v43 = vmul.f32 0.2, %v1131_v35  ;;  %vm1388_vm12 = vcmp.ge.f32.partialorder %v896_v39, 0.0 }
  0xf1   : > { %2282 = vst.msk [vmem:[%s3325_s25 + $0xc] sm:$0xf] %vm2278_vm3, %v2735_v37  ;;  %v1705_v44 = vsel %vm1449_vm9, %v1139_v31, %v1577_v38  ;;  %v1516_v45 = vmul.f32 0.2, %v896_v39  ;;  %v1143_v47 = vpop.f32.mrb[5].mxu1  ;;  %v2934_v48 = vpop.f32.mrb[6].mxu0  ;;  %v888_v52 = vadd.f32 %v3313_v5, %v887_v41 }
  0xf2   : > { %v2799_v49 = vpack.c.bf16 %v1705_v44, %v1705_v44  ;;  %v1639_v50 = vsel %vm1383_vm10, %v875_v34, %v1511_v42  ;;  %v1703_v51 = vsel %vm1447_vm11, %v1131_v35, %v1575_v43  ;;  %v2998_v53 = vpop.f32.mrb[6].mxu1  ;;  %v890_v54 = vpop.f32.mrb[7].mxu0  ;;  %vm1452_vm13 = vcmp.ge.f32.partialorder %v1152_v46, 0.0 }
  0xf3   : > { %v2733_v55 = vpack.c.bf16 %v1639_v50, %v1639_v50  ;;  %v2797_v56 = vpack.c.bf16 %v1703_v51, %v1703_v51  ;;  %v1644_v57 = vsel %vm1388_vm12, %v896_v39, %v1516_v45  ;;  %v1146_v58 = vpop.f32.mrb[7].mxu1  ;;  %v1580_v60 = vmul.f32 0.2, %v1152_v46 }
  0xf4   : > { %2346 = vst.msk [vmem:[%s3325_s25 + $0x10c] sm:$0xf] %vm2278_vm3, %v2799_v49  ;;  %v2738_v59 = vpack.c.bf16 %v1644_v57, %v1644_v57  ;;  %vm1386_vm14 = vcmp.ge.f32.partialorder %v888_v52, 0.0  ;;  %v1514_v61 = vmul.f32 0.2, %v888_v52  ;;  %v1144_v62 = vadd.f32 %v3313_v5, %v1143_v47 }
  0xf5   : > { %2280 = vst.msk [vmem:[%s3325_s25 + $0x4] sm:$0xf] %vm2278_vm3, %v2733_v55  ;;  %2344 = vst.msk [vmem:[%s3325_s25 + $0x104] sm:$0xf] %vm2278_vm3, %v2797_v56  ;;  %v899_v63 = vadd.f32 %v2934_v48, %v3313_v5  ;;  %v1155_v0 = vadd.f32 %v2998_v53, %v3313_v5  ;;  %v891_v1 = vadd.f32 %v3313_v5, %v890_v54  ;;  %v2937_v6 = vpop.f32.mrb[8].mxu0 }
  0xf6   : > { %2285 = vst.msk [vmem:[%s3325_s25 + $0x18] sm:$0xf] %vm2278_vm3, %v2738_v59  ;;  %v1708_v2 = vsel %vm1452_vm13, %v1152_v46, %v1580_v60  ;;  %v1642_v3 = vsel %vm1386_vm14, %v888_v52, %v1514_v61  ;;  %v1147_v4 = vadd.f32 %v3313_v5, %v1146_v58  ;;  %vm1450_vm15 = vcmp.ge.f32.partialorder %v1144_v62, 0.0  ;;  %v3001_v10 = vpop.f32.mrb[8].mxu1  ;;  %v903_v11 = vpop.f32.mrb[9].mxu0 }
  0xf7   : > { %v2802_v7 = vpack.c.bf16 %v1708_v2, %v1708_v2  ;;  %v2736_v8 = vpack.c.bf16 %v1642_v3, %v1642_v3  ;;  %v1578_v9 = vmul.f32 0.2, %v1144_v62  ;;  %vm1389_vm0 = vcmp.ge.f32.partialorder %v899_v63, 0.0  ;;  %v1159_v16 = vpop.f32.mrb[9].mxu1  ;;  %v2938_v17 = vpop.f32.mrb[10].mxu0 }
  0xf8   : > { %v1517_v12 = vmul.f32 0.2, %v899_v63  ;;  %vm1453_vm1 = vcmp.ge.f32.partialorder %v1155_v0, 0.0  ;;  %v1581_v13 = vmul.f32 0.2, %v1155_v0  ;;  %vm1387_vm2 = vcmp.ge.f32.partialorder %v891_v1, 0.0 }
  0xf9   : > { %2349 = vst.msk [vmem:[%s3325_s25 + $0x118] sm:$0xf] %vm2278_vm3, %v2802_v7  ;;  %2283 = vst.msk [vmem:[%s3325_s25 + $0x10] sm:$0xf] %vm2278_vm3, %v2736_v8  ;;  %v1706_v14 = vsel %vm1450_vm15, %v1144_v62, %v1578_v9  ;;  %v1515_v15 = vmul.f32 0.2, %v891_v1  ;;  %v912_v27 = vadd.f32 %v2937_v6, %v3313_v5  ;;  %v1168_v31 = vadd.f32 %v3001_v10, %v3313_v5 }
  0xfa   : > { %vm1451_vm4 = vcmp.ge.f32.partialorder %v1147_v4, 0.0  ;;  %v2800_v18 = vpack.c.bf16 %v1706_v14, %v1706_v14  ;;  %v1645_v19 = vsel %vm1389_vm0, %v899_v63, %v1517_v12  ;;  %v1709_v20 = vsel %vm1453_vm1, %v1155_v0, %v1581_v13  ;;  %v3002_v22 = vpop.f32.mrb[10].mxu1  ;;  %v906_v23 = vpop.f32.mrb[11].mxu0 }
  0xfb   : > { %v1579_v21 = vmul.f32 0.2, %v1147_v4  ;;  %v2739_v24 = vpack.c.bf16 %v1645_v19, %v1645_v19  ;;  %v2803_v25 = vpack.c.bf16 %v1709_v20, %v1709_v20  ;;  %v1643_v26 = vsel %vm1387_vm2, %v891_v1, %v1515_v15  ;;  %v1162_v28 = vpop.f32.mrb[11].mxu1 }
  0xfc   : > { %2347 = vst.msk [vmem:[%s3325_s25 + $0x110] sm:$0xf] %vm2278_vm3, %v2800_v18  ;;  %v2737_v29 = vpack.c.bf16 %v1643_v26, %v1643_v26  ;;  %v904_v32 = vadd.f32 %v3313_v5, %v903_v11  ;;  %vm1392_vm5 = vcmp.ge.f32.partialorder %v912_v27, 0.0  ;;  %v1520_v34 = vmul.f32 0.2, %v912_v27 }
  0xfd   : > { %v1707_v30 = vsel %vm1451_vm4, %v1147_v4, %v1579_v21  ;;  %2286 = vst.msk [vmem:[%s3325_s25 + $0x1c] sm:$0xf] %vm2278_vm3, %v2739_v24  ;;  %2350 = vst.msk [vmem:[%s3325_s25 + $0x11c] sm:$0xf] %vm2278_vm3, %v2803_v25  ;;  %v1160_v35 = vadd.f32 %v3313_v5, %v1159_v16  ;;  %vm1456_vm6 = vcmp.ge.f32.partialorder %v1168_v31, 0.0  ;;  %v915_v40 = vadd.f32 %v2938_v17, %v3313_v5  ;;  %v2941_v41 = vpop.f32.mrb[12].mxu0 }
  0xfe   : > { %v2801_v33 = vpack.c.bf16 %v1707_v30, %v1707_v30  ;;  %2284 = vst.msk [vmem:[%s3325_s25 + $0x14] sm:$0xf] %vm2278_vm3, %v2737_v29  ;;  %v1584_v36 = vmul.f32 0.2, %v1168_v31  ;;  %vm1390_vm7 = vcmp.ge.f32.partialorder %v904_v32, 0.0  ;;  %v1648_v38 = vsel %vm1392_vm5, %v912_v27, %v1520_v34  ;;  %v3005_v42 = vpop.f32.mrb[12].mxu1 }
  0xff   : > { %v1518_v37 = vmul.f32 0.2, %v904_v32  ;;  %vm1454_vm8 = vcmp.ge.f32.partialorder %v1160_v35, 0.0  ;;  %v1582_v39 = vmul.f32 0.2, %v1160_v35  ;;  %v2742_v43 = vpack.c.bf16 %v1648_v38, %v1648_v38  ;;  %v919_v47 = vpop.f32.mrb[13].mxu0 }
 0x100   : > { %2348 = vst.msk [vmem:[%s3325_s25 + $0x114] sm:$0xf] %vm2278_vm3, %v2801_v33  ;;  %v1712_v44 = vsel %vm1456_vm6, %v1168_v31, %v1584_v36  ;;  %v1171_v46 = vadd.f32 %v3002_v22, %v3313_v5  ;;  %v1175_v48 = vpop.f32.mrb[13].mxu1  ;;  %vm1393_vm9 = vcmp.ge.f32.partialorder %v915_v40, 0.0  ;;  %v2942_v52 = vpop.f32.mrb[14].mxu0  ;;  %v907_v58 = vadd.f32 %v3313_v5, %v906_v23 }
 0x101   : > { %v1646_v45 = vsel %vm1390_vm7, %v904_v32, %v1518_v37  ;;  %v2806_v49 = vpack.c.bf16 %v1712_v44, %v1712_v44  ;;  %v1710_v51 = vsel %vm1454_vm8, %v1160_v35, %v1582_v39  ;;  %v3006_v53 = vpop.f32.mrb[14].mxu1  ;;  %2289 = vst.msk [vmem:[%s3325_s25 + $0x28] sm:$0xf] %vm2278_vm3, %v2742_v43  ;;  %v1521_v55 = vmul.f32 0.2, %v915_v40  ;;  %v922_v57 = vpop.f32.mrb[15].mxu0 }
 0x102   : > { %v2740_v50 = vpack.c.bf16 %v1646_v45, %v1646_v45  ;;  %v2804_v54 = vpack.c.bf16 %v1710_v51, %v1710_v51  ;;  %vm1457_vm10 = vcmp.ge.f32.partialorder %v1171_v46, 0.0  ;;  %v1585_v56 = vmul.f32 0.2, %v1171_v46  ;;  %v1178_v62 = vpop.f32.mrb[15].mxu1 }
 0x103   : > { %2353 = vst.msk [vmem:[%s3325_s25 + $0x128] sm:$0xf] %vm2278_vm3, %v2806_v49  ;;  %v1163_v59 = vadd.f32 %v3313_v5, %v1162_v28  ;;  %v928_v60 = vadd.f32 %v2941_v41, %v3313_v5  ;;  %v1184_v61 = vadd.f32 %v3005_v42, %v3313_v5  ;;  %v1649_v63 = vsel %vm1393_vm9, %v915_v40, %v1521_v55 }
 0x104   : > { %2287 = vst.msk [vmem:[%s3325_s25 + $0x20] sm:$0xf] %vm2278_vm3, %v2740_v50  ;;  %2351 = vst.msk [vmem:[%s3325_s25 + $0x120] sm:$0xf] %vm2278_vm3, %v2804_v54  ;;  %v1713_v0 = vsel %vm1457_vm10, %v1171_v46, %v1585_v56  ;;  %v920_v1 = vadd.f32 %v3313_v5, %v919_v47  ;;  %v1176_v2 = vadd.f32 %v3313_v5, %v1175_v48  ;;  %vm1391_vm11 = vcmp.ge.f32.partialorder %v907_v58, 0.0 }
 0x105   : > { %v2743_v3 = vpack.c.bf16 %v1649_v63, %v1649_v63  ;;  %v2807_v4 = vpack.c.bf16 %v1713_v0, %v1713_v0  ;;  %v1519_v6 = vmul.f32 0.2, %v907_v58  ;;  %vm1455_vm12 = vcmp.ge.f32.partialorder %v1163_v59, 0.0  ;;  %v2945_v11 = vpop.f32.mrb[16].mxu0 }
 0x106   : > { %v1583_v7 = vmul.f32 0.2, %v1163_v59  ;;  %vm1396_vm13 = vcmp.ge.f32.partialorder %v928_v60, 0.0  ;;  %v1524_v8 = vmul.f32 0.2, %v928_v60  ;;  %vm1460_vm14 = vcmp.ge.f32.partialorder %v1184_v61, 0.0 }
 0x107   : > { %2290 = vst.msk [vmem:[%s3325_s25 + $0x2c] sm:$0xf] %vm2278_vm3, %v2743_v3  ;;  %2354 = vst.msk [vmem:[%s3325_s25 + $0x12c] sm:$0xf] %vm2278_vm3, %v2807_v4  ;;  %v1647_v9 = vsel %vm1391_vm11, %v907_v58, %v1519_v6  ;;  %v1588_v10 = vmul.f32 0.2, %v1184_v61  ;;  %v931_v27 = vadd.f32 %v2942_v52, %v3313_v5  ;;  %v1187_v31 = vadd.f32 %v3006_v53, %v3313_v5 }
 0x108   : > { %vm1394_vm15 = vcmp.ge.f32.partialorder %v920_v1, 0.0  ;;  %v3009_v12 = vpop.f32.mrb[16].mxu1  ;;  %v2741_v13 = vpack.c.bf16 %v1647_v9, %v1647_v9  ;;  %v1711_v14 = vsel %vm1455_vm12, %v1163_v59, %v1583_v7  ;;  %v1652_v15 = vsel %vm1396_vm13, %v928_v60, %v1524_v8  ;;  %v935_v17 = vpop.f32.mrb[17].mxu0 }
 0x109   : > { %v1522_v16 = vmul.f32 0.2, %v920_v1  ;;  %v1191_v18 = vpop.f32.mrb[17].mxu1  ;;  %v2805_v19 = vpack.c.bf16 %v1711_v14, %v1711_v14  ;;  %v2746_v20 = vpack.c.bf16 %v1652_v15, %v1652_v15  ;;  %v1716_v21 = vsel %vm1460_vm14, %v1184_v61, %v1588_v10  ;;  %v2946_v22 = vpop.f32.mrb[18].mxu0 }
 0x10a   : > { %vm1458_vm0 = vcmp.ge.f32.partialorder %v1176_v2, 0.0  ;;  %v3010_v23 = vpop.f32.mrb[18].mxu1  ;;  %2288 = vst.msk [vmem:[%s3325_s25 + $0x24] sm:$0xf] %vm2278_vm3, %v2741_v13  ;;  %v2810_v24 = vpack.c.bf16 %v1716_v21, %v1716_v21  ;;  %v1586_v26 = vmul.f32 0.2, %v1176_v2  ;;  %v923_v32 = vadd.f32 %v3313_v5, %v922_v57 }
 0x10b   : > { %v1650_v25 = vsel %vm1394_vm15, %v920_v1, %v1522_v16  ;;  %v938_v28 = vpop.f32.mrb[19].mxu0  ;;  %v3400_v29 = vpop.f32.mrb[19].mxu1  ;;  %2352 = vst.msk [vmem:[%s3325_s25 + $0x124] sm:$0xf] %vm2278_vm3, %v2805_v19  ;;  %2293 = vst.msk [vmem:[%s3325_s25 + $0x38] sm:$0xf] %vm2278_vm3, %v2746_v20  ;;  %v1179_v33 = vadd.f32 %v3313_v5, %v1178_v62  ;;  %v944_v36 = vadd.f32 %v2945_v11, %v3313_v5 }
 0x10c   : > { %v2744_v30 = vpack.c.bf16 %v1650_v25, %v1650_v25  ;;  %2357 = vst.msk [vmem:[%s3325_s25 + $0x138] sm:$0xf] %vm2278_vm3, %v2810_v24  ;;  %v1714_v34 = vsel %vm1458_vm0, %v1176_v2, %v1586_v26  ;;  %vm1397_vm1 = vcmp.ge.f32.partialorder %v931_v27, 0.0  ;;  %v1525_v35 = vmul.f32 0.2, %v931_v27 }
 0x10d   : > { %v2808_v37 = vpack.c.bf16 %v1714_v34, %v1714_v34  ;;  %vm1461_vm2 = vcmp.ge.f32.partialorder %v1187_v31, 0.0  ;;  %v1589_v38 = vmul.f32 0.2, %v1187_v31  ;;  %vm1395_vm4 = vcmp.ge.f32.partialorder %v923_v32, 0.0  ;;  %v2949_v42 = vpop.f32.mrb[20].mxu0 }
 0x10e   : > { %2291 = vst.msk [vmem:[%s3325_s25 + $0x30] sm:$0xf] %vm2278_vm3, %v2744_v30  ;;  %v1653_v39 = vsel %vm1397_vm1, %v931_v27, %v1525_v35  ;;  %v1523_v40 = vmul.f32 0.2, %v923_v32  ;;  %vm1459_vm5 = vcmp.ge.f32.partialorder %v1179_v33, 0.0  ;;  %vm1400_vm6 = vcmp.ge.f32.partialorder %v944_v36, 0.0 }
 0x10f   : > { %v1587_v41 = vmul.f32 0.2, %v1179_v33  ;;  %2355 = vst.msk [vmem:[%s3325_s25 + $0x130] sm:$0xf] %vm2278_vm3, %v2808_v37  ;;  %v2747_v43 = vpack.c.bf16 %v1653_v39, %v1653_v39  ;;  %v1717_v44 = vsel %vm1461_vm2, %v1187_v31, %v1589_v38  ;;  %v1528_v45 = vmul.f32 0.2, %v944_v36 }
 0x110   : > { %v3013_v46 = vpop.f32.mrb[20].mxu1  ;;  %v951_v47 = vpop.f32.mrb[21].mxu0  ;;  %v2811_v48 = vpack.c.bf16 %v1717_v44, %v1717_v44  ;;  %v1651_v49 = vsel %vm1395_vm4, %v923_v32, %v1523_v40  ;;  %v1200_v51 = vadd.f32 %v3009_v12, %v3313_v5  ;;  %v936_v57 = vadd.f32 %v3313_v5, %v935_v17 }
 0x111   : > { %v1715_v50 = vsel %vm1459_vm5, %v1179_v33, %v1587_v41  ;;  %v3418_v52 = vpop.f32.mrb[21].mxu1  ;;  %v3420_v53 = vpop.f32.mrb[22].mxu0  ;;  %2294 = vst.msk [vmem:[%s3325_s25 + $0x3c] sm:$0xf] %vm2278_vm3, %v2747_v43  ;;  %v2745_v54 = vpack.c.bf16 %v1651_v49, %v1651_v49  ;;  %v1656_v56 = vsel %vm1400_vm6, %v944_v36, %v1528_v45  ;;  %v1192_v62 = vadd.f32 %v3313_v5, %v1191_v18 }
 0x112   : > { %v2809_v55 = vpack.c.bf16 %v1715_v50, %v1715_v50  ;;  %v3425_v58 = vpop.f32.mrb[22].mxu1  ;;  %v3427_v59 = vpop.f32.mrb[23].mxu0  ;;  %2358 = vst.msk [vmem:[%s3325_s25 + $0x13c] sm:$0xf] %vm2278_vm3, %v2811_v48  ;;  %v2750_v60 = vpack.c.bf16 %v1656_v56, %v1656_v56  ;;  %vm1464_vm7 = vcmp.ge.f32.partialorder %v1200_v51, 0.0  ;;  %vm1398_vm8 = vcmp.ge.f32.partialorder %v936_v57, 0.0 }
 0x113   : > { %v1592_v61 = vmul.f32 0.2, %v1200_v51  ;;  %v3432_v63 = vpop.f32.mrb[23].mxu1  ;;  %2292 = vst.msk [vmem:[%s3325_s25 + $0x34] sm:$0xf] %vm2278_vm3, %v2745_v54  ;;  %v947_v1 = vadd.f32 %v2946_v22, %v3313_v5  ;;  %v1203_v2 = vadd.f32 %v3010_v23, %v3313_v5  ;;  %vm1462_vm9 = vcmp.ge.f32.partialorder %v1192_v62, 0.0 }
 0x114   : > { %2356 = vst.msk [vmem:[%s3325_s25 + $0x134] sm:$0xf] %vm2278_vm3, %v2809_v55  ;;  %v1526_v0 = vmul.f32 0.2, %v936_v57  ;;  %2297 = vst.msk [vmem:[%s3325_s25 + $0x48] sm:$0xf] %vm2278_vm3, %v2750_v60  ;;  %v939_v6 = vadd.f32 %v3313_v5, %v938_v28  ;;  %v1195_v21 = vadd.f32 %v3313_v5, %v3400_v29  ;;  %v960_v22 = vadd.f32 %v2949_v42, %v3313_v5 }
 0x115   : > { %v1720_v3 = vsel %vm1464_vm7, %v1200_v51, %v1592_v61  ;;  %v1590_v4 = vmul.f32 0.2, %v1192_v62  ;;  %vm1401_vm10 = vcmp.ge.f32.partialorder %v947_v1, 0.0  ;;  %v1529_v9 = vmul.f32 0.2, %v947_v1  ;;  %v3443_v13 = vpop.f32.mrb[24].mxu0 }
 0x116   : > { %v2814_v7 = vpack.c.bf16 %v1720_v3, %v1720_v3  ;;  %v1654_v8 = vsel %vm1398_vm8, %v936_v57, %v1526_v0  ;;  %vm1465_vm11 = vcmp.ge.f32.partialorder %v1203_v2, 0.0  ;;  %v1593_v12 = vmul.f32 0.2, %v1203_v2  ;;  %v3017_v17 = vpop.f32.mrb[24].mxu1  ;;  %v3447_v18 = vpop.f32.mrb[25].mxu0 }
 0x117   : > { %v2748_v10 = vpack.c.bf16 %v1654_v8, %v1654_v8  ;;  %v1718_v11 = vsel %vm1462_vm9, %v1192_v62, %v1590_v4  ;;  %v1657_v15 = vsel %vm1401_vm10, %v947_v1, %v1529_v9  ;;  %vm1399_vm12 = vcmp.ge.f32.partialorder %v939_v6, 0.0  ;;  %v3454_v23 = vpop.f32.mrb[25].mxu1  ;;  %v3456_v24 = vpop.f32.mrb[26].mxu0 }
 0x118   : > { %2361 = vst.msk [vmem:[%s3325_s25 + $0x148] sm:$0xf] %vm2278_vm3, %v2814_v7  ;;  %v2812_v14 = vpack.c.bf16 %v1718_v11, %v1718_v11  ;;  %v1527_v16 = vmul.f32 0.2, %v939_v6  ;;  %v2751_v19 = vpack.c.bf16 %v1657_v15, %v1657_v15  ;;  %v1721_v20 = vsel %vm1465_vm11, %v1203_v2, %v1593_v12  ;;  %v3462_v30 = vpop.f32.mrb[26].mxu1  ;;  %v3464_v31 = vpop.f32.mrb[27].mxu0 }
 0x119   : > { %2295 = vst.msk [vmem:[%s3325_s25 + $0x40] sm:$0xf] %vm2278_vm3, %v2748_v10  ;;  %v2815_v25 = vpack.c.bf16 %v1721_v20, %v1721_v20  ;;  %v1216_v27 = vadd.f32 %v3013_v46, %v3313_v5  ;;  %v952_v28 = vadd.f32 %v3313_v5, %v951_v47  ;;  %vm1463_vm13 = vcmp.ge.f32.partialorder %v1195_v21, 0.0  ;;  %v3468_v33 = vpop.f32.mrb[27].mxu1 }
 0x11a   : > { %2359 = vst.msk [vmem:[%s3325_s25 + $0x140] sm:$0xf] %vm2278_vm3, %v2812_v14  ;;  %v1655_v26 = vsel %vm1399_vm12, %v939_v6, %v1527_v16  ;;  %2298 = vst.msk [vmem:[%s3325_s25 + $0x4c] sm:$0xf] %vm2278_vm3, %v2751_v19  ;;  %v1591_v32 = vmul.f32 0.2, %v1195_v21  ;;  %v1208_v38 = vadd.f32 %v3313_v5, %v3418_v52  ;;  %v963_v39 = vadd.f32 %v3420_v53, %v3313_v5 }
 0x11b   : > { %v2749_v29 = vpack.c.bf16 %v1655_v26, %v1655_v26  ;;  %vm1404_vm14 = vcmp.ge.f32.partialorder %v960_v22, 0.0  ;;  %2362 = vst.msk [vmem:[%s3325_s25 + $0x14c] sm:$0xf] %vm2278_vm3, %v2815_v25  ;;  %v1532_v34 = vmul.f32 0.2, %v960_v22  ;;  %vm1468_vm15 = vcmp.ge.f32.partialorder %v1216_v27, 0.0 }
 0x11c   : > { %v1596_v35 = vmul.f32 0.2, %v1216_v27  ;;  %vm1402_vm0 = vcmp.ge.f32.partialorder %v952_v28, 0.0  ;;  %v1719_v36 = vsel %vm1463_vm13, %v1195_v21, %v1591_v32  ;;  %v1530_v37 = vmul.f32 0.2, %v952_v28 }
 0x11d   : > { %2296 = vst.msk [vmem:[%s3325_s25 + $0x44] sm:$0xf] %vm2278_vm3, %v2749_v29  ;;  %v2813_v40 = vpack.c.bf16 %v1719_v36, %v1719_v36  ;;  %v1660_v41 = vsel %vm1404_vm14, %v960_v22, %v1532_v34  ;;  %v1219_v43 = vadd.f32 %v3425_v58, %v3313_v5  ;;  %vm1466_vm1 = vcmp.ge.f32.partialorder %v1208_v38, 0.0  ;;  %v3480_v47 = vpop.f32.mrb[28].mxu0 }
 0x11e   : > { %v1724_v42 = vsel %vm1468_vm15, %v1216_v27, %v1596_v35  ;;  %v2754_v44 = vpack.c.bf16 %v1660_v41, %v1660_v41  ;;  %v1658_v46 = vsel %vm1402_vm0, %v952_v28, %v1530_v37  ;;  %v1594_v49 = vmul.f32 0.2, %v1208_v38  ;;  %v3484_v51 = vpop.f32.mrb[28].mxu1  ;;  %v3494_v55 = vpop.f32.mrb[29].mxu0 }
 0x11f   : > { %v2818_v45 = vpack.c.bf16 %v1724_v42, %v1724_v42  ;;  %2360 = vst.msk [vmem:[%s3325_s25 + $0x144] sm:$0xf] %vm2278_vm3, %v2813_v40  ;;  %v2752_v48 = vpack.c.bf16 %v1658_v46, %v1658_v46  ;;  %vm1405_vm2 = vcmp.ge.f32.partialorder %v963_v39, 0.0  ;;  %v1533_v50 = vmul.f32 0.2, %v963_v39  ;;  %v3496_v56 = vpop.f32.mrb[29].mxu1 }
 0x120   : > { %2301 = vst.msk [vmem:[%s3325_s25 + $0x58] sm:$0xf] %vm2278_vm3, %v2754_v44  ;;  %vm1469_vm4 = vcmp.ge.f32.partialorder %v1219_v43, 0.0  ;;  %v1597_v52 = vmul.f32 0.2, %v1219_v43  ;;  %v955_v53 = vadd.f32 %v3313_v5, %v3427_v59  ;;  %v1211_v54 = vadd.f32 %v3313_v5, %v3432_v63  ;;  %v3504_v59 = vpop.f32.mrb[30].mxu0 }
 0x121   : > { %2365 = vst.msk [vmem:[%s3325_s25 + $0x158] sm:$0xf] %vm2278_vm3, %v2818_v45  ;;  %2299 = vst.msk [vmem:[%s3325_s25 + $0x50] sm:$0xf] %vm2278_vm3, %v2752_v48  ;;  %v1722_v57 = vsel %vm1466_vm1, %v1208_v38, %v1594_v49  ;;  %v1661_v58 = vsel %vm1405_vm2, %v963_v39, %v1533_v50  ;;  %v976_v60 = vadd.f32 %v3443_v13, %v3313_v5  ;;  %v3506_v62 = vpop.f32.mrb[30].mxu1  ;;  %v3508_v2 = vpop.f32.mrb[31].mxu0 }
 0x122   : > { %v1232_v61 = vadd.f32 %v3017_v17, %v3313_v5  ;;  %v2816_v63 = vpack.c.bf16 %v1722_v57, %v1722_v57  ;;  %v2755_v0 = vpack.c.bf16 %v1661_v58, %v1661_v58  ;;  %v1725_v1 = vsel %vm1469_vm4, %v1219_v43, %v1597_v52  ;;  %v3510_v3 = vpop.f32.mrb[31].mxu1 }
 0x123   : > { %vm1403_vm5 = vcmp.ge.f32.partialorder %v955_v53, 0.0  ;;  %v2819_v4 = vpack.c.bf16 %v1725_v1, %v1725_v1  ;;  %v1531_v6 = vmul.f32 0.2, %v955_v53  ;;  %vm1467_vm6 = vcmp.ge.f32.partialorder %v1211_v54, 0.0 }
 0x124   : > { %v1595_v7 = vmul.f32 0.2, %v1211_v54  ;;  %2363 = vst.msk [vmem:[%s3325_s25 + $0x150] sm:$0xf] %vm2278_vm3, %v2816_v63  ;;  %2302 = vst.msk [vmem:[%s3325_s25 + $0x5c] sm:$0xf] %vm2278_vm3, %v2755_v0  ;;  %v968_v12 = vadd.f32 %v3313_v5, %v3447_v18  ;;  %v1224_v13 = vadd.f32 %v3313_v5, %v3454_v23  ;;  %v979_v23 = vadd.f32 %v3456_v24, %v3313_v5 }
 0x125   : > { %vm1408_vm7 = vcmp.ge.f32.partialorder %v976_v60, 0.0  ;;  %v1536_v8 = vmul.f32 0.2, %v976_v60  ;;  %vm1472_vm8 = vcmp.ge.f32.partialorder %v1232_v61, 0.0  ;;  %v1600_v9 = vmul.f32 0.2, %v1232_v61 }
 0x126   : > { %2366 = vst.msk [vmem:[%s3325_s25 + $0x15c] sm:$0xf] %vm2278_vm3, %v2819_v4  ;;  %v1659_v10 = vsel %vm1403_vm5, %v955_v53, %v1531_v6  ;;  %v1723_v11 = vsel %vm1467_vm6, %v1211_v54, %v1595_v7  ;;  %v3522_v19 = vpop.f32.mrb[32].mxu0  ;;  %vm1406_vm9 = vcmp.ge.f32.partialorder %v968_v12, 0.0  ;;  %v1534_v22 = vmul.f32 0.2, %v968_v12 }
 0x127   : > { %v2753_v14 = vpack.c.bf16 %v1659_v10, %v1659_v10  ;;  %v2817_v15 = vpack.c.bf16 %v1723_v11, %v1723_v11  ;;  %v1664_v16 = vsel %vm1408_vm7, %v976_v60, %v1536_v8  ;;  %v1728_v17 = vsel %vm1472_vm8, %v1232_v61, %v1600_v9  ;;  %v3524_v25 = vpop.f32.mrb[32].mxu1  ;;  %v3526_v26 = vpop.f32.mrb[33].mxu0 }
 0x128   : > { %v2758_v20 = vpack.c.bf16 %v1664_v16, %v1664_v16  ;;  %v2822_v21 = vpack.c.bf16 %v1728_v17, %v1728_v17  ;;  %vm1470_vm10 = vcmp.ge.f32.partialorder %v1224_v13, 0.0  ;;  %v1598_v18 = vmul.f32 0.2, %v1224_v13  ;;  %v3536_v28 = vpop.f32.mrb[33].mxu1  ;;  %v3538_v29 = vpop.f32.mrb[34].mxu0 }
 0x129   : > { %2300 = vst.msk [vmem:[%s3325_s25 + $0x54] sm:$0xf] %vm2278_vm3, %v2753_v14  ;;  %2364 = vst.msk [vmem:[%s3325_s25 + $0x154] sm:$0xf] %vm2278_vm3, %v2817_v15  ;;  %v1235_v27 = vadd.f32 %v3462_v30, %v3313_v5  ;;  %v1662_v32 = vsel %vm1406_vm9, %v968_v12, %v1534_v22  ;;  %v971_v34 = vadd.f32 %v3313_v5, %v3464_v31  ;;  %v3550_v30 = vpop.f32.mrb[34].mxu1  ;;  %v3552_v36 = vpop.f32.mrb[35].mxu0 }
 0x12a   : > { %2305 = vst.msk [vmem:[%s3325_s25 + $0x68] sm:$0xf] %vm2278_vm3, %v2758_v20  ;;  %2369 = vst.msk [vmem:[%s3325_s25 + $0x168] sm:$0xf] %vm2278_vm3, %v2822_v21  ;;  %v1227_v35 = vadd.f32 %v3313_v5, %v3468_v33  ;;  %v992_v24 = vadd.f32 %v3480_v47, %v3313_v5  ;;  %v2756_v37 = vpack.c.bf16 %v1662_v32, %v1662_v32  ;;  %vm1409_vm11 = vcmp.ge.f32.partialorder %v979_v23, 0.0  ;;  %v3554_v40 = vpop.f32.mrb[35].mxu1 }
 0x12b   : > { %v1726_v38 = vsel %vm1470_vm10, %v1224_v13, %v1598_v18  ;;  %v1537_v39 = vmul.f32 0.2, %v979_v23  ;;  %vm1473_vm12 = vcmp.ge.f32.partialorder %v1235_v27, 0.0  ;;  %v1601_v31 = vmul.f32 0.2, %v1235_v27 }
 0x12c   : > { %v2820_v41 = vpack.c.bf16 %v1726_v38, %v1726_v38  ;;  %vm1407_vm13 = vcmp.ge.f32.partialorder %v971_v34, 0.0  ;;  %2303 = vst.msk [vmem:[%s3325_s25 + $0x60] sm:$0xf] %vm2278_vm3, %v2756_v37  ;;  %v1535_v42 = vmul.f32 0.2, %v971_v34  ;;  %vm1471_vm14 = vcmp.ge.f32.partialorder %v1227_v35, 0.0 }
 0x12d   : > { %v1665_v33 = vsel %vm1409_vm11, %v979_v23, %v1537_v39  ;;  %v1599_v43 = vmul.f32 0.2, %v1227_v35  ;;  %v1729_v45 = vsel %vm1473_vm12, %v1235_v27, %v1601_v31  ;;  %vm1412_vm15 = vcmp.ge.f32.partialorder %v992_v24, 0.0  ;;  %v3562_v52 = vpop.f32.mrb[36].mxu0 }
 0x12e   : > { %2367 = vst.msk [vmem:[%s3325_s25 + $0x160] sm:$0xf] %vm2278_vm3, %v2820_v41  ;;  %v2759_v44 = vpack.c.bf16 %v1665_v33, %v1665_v33  ;;  %v1540_v46 = vmul.f32 0.2, %v992_v24  ;;  %v2823_v47 = vpack.c.bf16 %v1729_v45, %v1729_v45  ;;  %v1663_v48 = vsel %vm1407_vm13, %v971_v34, %v1535_v42  ;;  %v3568_v60 = vpop.f32.mrb[36].mxu1  ;;  %v3570_v61 = vpop.f32.mrb[37].mxu0 }
 0x12f   : > { %v1727_v49 = vsel %vm1471_vm14, %v1227_v35, %v1599_v43  ;;  %v1248_v50 = vadd.f32 %v3484_v51, %v3313_v5  ;;  %v2757_v53 = vpack.c.bf16 %v1663_v48, %v1663_v48  ;;  %v984_v58 = vadd.f32 %v3313_v5, %v3494_v55  ;;  %v3576_v1 = vpop.f32.mrb[37].mxu1  ;;  %v3578_v4 = vpop.f32.mrb[38].mxu0 }
 0x130   : > { %2306 = vst.msk [vmem:[%s3325_s25 + $0x6c] sm:$0xf] %vm2278_vm3, %v2759_v44  ;;  %v2821_v54 = vpack.c.bf16 %v1727_v49, %v1727_v49  ;;  %v1668_v57 = vsel %vm1412_vm15, %v992_v24, %v1540_v46  ;;  %2370 = vst.msk [vmem:[%s3325_s25 + $0x16c] sm:$0xf] %vm2278_vm3, %v2823_v47  ;;  %v1240_v0 = vadd.f32 %v3313_v5, %v3496_v56  ;;  %v3588_v8 = vpop.f32.mrb[38].mxu1  ;;  %v3590_v56 = vpop.f32.mrb[39].mxu0 }
 0x131   : > { %v2762_v51 = vpack.c.bf16 %v1668_v57, %v1668_v57  ;;  %vm1476_vm0 = vcmp.ge.f32.partialorder %v1248_v50, 0.0  ;;  %v1604_v63 = vmul.f32 0.2, %v1248_v50  ;;  %2304 = vst.msk [vmem:[%s3325_s25 + $0x64] sm:$0xf] %vm2278_vm3, %v2757_v53  ;;  %vm1410_vm1 = vcmp.ge.f32.partialorder %v984_v58, 0.0 }
 0x132   : > { %2368 = vst.msk [vmem:[%s3325_s25 + $0x164] sm:$0xf] %vm2278_vm3, %v2821_v54  ;;  %v1538_v55 = vmul.f32 0.2, %v984_v58  ;;  %v995_v6 = vadd.f32 %v3504_v59, %v3313_v5  ;;  %v1251_v7 = vadd.f32 %v3506_v62, %v3313_v5  ;;  %vm1474_vm2 = vcmp.ge.f32.partialorder %v1240_v0, 0.0  ;;  %v3596_v12 = vpop.f32.mrb[39].mxu1 }
 0x133   : > { %2309 = vst.msk [vmem:[%s3325_s25 + $0x78] sm:$0xf] %vm2278_vm3, %v2762_v51  ;;  %v1732_v9 = vsel %vm1476_vm0, %v1248_v50, %v1604_v63  ;;  %v1602_v10 = vmul.f32 0.2, %v1240_v0  ;;  %v987_v11 = vadd.f32 %v3313_v5, %v3508_v2  ;;  %v1243_v18 = vadd.f32 %v3313_v5, %v3510_v3 }
 0x134   : > { %v2826_v59 = vpack.c.bf16 %v1732_v9, %v1732_v9  ;;  %v1666_v13 = vsel %vm1410_vm1, %v984_v58, %v1538_v55  ;;  %vm1413_vm4 = vcmp.ge.f32.partialorder %v995_v6, 0.0  ;;  %v1541_v62 = vmul.f32 0.2, %v995_v6 }
 0x135   : > { %v2760_v14 = vpack.c.bf16 %v1666_v13, %v1666_v13  ;;  %v1730_v15 = vsel %vm1474_vm2, %v1240_v0, %v1602_v10  ;;  %vm1477_vm5 = vcmp.ge.f32.partialorder %v1251_v7, 0.0  ;;  %v1605_v16 = vmul.f32 0.2, %v1251_v7  ;;  %v3606_v27 = vpop.f32.mrb[40].mxu0 }
 0x136   : > { %2373 = vst.msk [vmem:[%s3325_s25 + $0x178] sm:$0xf] %vm2278_vm3, %v2826_v59  ;;  %v2824_v17 = vpack.c.bf16 %v1730_v15, %v1730_v15  ;;  %v1669_v20 = vsel %vm1413_vm4, %v995_v6, %v1541_v62  ;;  %vm1411_vm6 = vcmp.ge.f32.partialorder %v987_v11, 0.0  ;;  %v1539_v21 = vmul.f32 0.2, %v987_v11  ;;  %v3614_v37 = vpop.f32.mrb[40].mxu1 }
 0x137   : > { %2307 = vst.msk [vmem:[%s3325_s25 + $0x70] sm:$0xf] %vm2278_vm3, %v2760_v14  ;;  %v2763_v2 = vpack.c.bf16 %v1669_v20, %v1669_v20  ;;  %v1733_v22 = vsel %vm1477_vm5, %v1251_v7, %v1605_v16  ;;  %v1008_v23 = vadd.f32 %v3522_v19, %v3313_v5  ;;  %v1264_v35 = vadd.f32 %v3524_v25, %v3313_v5  ;;  %v3616_v3 = vpop.f32.mrb[41].mxu0  ;;  %v3620_v39 = vpop.f32.mrb[41].mxu1 }
 0x138   : > { %2371 = vst.msk [vmem:[%s3325_s25 + $0x170] sm:$0xf] %vm2278_vm3, %v2824_v17  ;;  %v2827_v32 = vpack.c.bf16 %v1733_v22, %v1733_v22  ;;  %v1667_v34 = vsel %vm1411_vm6, %v987_v11, %v1539_v21  ;;  %v1000_v24 = vadd.f32 %v3313_v5, %v3526_v26  ;;  %vm1475_vm7 = vcmp.ge.f32.partialorder %v1243_v18, 0.0  ;;  %v3622_v41 = vpop.f32.mrb[42].mxu0  ;;  %v3632_v44 = vpop.f32.mrb[42].mxu1 }
 0x139   : > { %2310 = vst.msk [vmem:[%s3325_s25 + $0x7c] sm:$0xf] %vm2278_vm3, %v2763_v2  ;;  %v2761_v19 = vpack.c.bf16 %v1667_v34, %v1667_v34  ;;  %v1603_v38 = vmul.f32 0.2, %v1243_v18  ;;  %vm1416_vm8 = vcmp.ge.f32.partialorder %v1008_v23, 0.0  ;;  %vm1480_vm9 = vcmp.ge.f32.partialorder %v1264_v35, 0.0 }
 0x13a   : > { %2374 = vst.msk [vmem:[%s3325_s25 + $0x17c] sm:$0xf] %vm2278_vm3, %v2827_v32  ;;  %v1544_v25 = vmul.f32 0.2, %v1008_v23  ;;  %v1608_v31 = vmul.f32 0.2, %v1264_v35  ;;  %v1256_v42 = vadd.f32 %v3313_v5, %v3536_v28  ;;  %v1011_v43 = vadd.f32 %v3538_v29, %v3313_v5 }
 0x13b   : > { %vm1414_vm10 = vcmp.ge.f32.partialorder %v1000_v24, 0.0  ;;  %2308 = vst.msk [vmem:[%s3325_s25 + $0x74] sm:$0xf] %vm2278_vm3, %v2761_v19  ;;  %v1731_v26 = vsel %vm1475_vm7, %v1243_v18, %v1603_v38  ;;  %v1542_v33 = vmul.f32 0.2, %v1000_v24  ;;  %v3634_v45 = vpop.f32.mrb[43].mxu0  ;;  %v1267_v49 = vadd.f32 %v3550_v30, %v3313_v5 }
 0x13c   : > { %v2825_v46 = vpack.c.bf16 %v1731_v26, %v1731_v26  ;;  %v1672_v47 = vsel %vm1416_vm8, %v1008_v23, %v1544_v25  ;;  %v1736_v48 = vsel %vm1480_vm9, %v1264_v35, %v1608_v31  ;;  %v3639_v50 = vpop.f32.mrb[43].mxu1  ;;  %vm1478_vm11 = vcmp.ge.f32.partialorder %v1256_v42, 0.0  ;;  %v3678_v21 = vld [vmem:[%s3979_s2] ss:$0 sm:$0xff] }
 0x13d   : > { %v2766_v53 = vpack.c.bf16 %v1672_v47, %v1672_v47  ;;  %v2830_v28 = vpack.c.bf16 %v1736_v48, %v1736_v48  ;;  %v1670_v54 = vsel %vm1414_vm10, %v1000_v24, %v1542_v33  ;;  %v1606_v57 = vmul.f32 0.2, %v1256_v42  ;;  %v3651_v0 = vpop.f32.mrb[44].mxu0 }
 0x13e   : > { %2372 = vst.msk [vmem:[%s3325_s25 + $0x174] sm:$0xf] %vm2278_vm3, %v2825_v46  ;;  %v2764_v29 = vpack.c.bf16 %v1670_v54, %v1670_v54  ;;  %vm1417_vm12 = vcmp.ge.f32.partialorder %v1011_v43, 0.0  ;;  %v1545_v58 = vmul.f32 0.2, %v1011_v43  ;;  %vm1481_vm13 = vcmp.ge.f32.partialorder %v1267_v49, 0.0 }
 0x13f   : > { %2313 = vst.msk [vmem:[%s3325_s25 + $0x88] sm:$0xf] %vm2278_vm3, %v2766_v53  ;;  %2377 = vst.msk [vmem:[%s3325_s25 + $0x188] sm:$0xf] %vm2278_vm3, %v2830_v28  ;;  %v1609_v51 = vmul.f32 0.2, %v1267_v49  ;;  %v1003_v30 = vadd.f32 %v3313_v5, %v3552_v36  ;;  %v1259_v63 = vadd.f32 %v3313_v5, %v3554_v40  ;;  %v1734_v55 = vsel %vm1478_vm11, %v1256_v42, %v1606_v57 }
 0x140   : > { %2311 = vst.msk [vmem:[%s3325_s25 + $0x80] sm:$0xf] %vm2278_vm3, %v2764_v29  ;;  %v1673_v6 = vsel %vm1417_vm12, %v1011_v43, %v1545_v58  ;;  %v1024_v7 = vadd.f32 %v3562_v52, %v3313_v5  ;;  %v1280_v9 = vadd.f32 %v3568_v60, %v3313_v5  ;;  %v3659_v10 = vpop.f32.mrb[44].mxu1  ;;  %v3661_v36 = vpop.f32.mrb[45].mxu0  ;;  %v2828_v11 = vpack.c.bf16 %v1734_v55, %v1734_v55 }
 0x141   : > { %v2767_v40 = vpack.c.bf16 %v1673_v6, %v1673_v6  ;;  %v1737_v59 = vsel %vm1481_vm13, %v1267_v49, %v1609_v51  ;;  %vm1415_vm14 = vcmp.ge.f32.partialorder %v1003_v30, 0.0  ;;  %v3663_v13 = vpop.f32.mrb[45].mxu1  ;;  %v3665_v62 = vpop.f32.mrb[46].mxu0  ;;  %v1543_v15 = vmul.f32 0.2, %v1003_v30 }
 0x142   : > { %v2831_v14 = vpack.c.bf16 %v1737_v59, %v1737_v59  ;;  %vm1479_vm15 = vcmp.ge.f32.partialorder %v1259_v63, 0.0  ;;  %v1607_v52 = vmul.f32 0.2, %v1259_v63  ;;  %v3667_v16 = vpop.f32.mrb[46].mxu1  ;;  %2375 = vst.msk [vmem:[%s3325_s25 + $0x180] sm:$0xf] %vm2278_vm3, %v2828_v11  ;;  %v1016_v2 = vadd.f32 %v3678_v21, %v3570_v61 }
 0x143   : > { %2314 = vst.msk [vmem:[%s3325_s25 + $0x8c] sm:$0xf] %vm2278_vm3, %v2767_v40  ;;  %vm1420_vm0 = vcmp.ge.f32.partialorder %v1024_v7, 0.0  ;;  %v1548_v5 = vmul.f32 0.2, %v1024_v7  ;;  %vm1484_vm1 = vcmp.ge.f32.partialorder %v1280_v9, 0.0  ;;  %v1671_v17 = vsel %vm1415_vm14, %v1003_v30, %v1543_v15 }
 0x144   : > { %v1612_v60 = vmul.f32 0.2, %v1280_v9  ;;  %2378 = vst.msk [vmem:[%s3325_s25 + $0x18c] sm:$0xf] %vm2278_vm3, %v2831_v14  ;;  %v1735_v20 = vsel %vm1479_vm15, %v1259_v63, %v1607_v52  ;;  %v1272_v22 = vadd.f32 %v3678_v21, %v3576_v1  ;;  %v3684_v18 = vpop.f32.mrb[47].mxu0  ;;  %v3686_v23 = vpop.f32.mrb[47].mxu1  ;;  %v2765_v32 = vpack.c.bf16 %v1671_v17, %v1671_v17 }
 0x145   : > { %v2829_v34 = vpack.c.bf16 %v1735_v20, %v1735_v20  ;;  %v1676_v35 = vsel %vm1420_vm0, %v1024_v7, %v1548_v5  ;;  %vm1418_vm2 = vcmp.ge.f32.partialorder %v1016_v2, 0.0  ;;  %v1546_v25 = vmul.f32 0.2, %v1016_v2  ;;  %v3696_v26 = vpop.f32.mrb[48].mxu0 }
 0x146   : > { %v1740_v24 = vsel %vm1484_vm1, %v1280_v9, %v1612_v60  ;;  %v2770_v19 = vpack.c.bf16 %v1676_v35, %v1676_v35  ;;  %2312 = vst.msk [vmem:[%s3325_s25 + $0x84] sm:$0xf] %vm2278_vm3, %v2765_v32  ;;  %vm1482_vm4 = vcmp.ge.f32.partialorder %v1272_v22, 0.0  ;;  %v1610_v61 = vmul.f32 0.2, %v1272_v22  ;;  %v3708_v46 = vpop.f32.mrb[48].mxu1 }
 0x147   : > { %v2834_v38 = vpack.c.bf16 %v1740_v24, %v1740_v24  ;;  %2376 = vst.msk [vmem:[%s3325_s25 + $0x184] sm:$0xf] %vm2278_vm3, %v2829_v34  ;;  %v1027_v1 = vadd.f32 %v3678_v21, %v3578_v4  ;;  %v1283_v31 = vadd.f32 %v3678_v21, %v3588_v8  ;;  %v1674_v33 = vsel %vm1418_vm2, %v1016_v2, %v1546_v25  ;;  %v3710_v8 = vpop.f32.mrb[49].mxu0  ;;  %v3712_v53 = vpop.f32.mrb[49].mxu1 }
 0x148   : > { %2317 = vst.msk [vmem:[%s3325_s25 + $0x98] sm:$0xf] %vm2278_vm3, %v2770_v19  ;;  %v1019_v42 = vadd.f32 %v3678_v21, %v3590_v56  ;;  %v1275_v43 = vadd.f32 %v3678_v21, %v3596_v12  ;;  %v1040_v4 = vadd.f32 %v3678_v21, %v3606_v27  ;;  %v2768_v47 = vpack.c.bf16 %v1674_v33, %v1674_v33  ;;  %v3714_v28 = vpop.f32.mrb[50].mxu0  ;;  %v3716_v54 = vpop.f32.mrb[50].mxu1 }
 0x149   : > { %2381 = vst.msk [vmem:[%s3325_s25 + $0x198] sm:$0xf] %vm2278_vm3, %v2834_v38  ;;  %v1738_v48 = vsel %vm1482_vm4, %v1272_v22, %v1610_v61  ;;  %vm1421_vm5 = vcmp.ge.f32.partialorder %v1027_v1, 0.0  ;;  %v1549_v49 = vmul.f32 0.2, %v1027_v1  ;;  %vm1485_vm6 = vcmp.ge.f32.partialorder %v1283_v31, 0.0 }
 0x14a   : > { %v2832_v56 = vpack.c.bf16 %v1738_v48, %v1738_v48  ;;  %v1613_v12 = vmul.f32 0.2, %v1283_v31  ;;  %vm1419_vm7 = vcmp.ge.f32.partialorder %v1019_v42, 0.0  ;;  %v3718_v27 = vpop.f32.mrb[51].mxu0  ;;  %2315 = vst.msk [vmem:[%s3325_s25 + $0x90] sm:$0xf] %vm2278_vm3, %v2768_v47  ;;  %v1296_v11 = vadd.f32 %v3678_v21, %v3614_v37 }
 0x14b   : > { %v1677_v29 = vsel %vm1421_vm5, %v1027_v1, %v1549_v49  ;;  %v1547_v57 = vmul.f32 0.2, %v1019_v42  ;;  %vm1483_vm8 = vcmp.ge.f32.partialorder %v1275_v43, 0.0  ;;  %v1611_v58 = vmul.f32 0.2, %v1275_v43  ;;  %v3722_v51 = vpop.f32.mrb[51].mxu1 }
 0x14c   : > { %2379 = vst.msk [vmem:[%s3325_s25 + $0x190] sm:$0xf] %vm2278_vm3, %v2832_v56  ;;  %v2771_v30 = vpack.c.bf16 %v1677_v29, %v1677_v29  ;;  %v1741_v63 = vsel %vm1485_vm6, %v1283_v31, %v1613_v12  ;;  %vm1424_vm9 = vcmp.ge.f32.partialorder %v1040_v4, 0.0  ;;  %v1552_v55 = vmul.f32 0.2, %v1040_v4 }
 0x14d   : > { %v2835_v6 = vpack.c.bf16 %v1741_v63, %v1741_v63  ;;  %v1675_v7 = vsel %vm1419_vm7, %v1019_v42, %v1547_v57  ;;  %v1739_v9 = vsel %vm1483_vm8, %v1275_v43, %v1611_v58  ;;  %v1032_v15 = vadd.f32 %v3678_v21, %v3616_v3  ;;  %v3736_v17 = vpop.f32.mrb[52].mxu0 }
 0x14e   : > { %2318 = vst.msk [vmem:[%s3325_s25 + $0x9c] sm:$0xf] %vm2278_vm3, %v2771_v30  ;;  %v2769_v40 = vpack.c.bf16 %v1675_v7, %v1675_v7  ;;  %v2833_v59 = vpack.c.bf16 %v1739_v9, %v1739_v9  ;;  %v1680_v14 = vsel %vm1424_vm9, %v1040_v4, %v1552_v55  ;;  %vm1488_vm10 = vcmp.ge.f32.partialorder %v1296_v11, 0.0  ;;  %v3746_v2 = vpop.f32.mrb[52].mxu1  ;;  %v3748_v22 = vpop.f32.mrb[53].mxu0 }
 0x14f   : > { %2382 = vst.msk [vmem:[%s3325_s25 + $0x19c] sm:$0xf] %vm2278_vm3, %v2835_v6  ;;  %v2774_v52 = vpack.c.bf16 %v1680_v14, %v1680_v14  ;;  %v1616_v5 = vmul.f32 0.2, %v1296_v11  ;;  %v1288_v60 = vadd.f32 %v3678_v21, %v3620_v39  ;;  %vm1422_vm11 = vcmp.ge.f32.partialorder %v1032_v15, 0.0  ;;  %v3754_v35 = vpop.f32.mrb[53].mxu1 }
 0x150   : > { %2316 = vst.msk [vmem:[%s3325_s25 + $0x94] sm:$0xf] %vm2278_vm3, %v2769_v40  ;;  %2380 = vst.msk [vmem:[%s3325_s25 + $0x194] sm:$0xf] %vm2278_vm3, %v2833_v59  ;;  %v1550_v37 = vmul.f32 0.2, %v1032_v15  ;;  %v1043_v20 = vadd.f32 %v3678_v21, %v3622_v41  ;;  %v1299_v3 = vadd.f32 %v3678_v21, %v3632_v44  ;;  %v1035_v34 = vadd.f32 %v3678_v21, %v3634_v45 }
 0x151   : > { %2321 = vst.msk [vmem:[%s3325_s25 + $0xa8] sm:$0xf] %vm2278_vm3, %v2774_v52  ;;  %v1744_v39 = vsel %vm1488_vm10, %v1296_v11, %v1616_v5  ;;  %vm1486_vm12 = vcmp.ge.f32.partialorder %v1288_v60, 0.0  ;;  %v1614_v32 = vmul.f32 0.2, %v1288_v60  ;;  %v3756_v24 = vpop.f32.mrb[54].mxu0  ;;  %v1291_v48 = vadd.f32 %v3678_v21, %v3639_v50 }
 0x152   : > { %v2838_v41 = vpack.c.bf16 %v1744_v39, %v1744_v39  ;;  %v1678_v44 = vsel %vm1422_vm11, %v1032_v15, %v1550_v37  ;;  %vm1425_vm13 = vcmp.ge.f32.partialorder %v1043_v20, 0.0  ;;  %v1553_v19 = vmul.f32 0.2, %v1043_v20  ;;  %v3758_v38 = vpop.f32.mrb[54].mxu1  ;;  %v3760_v25 = vpop.f32.mrb[55].mxu0 }
 0x153   : > { %v2772_v61 = vpack.c.bf16 %v1678_v44, %v1678_v44  ;;  %v1742_v1 = vsel %vm1486_vm12, %v1288_v60, %v1614_v32  ;;  %vm1489_vm14 = vcmp.ge.f32.partialorder %v1299_v3, 0.0  ;;  %v1617_v31 = vmul.f32 0.2, %v1299_v3  ;;  %v3762_v33 = vpop.f32.mrb[55].mxu1 }
 0x154   : > { %2385 = vst.msk [vmem:[%s3325_s25 + $0x1a8] sm:$0xf] %vm2278_vm3, %v2838_v41  ;;  %v2836_v45 = vpack.c.bf16 %v1742_v1, %v1742_v1  ;;  %v1681_v42 = vsel %vm1425_vm13, %v1043_v20, %v1553_v19  ;;  %vm1423_vm15 = vcmp.ge.f32.partialorder %v1035_v34, 0.0  ;;  %v1551_v43 = vmul.f32 0.2, %v1035_v34 }
 0x155   : > { %2319 = vst.msk [vmem:[%s3325_s25 + $0xa0] sm:$0xf] %vm2278_vm3, %v2772_v61  ;;  %v2775_v4 = vpack.c.bf16 %v1681_v42, %v1681_v42  ;;  %v1745_v47 = vsel %vm1489_vm14, %v1299_v3, %v1617_v31  ;;  %v1056_v49 = vadd.f32 %v3678_v21, %v3651_v0  ;;  %v1312_v29 = vadd.f32 %v3678_v21, %v3659_v10  ;;  %v3780_v50 = vpop.f32.mrb[56].mxu0 }
 0x156   : > { %2383 = vst.msk [vmem:[%s3325_s25 + $0x1a0] sm:$0xf] %vm2278_vm3, %v2836_v45  ;;  %v2839_v56 = vpack.c.bf16 %v1745_v47, %v1745_v47  ;;  %v1679_v12 = vsel %vm1423_vm15, %v1035_v34, %v1551_v43  ;;  %v1048_v57 = vadd.f32 %v3678_v21, %v3661_v36  ;;  %vm1487_vm0 = vcmp.ge.f32.partialorder %v1291_v48, 0.0  ;;  %v3790_v7 = vpop.f32.mrb[56].mxu1  ;;  %v3792_v9 = vpop.f32.mrb[57].mxu0 }
 0x157   : > { %2322 = vst.msk [vmem:[%s3325_s25 + $0xac] sm:$0xf] %vm2278_vm3, %v2775_v4  ;;  %v2773_v58 = vpack.c.bf16 %v1679_v12, %v1679_v12  ;;  %v1615_v30 = vmul.f32 0.2, %v1291_v48  ;;  %vm1428_vm1 = vcmp.ge.f32.partialorder %v1056_v49, 0.0  ;;  %vm1492_vm2 = vcmp.ge.f32.partialorder %v1312_v29, 0.0 }
 0x158   : > { %2386 = vst.msk [vmem:[%s3325_s25 + $0x1ac] sm:$0xf] %vm2278_vm3, %v2839_v56  ;;  %v1556_v0 = vmul.f32 0.2, %v1056_v49  ;;  %v1620_v63 = vmul.f32 0.2, %v1312_v29  ;;  %v1304_v36 = vadd.f32 %v3678_v21, %v3663_v13  ;;  %v1059_v6 = vadd.f32 %v3678_v21, %v3665_v62 }
 0x159   : > { %vm1426_vm4 = vcmp.ge.f32.partialorder %v1048_v57, 0.0  ;;  %2320 = vst.msk [vmem:[%s3325_s25 + $0xa4] sm:$0xf] %vm2278_vm3, %v2773_v58  ;;  %v1743_v10 = vsel %vm1487_vm0, %v1291_v48, %v1615_v30  ;;  %v1554_v55 = vmul.f32 0.2, %v1048_v57  ;;  %v1315_v14 = vadd.f32 %v3678_v21, %v3667_v16  ;;  %v3796_v15 = vpop.f32.mrb[57].mxu1 }
 0x15a   : > { %v2837_v11 = vpack.c.bf16 %v1743_v10, %v1743_v10  ;;  %v1684_v40 = vsel %vm1428_vm1, %v1056_v49, %v1556_v0  ;;  %v1748_v59 = vsel %vm1492_vm2, %v1312_v29, %v1620_v63  ;;  %v3798_v52 = vpop.f32.mrb[58].mxu0  ;;  %vm1490_vm5 = vcmp.ge.f32.partialorder %v1304_v36, 0.0  ;;  %v3801_v60 = vpop.f32.mrb[58].mxu1 }
 0x15b   : > { %v2778_v13 = vpack.c.bf16 %v1684_v40, %v1684_v40  ;;  %v2842_v5 = vpack.c.bf16 %v1748_v59, %v1748_v59  ;;  %v1682_v62 = vsel %vm1426_vm4, %v1048_v57, %v1554_v55  ;;  %v3803_v37 = vpop.f32.mrb[59].mxu0  ;;  %v1618_v3 = vmul.f32 0.2, %v1304_v36  ;;  %v3807_v39 = vpop.f32.mrb[59].mxu1 }
 0x15c   : > { %2384 = vst.msk [vmem:[%s3325_s25 + $0x1a4] sm:$0xf] %vm2278_vm3, %v2837_v11  ;;  %v2776_v20 = vpack.c.bf16 %v1682_v62, %v1682_v62  ;;  %vm1429_vm6 = vcmp.ge.f32.partialorder %v1059_v6, 0.0  ;;  %v1557_v16 = vmul.f32 0.2, %v1059_v6  ;;  %vm1493_vm7 = vcmp.ge.f32.partialorder %v1315_v14, 0.0 }
 0x15d   : > { %2325 = vst.msk [vmem:[%s3325_s25 + $0xb8] sm:$0xf] %vm2278_vm3, %v2778_v13  ;;  %2389 = vst.msk [vmem:[%s3325_s25 + $0x1b8] sm:$0xf] %vm2278_vm3, %v2842_v5  ;;  %v1621_v32 = vmul.f32 0.2, %v1315_v14  ;;  %v1051_v34 = vadd.f32 %v3678_v21, %v3684_v18  ;;  %v1307_v41 = vadd.f32 %v3678_v21, %v3686_v23  ;;  %v1746_v44 = vsel %vm1490_vm5, %v1304_v36, %v1618_v3 }
 0x15e   : > { %2323 = vst.msk [vmem:[%s3325_s25 + $0xb0] sm:$0xf] %vm2278_vm3, %v2776_v20  ;;  %v1685_v19 = vsel %vm1429_vm6, %v1059_v6, %v1557_v16  ;;  %v1072_v61 = vadd.f32 %v3678_v21, %v3696_v26  ;;  %v1328_v1 = vadd.f32 %v3678_v21, %v3708_v46  ;;  %v2840_v31 = vpack.c.bf16 %v1746_v44, %v1746_v44  ;;  %v3824_v42 = vpop.f32.mrb[60].mxu0  ;;  %v3826_v47 = vpop.f32.mrb[60].mxu1 }
 0x15f   : > { %v2779_v45 = vpack.c.bf16 %v1685_v19, %v1685_v19  ;;  %v1749_v18 = vsel %vm1493_vm7, %v1315_v14, %v1621_v32  ;;  %vm1427_vm8 = vcmp.ge.f32.partialorder %v1051_v34, 0.0  ;;  %v1555_v43 = vmul.f32 0.2, %v1051_v34  ;;  %v3838_v29 = vpop.f32.mrb[61].mxu0  ;;  %v3840_v57 = vpop.f32.mrb[61].mxu1 }
 0x160   : > { %v2843_v23 = vpack.c.bf16 %v1749_v18, %v1749_v18  ;;  %vm1491_vm9 = vcmp.ge.f32.partialorder %v1307_v41, 0.0  ;;  %v1619_v4 = vmul.f32 0.2, %v1307_v41  ;;  %2387 = vst.msk [vmem:[%s3325_s25 + $0x1b0] sm:$0xf] %vm2278_vm3, %v2840_v31  ;;  %vm1432_vm10 = vcmp.ge.f32.partialorder %v1072_v61, 0.0 }
 0x161   : > { %2326 = vst.msk [vmem:[%s3325_s25 + $0xbc] sm:$0xf] %vm2278_vm3, %v2779_v45  ;;  %v1560_v26 = vmul.f32 0.2, %v1072_v61  ;;  %vm1496_vm11 = vcmp.ge.f32.partialorder %v1328_v1, 0.0  ;;  %v1683_v48 = vsel %vm1427_vm8, %v1051_v34, %v1555_v43  ;;  %v1064_v56 = vadd.f32 %v3678_v21, %v3710_v8  ;;  %v3842_v10 = vpop.f32.mrb[62].mxu0 }
 0x162   : > { %v1624_v46 = vmul.f32 0.2, %v1328_v1  ;;  %2390 = vst.msk [vmem:[%s3325_s25 + $0x1bc] sm:$0xf] %vm2278_vm3, %v2843_v23  ;;  %v1747_v49 = vsel %vm1491_vm9, %v1307_v41, %v1619_v4  ;;  %v1320_v12 = vadd.f32 %v3678_v21, %v3712_v53  ;;  %v2777_v58 = vpack.c.bf16 %v1683_v48, %v1683_v48  ;;  %v3844_v55 = vpop.f32.mrb[62].mxu1  ;;  %v3846_v53 = vpop.f32.mrb[63].mxu0 }
 0x163   : > { %v2841_v30 = vpack.c.bf16 %v1747_v49, %v1747_v49  ;;  %v1688_v0 = vsel %vm1432_vm10, %v1072_v61, %v1560_v26  ;;  %vm1430_vm12 = vcmp.ge.f32.partialorder %v1064_v56, 0.0  ;;  %v1558_v6 = vmul.f32 0.2, %v1064_v56  ;;  %v3848_v11 = vpop.f32.mrb[63].mxu1 }
 0x164   : > { %v1752_v63 = vsel %vm1496_vm11, %v1328_v1, %v1624_v46  ;;  %v2782_v8 = vpack.c.bf16 %v1688_v0, %v1688_v0  ;;  %2324 = vst.msk [vmem:[%s3325_s25 + $0xb4] sm:$0xf] %vm2278_vm3, %v2777_v58  ;;  %vm1494_vm13 = vcmp.ge.f32.partialorder %v1320_v12, 0.0  ;;  %v1622_v40 = vmul.f32 0.2, %v1320_v12 }
 0x165   : > { %v2846_v36 = vpack.c.bf16 %v1752_v63, %v1752_v63  ;;  %2388 = vst.msk [vmem:[%s3325_s25 + $0x1b4] sm:$0xf] %vm2278_vm3, %v2841_v30  ;;  %v1075_v59 = vadd.f32 %v3678_v21, %v3714_v28  ;;  %v1331_v14 = vadd.f32 %v3678_v21, %v3716_v54  ;;  %v1686_v13 = vsel %vm1430_vm12, %v1064_v56, %v1558_v6 }
 0x166   : > { %2329 = vst.msk [vmem:[%s3325_s25 + $0xc8] sm:$0xf] %vm2278_vm3, %v2782_v8  ;;  %v1067_v5 = vadd.f32 %v3678_v21, %v3718_v27  ;;  %v1323_v62 = vadd.f32 %v3678_v21, %v3722_v51  ;;  %v1088_v20 = vadd.f32 %v3678_v21, %v3736_v17  ;;  %v2780_v28 = vpack.c.bf16 %v1686_v13, %v1686_v13 }
 0x167   : > { %2393 = vst.msk [vmem:[%s3325_s25 + $0x1c8] sm:$0xf] %vm2278_vm3, %v2846_v36  ;;  %v1750_v3 = vsel %vm1494_vm13, %v1320_v12, %v1622_v40  ;;  %vm1433_vm14 = vcmp.ge.f32.partialorder %v1075_v59, 0.0  ;;  %v1561_v16 = vmul.f32 0.2, %v1075_v59  ;;  %vm1497_vm15 = vcmp.ge.f32.partialorder %v1331_v14, 0.0 }
 0x168   : > { %v2844_v54 = vpack.c.bf16 %v1750_v3, %v1750_v3  ;;  %v1625_v32 = vmul.f32 0.2, %v1331_v14  ;;  %vm1431_vm0 = vcmp.ge.f32.partialorder %v1067_v5, 0.0  ;;  %2327 = vst.msk [vmem:[%s3325_s25 + $0xc0] sm:$0xf] %vm2278_vm3, %v2780_v28  ;;  %vm1495_vm1 = vcmp.ge.f32.partialorder %v1323_v62, 0.0 }
 0x169   : > { %v1689_v34 = vsel %vm1433_vm14, %v1075_v59, %v1561_v16  ;;  %v1559_v27 = vmul.f32 0.2, %v1067_v5  ;;  %v1623_v41 = vmul.f32 0.2, %v1323_v62  ;;  %vm1436_vm2 = vcmp.ge.f32.partialorder %v1088_v20, 0.0 }
 0x16a   : > { %2391 = vst.msk [vmem:[%s3325_s25 + $0x1c0] sm:$0xf] %vm2278_vm3, %v2844_v54  ;;  %v2783_v51 = vpack.c.bf16 %v1689_v34, %v1689_v34  ;;  %v1753_v17 = vsel %vm1497_vm15, %v1331_v14, %v1625_v32  ;;  %v1564_v44 = vmul.f32 0.2, %v1088_v20  ;;  %v1344_v31 = vadd.f32 %v3678_v21, %v3746_v2 }
 0x16b   : > { %v2847_v19 = vpack.c.bf16 %v1753_v17, %v1753_v17  ;;  %v1687_v61 = vsel %vm1431_vm0, %v1067_v5, %v1559_v27  ;;  %v1751_v1 = vsel %vm1495_vm1, %v1323_v62, %v1623_v41  ;;  %v1080_v43 = vadd.f32 %v3678_v21, %v3748_v22 }
 0x16c   : > { %2330 = vst.msk [vmem:[%s3325_s25 + $0xcc] sm:$0xf] %vm2278_vm3, %v2783_v51  ;;  %v2781_v45 = vpack.c.bf16 %v1687_v61, %v1687_v61  ;;  %v2845_v18 = vpack.c.bf16 %v1751_v1, %v1751_v1  ;;  %v1692_v23 = vsel %vm1436_vm2, %v1088_v20, %v1564_v44  ;;  %vm1500_vm4 = vcmp.ge.f32.partialorder %v1344_v31, 0.0 }
 0x16d   : > { %2394 = vst.msk [vmem:[%s3325_s25 + $0x1cc] sm:$0xf] %vm2278_vm3, %v2847_v19  ;;  %v2786_v4 = vpack.c.bf16 %v1692_v23, %v1692_v23  ;;  %v1628_v26 = vmul.f32 0.2, %v1344_v31  ;;  %v1336_v46 = vadd.f32 %v3678_v21, %v3754_v35  ;;  %vm1434_vm5 = vcmp.ge.f32.partialorder %v1080_v43, 0.0 }
 0x16e   : > { %2328 = vst.msk [vmem:[%s3325_s25 + $0xc4] sm:$0xf] %vm2278_vm3, %v2781_v45  ;;  %2392 = vst.msk [vmem:[%s3325_s25 + $0x1c4] sm:$0xf] %vm2278_vm3, %v2845_v18  ;;  %v1562_v2 = vmul.f32 0.2, %v1080_v43  ;;  %v1091_v48 = vadd.f32 %v3678_v21, %v3756_v24  ;;  %v1347_v22 = vadd.f32 %v3678_v21, %v3758_v38  ;;  %v1083_v35 = vadd.f32 %v3678_v21, %v3760_v25 }
 0x16f   : > { %2333 = vst.msk [vmem:[%s3325_s25 + $0xd8] sm:$0xf] %vm2278_vm3, %v2786_v4  ;;  %v1756_v49 = vsel %vm1500_vm4, %v1344_v31, %v1628_v26  ;;  %vm1498_vm6 = vcmp.ge.f32.partialorder %v1336_v46, 0.0  ;;  %v1626_v56 = vmul.f32 0.2, %v1336_v46  ;;  %v1339_v40 = vadd.f32 %v3678_v21, %v3762_v33 }
 0x170   : > { %v2850_v12 = vpack.c.bf16 %v1756_v49, %v1756_v49  ;;  %v1690_v58 = vsel %vm1434_vm5, %v1080_v43, %v1562_v2  ;;  %vm1437_vm7 = vcmp.ge.f32.partialorder %v1091_v48, 0.0  ;;  %v1565_v30 = vmul.f32 0.2, %v1091_v48 }
 0x171   : > { %v2784_v0 = vpack.c.bf16 %v1690_v58, %v1690_v58  ;;  %v1754_v63 = vsel %vm1498_vm6, %v1336_v46, %v1626_v56  ;;  %vm1501_vm8 = vcmp.ge.f32.partialorder %v1347_v22, 0.0  ;;  %v1629_v24 = vmul.f32 0.2, %v1347_v22 }
 0x172   : > { %2397 = vst.msk [vmem:[%s3325_s25 + $0x1d8] sm:$0xf] %vm2278_vm3, %v2850_v12  ;;  %v2848_v38 = vpack.c.bf16 %v1754_v63, %v1754_v63  ;;  %v1693_v8 = vsel %vm1437_vm7, %v1091_v48, %v1565_v30  ;;  %vm1435_vm9 = vcmp.ge.f32.partialorder %v1083_v35, 0.0  ;;  %v1563_v36 = vmul.f32 0.2, %v1083_v35 }
 0x173   : > { %2331 = vst.msk [vmem:[%s3325_s25 + $0xd0] sm:$0xf] %vm2278_vm3, %v2784_v0  ;;  %v2787_v25 = vpack.c.bf16 %v1693_v8, %v1693_v8  ;;  %v1757_v6 = vsel %vm1501_vm8, %v1347_v22, %v1629_v24  ;;  %v1104_v59 = vadd.f32 %v3678_v21, %v3780_v50  ;;  %v1360_v5 = vadd.f32 %v3678_v21, %v3790_v7 }
 0x174   : > { %2395 = vst.msk [vmem:[%s3325_s25 + $0x1d0] sm:$0xf] %vm2278_vm3, %v2848_v38  ;;  %v2851_v14 = vpack.c.bf16 %v1757_v6, %v1757_v6  ;;  %v1691_v13 = vsel %vm1435_vm9, %v1083_v35, %v1563_v36  ;;  %v1096_v62 = vadd.f32 %v3678_v21, %v3792_v9  ;;  %vm1499_vm10 = vcmp.ge.f32.partialorder %v1339_v40, 0.0 }
 0x175   : > { %2334 = vst.msk [vmem:[%s3325_s25 + $0xdc] sm:$0xf] %vm2278_vm3, %v2787_v25  ;;  %v2785_v20 = vpack.c.bf16 %v1691_v13, %v1691_v13  ;;  %v1627_v28 = vmul.f32 0.2, %v1339_v40  ;;  %vm1440_vm11 = vcmp.ge.f32.partialorder %v1104_v59, 0.0  ;;  %vm1504_vm12 = vcmp.ge.f32.partialorder %v1360_v5, 0.0 }
 0x176   : > { %2398 = vst.msk [vmem:[%s3325_s25 + $0x1dc] sm:$0xf] %vm2278_vm3, %v2851_v14  ;;  %v1568_v33 = vmul.f32 0.2, %v1104_v59  ;;  %v1632_v50 = vmul.f32 0.2, %v1360_v5  ;;  %v1352_v9 = vadd.f32 %v3678_v21, %v3796_v15  ;;  %v1107_v16 = vadd.f32 %v3678_v21, %v3798_v52 }
 0x177   : > { %vm1438_vm13 = vcmp.ge.f32.partialorder %v1096_v62, 0.0  ;;  %2332 = vst.msk [vmem:[%s3325_s25 + $0xd4] sm:$0xf] %vm2278_vm3, %v2785_v20  ;;  %v1755_v3 = vsel %vm1499_vm10, %v1339_v40, %v1627_v28  ;;  %v1566_v7 = vmul.f32 0.2, %v1096_v62  ;;  %v1363_v27 = vadd.f32 %v3678_v21, %v3801_v60 }
 0x178   : > { %v2849_v54 = vpack.c.bf16 %v1755_v3, %v1755_v3  ;;  %v1696_v32 = vsel %vm1440_vm11, %v1104_v59, %v1568_v33  ;;  %v1760_v34 = vsel %vm1504_vm12, %v1360_v5, %v1632_v50  ;;  %vm1502_vm14 = vcmp.ge.f32.partialorder %v1352_v9, 0.0 }
 0x179   : > { %v2790_v41 = vpack.c.bf16 %v1696_v32, %v1696_v32  ;;  %v2854_v51 = vpack.c.bf16 %v1760_v34, %v1760_v34  ;;  %v1694_v17 = vsel %vm1438_vm13, %v1096_v62, %v1566_v7  ;;  %v1630_v19 = vmul.f32 0.2, %v1352_v9 }
 0x17a   : > { %2396 = vst.msk [vmem:[%s3325_s25 + $0x1d4] sm:$0xf] %vm2278_vm3, %v2849_v54  ;;  %v2788_v44 = vpack.c.bf16 %v1694_v17, %v1694_v17  ;;  %vm1441_vm15 = vcmp.ge.f32.partialorder %v1107_v16, 0.0  ;;  %v1569_v15 = vmul.f32 0.2, %v1107_v16  ;;  %vm1505_vm0 = vcmp.ge.f32.partialorder %v1363_v27, 0.0 }
 0x17b   : > { %2337 = vst.msk [vmem:[%s3325_s25 + $0xe8] sm:$0xf] %vm2278_vm3, %v2790_v41  ;;  %2401 = vst.msk [vmem:[%s3325_s25 + $0x1e8] sm:$0xf] %vm2278_vm3, %v2854_v51  ;;  %v1633_v52 = vmul.f32 0.2, %v1363_v27  ;;  %v1099_v60 = vadd.f32 %v3678_v21, %v3803_v37  ;;  %v1355_v61 = vadd.f32 %v3678_v21, %v3807_v39  ;;  %v1758_v1 = vsel %vm1502_vm14, %v1352_v9, %v1630_v19 }
 0x17c   : > { %2335 = vst.msk [vmem:[%s3325_s25 + $0xe0] sm:$0xf] %vm2278_vm3, %v2788_v44  ;;  %v1697_v31 = vsel %vm1441_vm15, %v1107_v16, %v1569_v15  ;;  %v1120_v45 = vadd.f32 %v3678_v21, %v3824_v42  ;;  %v1376_v18 = vadd.f32 %v3678_v21, %v3826_v47  ;;  %v2852_v23 = vpack.c.bf16 %v1758_v1, %v1758_v1 }
 0x17d   : > { %v2791_v43 = vpack.c.bf16 %v1697_v31, %v1697_v31  ;;  %v1761_v4 = vsel %vm1505_vm0, %v1363_v27, %v1633_v52  ;;  %vm1439_vm1 = vcmp.ge.f32.partialorder %v1099_v60, 0.0  ;;  %v1567_v26 = vmul.f32 0.2, %v1099_v60 }
 0x17e   : > { %v2855_v37 = vpack.c.bf16 %v1761_v4, %v1761_v4  ;;  %vm1503_vm2 = vcmp.ge.f32.partialorder %v1355_v61, 0.0  ;;  %v1631_v46 = vmul.f32 0.2, %v1355_v61  ;;  %2399 = vst.msk [vmem:[%s3325_s25 + $0x1e0] sm:$0xf] %vm2278_vm3, %v2852_v23  ;;  %vm1444_vm4 = vcmp.ge.f32.partialorder %v1120_v45, 0.0 }
 0x17f   : > { %2338 = vst.msk [vmem:[%s3325_s25 + $0xec] sm:$0xf] %vm2278_vm3, %v2791_v43  ;;  %v1572_v39 = vmul.f32 0.2, %v1120_v45  ;;  %vm1508_vm5 = vcmp.ge.f32.partialorder %v1376_v18, 0.0  ;;  %v1695_v47 = vsel %vm1439_vm1, %v1099_v60, %v1567_v26  ;;  %v1112_v48 = vadd.f32 %v3678_v21, %v3838_v29 }
 0x180   : > { %v1636_v42 = vmul.f32 0.2, %v1376_v18  ;;  %2402 = vst.msk [vmem:[%s3325_s25 + $0x1ec] sm:$0xf] %vm2278_vm3, %v2855_v37  ;;  %v1759_v2 = vsel %vm1503_vm2, %v1355_v61, %v1631_v46  ;;  %v1368_v22 = vadd.f32 %v3678_v21, %v3840_v57  ;;  %v2789_v49 = vpack.c.bf16 %v1695_v47, %v1695_v47 }
 0x181   : > { %v2853_v56 = vpack.c.bf16 %v1759_v2, %v1759_v2  ;;  %v1700_v35 = vsel %vm1444_vm4, %v1120_v45, %v1572_v39  ;;  %vm1442_vm6 = vcmp.ge.f32.partialorder %v1112_v48, 0.0  ;;  %v1570_v0 = vmul.f32 0.2, %v1112_v48 }
 0x182   : > { %v1764_v12 = vsel %vm1508_vm5, %v1376_v18, %v1636_v42  ;;  %v2794_v58 = vpack.c.bf16 %v1700_v35, %v1700_v35  ;;  %2336 = vst.msk [vmem:[%s3325_s25 + $0xe4] sm:$0xf] %vm2278_vm3, %v2789_v49  ;;  %vm1506_vm7 = vcmp.ge.f32.partialorder %v1368_v22, 0.0  ;;  %v1634_v63 = vmul.f32 0.2, %v1368_v22 }
 0x183   : > { %v2858_v30 = vpack.c.bf16 %v1764_v12, %v1764_v12  ;;  %2400 = vst.msk [vmem:[%s3325_s25 + $0x1e4] sm:$0xf] %vm2278_vm3, %v2853_v56  ;;  %v1123_v29 = vadd.f32 %v3678_v21, %v3842_v10  ;;  %v1379_v57 = vadd.f32 %v3678_v21, %v3844_v55  ;;  %v1698_v24 = vsel %vm1442_vm6, %v1112_v48, %v1570_v0 }
 0x184   : > { %2341 = vst.msk [vmem:[%s3325_s25 + $0xf8] sm:$0xf] %vm2278_vm3, %v2794_v58  ;;  %v1115_v38 = vadd.f32 %v3678_v21, %v3846_v53  ;;  %v1371_v8 = vadd.f32 %v3678_v21, %v3848_v11  ;;  %v2792_v36 = vpack.c.bf16 %v1698_v24, %v1698_v24  ;;  %v1762_v25 = vsel %vm1506_vm7, %v1368_v22, %v1634_v63 }
 0x185   : > { %2405 = vst.msk [vmem:[%s3325_s25 + $0x1f8] sm:$0xf] %vm2278_vm3, %v2858_v30  ;;  %vm1445_vm8 = vcmp.ge.f32.partialorder %v1123_v29, 0.0  ;;  %v1573_v6 = vmul.f32 0.2, %v1123_v29  ;;  %v2856_v10 = vpack.c.bf16 %v1762_v25, %v1762_v25  ;;  %vm1509_vm9 = vcmp.ge.f32.partialorder %v1379_v57, 0.0 }
 0x186   : > { %v1637_v55 = vmul.f32 0.2, %v1379_v57  ;;  %vm1443_vm10 = vcmp.ge.f32.partialorder %v1115_v38, 0.0  ;;  %2339 = vst.msk [vmem:[%s3325_s25 + $0xf0] sm:$0xf] %vm2278_vm3, %v2792_v36  ;;  %vm1507_vm11 = vcmp.ge.f32.partialorder %v1371_v8, 0.0 }
 0x187   : > { %v1701_v40 = vsel %vm1445_vm8, %v1123_v29, %v1573_v6  ;;  %v1571_v59 = vmul.f32 0.2, %v1115_v38  ;;  %v1635_v53 = vmul.f32 0.2, %v1371_v8  ;;  %2403 = vst.msk [vmem:[%s3325_s25 + $0x1f0] sm:$0xf] %vm2278_vm3, %v2856_v10 }
 0x188   : > { %v2795_v21 = vpack.c.bf16 %v1701_v40, %v1701_v40  ;;  %v1765_v11 = vsel %vm1509_vm9, %v1379_v57, %v1637_v55 }
 0x189   : > { %v2859_v14 = vpack.c.bf16 %v1765_v11, %v1765_v11  ;;  %v1699_v13 = vsel %vm1443_vm10, %v1115_v38, %v1571_v59  ;;  %v1763_v5 = vsel %vm1507_vm11, %v1371_v8, %v1635_v53 }
 0x18a   : > { %2342 = vst.msk [vmem:[%s3325_s25 + $0xfc] sm:$0xf] %vm2278_vm3, %v2795_v21  ;;  %v2793_v62 = vpack.c.bf16 %v1699_v13, %v1699_v13  ;;  %v2857_v20 = vpack.c.bf16 %v1763_v5, %v1763_v5 }
 0x18b   : > { %2406 = vst.msk [vmem:[%s3325_s25 + $0x1fc] sm:$0xf] %vm2278_vm3, %v2859_v14 }
 0x18c   : > { %2340 = vst.msk [vmem:[%s3325_s25 + $0xf4] sm:$0xf] %vm2278_vm3, %v2793_v62  ;;  %2404 = vst.msk [vmem:[%s3325_s25 + $0x1f4] sm:$0xf] %vm2278_vm3, %v2857_v20 }
 0x18d PF: > { %s13_s12 = sadd.s32 1, %s3138_s12  }
 0x18e   : > { %p10_p4 = scmp.ge.s32.totalorder %s13_s12, 4  }
 0x190   :  { %12 = sbr.rel (!%p10_p4) target bundleno = 1 (0x1), region = 62 }

// kernel: encoder_depth_fwd.13
= control target key start
LH: loop header
LB: loop body
LE: loop exit
PB: predicated region body
PF: predicated region fallthrough
CT: control target
= control target key end

     0   :  { %s2417_s12 = smov 0   ;;  %s2973_s0 = inlined_call_operand.vmem [shape: bf16[2048,36], index: 0, kind: input, shape index: {}]   ;;  %s2974_s1 = inlined_call_operand.vmem [shape: bf16[36,4], index: 1, kind: input, shape index: {}]   ;;  %s2975_s2 = inlined_call_operand.vmem [shape: f32[1,4], index: 2, kind: input, shape index: {}]   ;;  %s2976_s3 = inlined_call_operand.vmem [shape: f32[2048,4], index: 3, kind: output, shape index: {}]  }
   0x1 LB: > { %s1961_s13 = sadd.s32 4294967295, %s2395_s12   ;;  %p1965_p0 = scmp.ge.s32.totalorder %s2395_s12, 1  ;;  %s2395_s12 = sphi %s2417_s12, %s13_s12  }
   0x2   : > { %p138_p1 = scmp.lt.s32.totalorder %s2395_s12, 3 }
   0x4   : > { %p139_p2 = pnand %p1965_p0, %p138_p1 }
   0x5   : > { %v2321_v0 = vld [vmem:[%s2974_s1] sm:$0xff] (!%p139_p2)   ;;  %v2322_v1 = vld [vmem:[%s2974_s1 + $0x8] sm:$0xff] (!%p139_p2)   ;;  %s1966_s18 = sshll.u32 (!%p139_p2), %s1961_s13, 7  ;;  %v2323_v2 = vld [vmem:[%s2974_s1 + $0x10] ss:$0 sps:$4 sm:$0x33] (!%p139_p2)  }
   0x6   : > { %142 = sbr.rel (%p139_p2) target bundleno = 364 (0x16c), region = 32  ;;  %2171 = vmatprep.subr.bf16.mxu0 (!%p139_p2), %v2321_v0  ;;  %2305 = vmatprep.subr.bf16.mxu1 (!%p139_p2), %v2321_v0  ;;  %p163_p3 = scmp.lt.s32.totalorder (!%p139_p2), %s1966_s18, 255  ;;  %vm843_vm0 = vcmask (!%p139_p2), 1041408   ;;  %vm650_vm1 = vcmask (!%p139_p2), 293888   ;;  %vm1776_vm2 = vcmask (!%p139_p2), 31744  }
   0x7   : > { %2172 = vmatpush3.bf16.msra.mxu0 (!%p139_p2), %v2321_v0  ;;  %2308 = vmatpush3.bf16.msra.mxu1 (!%p139_p2), %v2321_v0  ;;  %v845_v3 = vsel (!%p139_p2), %vm843_vm0, %v2323_v2, 0 }
   0x8   : > { %2173 = vmatprep.subr.bf16.mxu0 (!%p139_p2), %v2322_v1  ;;  %2306 = vmatprep.subr.bf16.mxu1 (!%p139_p2), %v2322_v1 }
   0xb   : > { %2174 = vmatpush3.bf16.msra.mxu0 (!%p139_p2), %v2322_v1  ;;  %2309 = vmatpush3.bf16.msra.mxu1 (!%p139_p2), %v2322_v1 }
   0xc   : > { %2311 = vmatprep.subr.msk.bf16.mxu0 (!%p139_p2), %vm843_vm0, %v2323_v2  ;;  %2312 = vmatprep.subr.msk.bf16.mxu1 (!%p139_p2), %vm843_vm0, %v2323_v2 }
   0xd   : > { %s2978_s18 = smov (!%p163_p3, %s1966_s18), 255 }
   0xe   : > { %s1967_s21 = sshll.u32 %s2978_s18, 2  ;;  %s1969_s27 = sshll.u32 %s2978_s18, 3 }
   0xf   : > { %s2440_s24 = scalar_lea.vmem %s2973_s0, %s1967_s21  ;;  %2176 = vmatpush3.bf16.msra.mxu0 %v845_v3  ;;  %2310 = vmatpush3.bf16.msra.mxu1 %v845_v3  ;;  %s2583_s30 = scalar_lea.vmem %s2976_s3, %s1969_s27 }
  0x10   : > { %v2324_v4 = vld [vmem:[%s2440_s24] sm:$0xff]   ;;  %v2326_v6 = vld [vmem:[%s2440_s24 + $0x8] sm:$0xff]   ;;  %v2328_v8 = vld [vmem:[%s2440_s24 + $0x10] sm:$0xff]  }
  0x11   : > { %v2325_v5 = vld [vmem:[%s2440_s24 + $0x100] sm:$0xff]   ;;  %2177 = vmatprep.mubr.msk.bf16.mxu0 %vm650_vm1, %v2324_v4  ;;  %v2327_v7 = vld [vmem:[%s2440_s24 + $0x108] sm:$0xff]   ;;  %v2329_v9 = vld [vmem:[%s2440_s24 + $0x110] sm:$0xff]  }
  0x12   : > { %2241 = vmatprep.mubr.msk.bf16.mxu1 %vm650_vm1, %v2325_v5  ;;  %2178 = vmatmul.mubr.msk.bf16.vlgmr.msra.gmra.mrb[0].mxu0 %vm650_vm1, %v2326_v6  ;;  %v2330_v10 = vld [vmem:[%s2440_s24 + $0x18] sm:$0xff]   ;;  %v2332_v12 = vld [vmem:[%s2440_s24 + $0x20] sm:$0xff]   ;;  %v2334_v14 = vld [vmem:[%s2440_s24 + $0x28] sm:$0xff]  }
  0x13   : > { %2242 = vmatmul.mubr.msk.bf16.vlgmr.msra.gmra.mrb[0].mxu1 %vm650_vm1, %v2327_v7  ;;  %2181 = vmatprep.mubr.msk.bf16.mxu0 %vm650_vm1, %v2328_v8  ;;  %v2331_v11 = vld [vmem:[%s2440_s24 + $0x118] sm:$0xff]   ;;  %v2333_v13 = vld [vmem:[%s2440_s24 + $0x120] sm:$0xff]   ;;  %v2335_v15 = vld [vmem:[%s2440_s24 + $0x128] sm:$0xff]  }
  0x14   : > { %2245 = vmatprep.mubr.msk.bf16.mxu1 %vm650_vm1, %v2329_v9  ;;  %v2336_v16 = vld [vmem:[%s2440_s24 + $0x30] sm:$0xff]   ;;  %v2338_v18 = vld [vmem:[%s2440_s24 + $0x38] sm:$0xff]   ;;  %v2340_v20 = vld [vmem:[%s2440_s24 + $0x40] sm:$0xff]  }
  0x15   : > { %v2337_v17 = vld [vmem:[%s2440_s24 + $0x130] sm:$0xff]   ;;  %v2339_v19 = vld [vmem:[%s2440_s24 + $0x138] sm:$0xff]   ;;  %v2341_v21 = vld [vmem:[%s2440_s24 + $0x140] sm:$0xff]  }
  0x16   : > { %v2342_v22 = vld [vmem:[%s2440_s24 + $0x48] sm:$0xff]   ;;  %v2344_v24 = vld [vmem:[%s2440_s24 + $0x50] sm:$0xff]   ;;  %v2346_v26 = vld [vmem:[%s2440_s24 + $0x58] sm:$0xff]  }
  0x17   : > { %v2343_v23 = vld [vmem:[%s2440_s24 + $0x148] sm:$0xff]   ;;  %v2345_v25 = vld [vmem:[%s2440_s24 + $0x150] sm:$0xff]   ;;  %v2347_v27 = vld [vmem:[%s2440_s24 + $0x158] sm:$0xff]  }
  0x18   : > { %v2348_v28 = vld [vmem:[%s2440_s24 + $0x60] sm:$0xff]   ;;  %v2350_v30 = vld [vmem:[%s2440_s24 + $0x68] sm:$0xff]   ;;  %v2352_v32 = vld [vmem:[%s2440_s24 + $0x70] sm:$0xff]  }
  0x19   : > { %v2349_v29 = vld [vmem:[%s2440_s24 + $0x160] sm:$0xff]   ;;  %v2351_v31 = vld [vmem:[%s2440_s24 + $0x168] sm:$0xff]   ;;  %v2353_v33 = vld [vmem:[%s2440_s24 + $0x170] sm:$0xff]  }
  0x1a   : > { %2182 = vmatmul.mubr.msk.bf16.gmra.mrb[4].mxu0 %vm650_vm1, %v2330_v10  ;;  %v2354_v34 = vld [vmem:[%s2440_s24 + $0x78] sm:$0xff]   ;;  %v2356_v36 = vld [vmem:[%s2440_s24 + $0x80] sm:$0xff]   ;;  %v2358_v38 = vld [vmem:[%s2440_s24 + $0x88] sm:$0xff]  }
  0x1b   : > { %2246 = vmatmul.mubr.msk.bf16.gmra.mrb[4].mxu1 %vm650_vm1, %v2331_v11  ;;  %2185 = vmatprep.mubr.msk.bf16.mxu0 %vm650_vm1, %v2332_v12  ;;  %v2355_v35 = vld [vmem:[%s2440_s24 + $0x178] sm:$0xff]   ;;  %v2357_v37 = vld [vmem:[%s2440_s24 + $0x180] sm:$0xff]   ;;  %v2359_v39 = vld [vmem:[%s2440_s24 + $0x188] sm:$0xff]  }
  0x1c   : > { %2249 = vmatprep.mubr.msk.bf16.mxu1 %vm650_vm1, %v2333_v13  ;;  %v2360_v40 = vld [vmem:[%s2440_s24 + $0x90] sm:$0xff]   ;;  %v2362_v42 = vld [vmem:[%s2440_s24 + $0x98] sm:$0xff]   ;;  %v2364_v44 = vld [vmem:[%s2440_s24 + $0xa0] sm:$0xff]  }
  0x1d   : > { %v2361_v41 = vld [vmem:[%s2440_s24 + $0x190] sm:$0xff]   ;;  %v2363_v43 = vld [vmem:[%s2440_s24 + $0x198] sm:$0xff]   ;;  %v2365_v45 = vld [vmem:[%s2440_s24 + $0x1a0] sm:$0xff]  }
  0x1e   : > { %v2366_v46 = vld [vmem:[%s2440_s24 + $0xa8] sm:$0xff]   ;;  %v2368_v48 = vld [vmem:[%s2440_s24 + $0xb0] sm:$0xff]   ;;  %v2370_v50 = vld [vmem:[%s2440_s24 + $0xb8] sm:$0xff]  }
  0x1f   : > { %v2367_v47 = vld [vmem:[%s2440_s24 + $0x1a8] sm:$0xff]   ;;  %v2369_v49 = vld [vmem:[%s2440_s24 + $0x1b0] sm:$0xff]   ;;  %v2371_v51 = vld [vmem:[%s2440_s24 + $0x1b8] sm:$0xff]  }
  0x20   : > { %v2372_v52 = vld [vmem:[%s2440_s24 + $0xc0] sm:$0xff]   ;;  %v2374_v54 = vld [vmem:[%s2440_s24 + $0xc8] sm:$0xff]   ;;  %v2376_v56 = vld [vmem:[%s2440_s24 + $0xd0] sm:$0xff]  }
  0x21   : > { %v2373_v53 = vld [vmem:[%s2440_s24 + $0x1c0] sm:$0xff]   ;;  %v2375_v55 = vld [vmem:[%s2440_s24 + $0x1c8] sm:$0xff]   ;;  %v2377_v57 = vld [vmem:[%s2440_s24 + $0x1d0] sm:$0xff]  }
  0x22   : > { %2186 = vmatmul.mubr.msk.bf16.gmra.mrb[8].mxu0 %vm650_vm1, %v2334_v14  ;;  %v2378_v58 = vld [vmem:[%s2440_s24 + $0xd8] sm:$0xff]   ;;  %v2380_v60 = vld [vmem:[%s2440_s24 + $0xe0] sm:$0xff]   ;;  %v2382_v62 = vld [vmem:[%s2440_s24 + $0xe8] sm:$0xff]  }
  0x23   : > { %2250 = vmatmul.mubr.msk.bf16.gmra.mrb[8].mxu1 %vm650_vm1, %v2335_v15  ;;  %2189 = vmatprep.mubr.msk.bf16.mxu0 %vm650_vm1, %v2336_v16  ;;  %v2379_v59 = vld [vmem:[%s2440_s24 + $0x1d8] sm:$0xff]   ;;  %v2381_v61 = vld [vmem:[%s2440_s24 + $0x1e0] sm:$0xff]   ;;  %v2383_v63 = vld [vmem:[%s2440_s24 + $0x1e8] sm:$0xff]  }
  0x24   : > { %2253 = vmatprep.mubr.msk.bf16.mxu1 %vm650_vm1, %v2337_v17  ;;  %v2384_v0 = vld [vmem:[%s2440_s24 + $0xf0] sm:$0xff]   ;;  %v2386_v2 = vld [vmem:[%s2440_s24 + $0xf8] sm:$0xff]   ;;  %v2573_v4 = vld [vmem:[%s2975_s2] ss:$0 sm:$0xff] }
  0x25   : > { %v2385_v1 = vld [vmem:[%s2440_s24 + $0x1f0] sm:$0xff]   ;;  %v2387_v3 = vld [vmem:[%s2440_s24 + $0x1f8] sm:$0xff]  }
  0x2a   : > { %2190 = vmatmul.mubr.msk.bf16.gmra.mrb[12].mxu0 %vm650_vm1, %v2338_v18 }
  0x2b   : > { %2254 = vmatmul.mubr.msk.bf16.gmra.mrb[12].mxu1 %vm650_vm1, %v2339_v19  ;;  %2193 = vmatprep.mubr.msk.bf16.mxu0 %vm650_vm1, %v2340_v20 }
  0x2c   : > { %2257 = vmatprep.mubr.msk.bf16.mxu1 %vm650_vm1, %v2341_v21 }
  0x32   : > { %2194 = vmatmul.mubr.msk.bf16.gmra.mrb[16].mxu0 %vm650_vm1, %v2342_v22 }
  0x33   : > { %2258 = vmatmul.mubr.msk.bf16.gmra.mrb[16].mxu1 %vm650_vm1, %v2343_v23  ;;  %2197 = vmatprep.mubr.msk.bf16.mxu0 %vm650_vm1, %v2344_v24 }
  0x34   : > { %2261 = vmatprep.mubr.msk.bf16.mxu1 %vm650_vm1, %v2345_v25 }
  0x3a   : > { %2198 = vmatmul.mubr.msk.bf16.gmra.mrb[20].mxu0 %vm650_vm1, %v2346_v26 }
  0x3b   : > { %2262 = vmatmul.mubr.msk.bf16.gmra.mrb[20].mxu1 %vm650_vm1, %v2347_v27  ;;  %2201 = vmatprep.mubr.msk.bf16.mxu0 %vm650_vm1, %v2348_v28 }
  0x3c   : > { %2265 = vmatprep.mubr.msk.bf16.mxu1 %vm650_vm1, %v2349_v29 }
  0x42   : > { %2202 = vmatmul.mubr.msk.bf16.gmra.mrb[24].mxu0 %vm650_vm1, %v2350_v30 }
  0x43   : > { %2266 = vmatmul.mubr.msk.bf16.gmra.mrb[24].mxu1 %vm650_vm1, %v2351_v31  ;;  %2205 = vmatprep.mubr.msk.bf16.mxu0 %vm650_vm1, %v2352_v32 }
  0x44   : > { %2269 = vmatprep.mubr.msk.bf16.mxu1 %vm650_vm1, %v2353_v33 }
  0x4a   : > { %2206 = vmatmul.mubr.msk.bf16.gmra.mrb[28].mxu0 %vm650_vm1, %v2354_v34 }
  0x4b   : > { %2270 = vmatmul.mubr.msk.bf16.gmra.mrb[28].mxu1 %vm650_vm1, %v2355_v35  ;;  %2209 = vmatprep.mubr.msk.bf16.mxu0 %vm650_vm1, %v2356_v36 }
  0x4c   : > { %2273 = vmatprep.mubr.msk.bf16.mxu1 %vm650_vm1, %v2357_v37 }
  0x52   : > { %2210 = vmatmul.mubr.msk.bf16.gmra.mrb[32].mxu0 %vm650_vm1, %v2358_v38 }
  0x53   : > { %2274 = vmatmul.mubr.msk.bf16.gmra.mrb[32].mxu1 %vm650_vm1, %v2359_v39  ;;  %2213 = vmatprep.mubr.msk.bf16.mxu0 %vm650_vm1, %v2360_v40 }
  0x54   : > { %2277 = vmatprep.mubr.msk.bf16.mxu1 %vm650_vm1, %v2361_v41 }
  0x5a   : > { %2214 = vmatmul.mubr.msk.bf16.gmra.mrb[36].mxu0 %vm650_vm1, %v2362_v42 }
  0x5b   : > { %2278 = vmatmul.mubr.msk.bf16.gmra.mrb[36].mxu1 %vm650_vm1, %v2363_v43  ;;  %2217 = vmatprep.mubr.msk.bf16.mxu0 %vm650_vm1, %v2364_v44 }
  0x5c   : > { %2281 = vmatprep.mubr.msk.bf16.mxu1 %vm650_vm1, %v2365_v45 }
  0x62   : > { %2218 = vmatmul.mubr.msk.bf16.gmra.mrb[40].mxu0 %vm650_vm1, %v2366_v46 }
  0x63   : > { %2282 = vmatmul.mubr.msk.bf16.gmra.mrb[40].mxu1 %vm650_vm1, %v2367_v47  ;;  %2221 = vmatprep.mubr.msk.bf16.mxu0 %vm650_vm1, %v2368_v48 }
  0x64   : > { %2285 = vmatprep.mubr.msk.bf16.mxu1 %vm650_vm1, %v2369_v49 }
  0x6a   : > { %2222 = vmatmul.mubr.msk.bf16.gmra.mrb[44].mxu0 %vm650_vm1, %v2370_v50 }
  0x6b   : > { %2286 = vmatmul.mubr.msk.bf16.gmra.mrb[44].mxu1 %vm650_vm1, %v2371_v51  ;;  %2225 = vmatprep.mubr.msk.bf16.mxu0 %vm650_vm1, %v2372_v52 }
  0x6c   : > { %2289 = vmatprep.mubr.msk.bf16.mxu1 %vm650_vm1, %v2373_v53 }
  0x72   : > { %2226 = vmatmul.mubr.msk.bf16.gmra.mrb[48].mxu0 %vm650_vm1, %v2374_v54 }
  0x73   : > { %2290 = vmatmul.mubr.msk.bf16.gmra.mrb[48].mxu1 %vm650_vm1, %v2375_v55  ;;  %2229 = vmatprep.mubr.msk.bf16.mxu0 %vm650_vm1, %v2376_v56 }
  0x74   : > { %2293 = vmatprep.mubr.msk.bf16.mxu1 %vm650_vm1, %v2377_v57 }
  0x7a   : > { %2230 = vmatmul.mubr.msk.bf16.gmra.mrb[52].mxu0 %vm650_vm1, %v2378_v58 }
  0x7b   : > { %2294 = vmatmul.mubr.msk.bf16.gmra.mrb[52].mxu1 %vm650_vm1, %v2379_v59  ;;  %2233 = vmatprep.mubr.msk.bf16.mxu0 %vm650_vm1, %v2380_v60 }
  0x7c   : > { %2297 = vmatprep.mubr.msk.bf16.mxu1 %vm650_vm1, %v2381_v61 }
  0x82   : > { %2234 = vmatmul.mubr.msk.bf16.gmra.mrb[56].mxu0 %vm650_vm1, %v2382_v62 }
  0x83   : > { %2298 = vmatmul.mubr.msk.bf16.gmra.mrb[56].mxu1 %vm650_vm1, %v2383_v63  ;;  %2237 = vmatprep.mubr.msk.bf16.mxu0 %vm650_vm1, %v2384_v0 }
  0x84   : > { %2301 = vmatprep.mubr.msk.bf16.mxu1 %vm650_vm1, %v2385_v1 }
  0x8a   : > { %2238 = vmatmul.mubr.msk.bf16.gmra.mrb[60].mxu0 %vm650_vm1, %v2386_v2 }
  0x8b   : > { %2302 = vmatmul.mubr.msk.bf16.gmra.mrb[60].mxu1 %vm650_vm1, %v2387_v3 }
  0xe5   : > { %v2179_v5 = vpop.f32.mrb[0].mxu0 }
  0xe6   : > { %v2243_v6 = vpop.f32.mrb[0].mxu1  ;;  %v890_v7 = vadd.f32 %v2179_v5, %v2573_v4  ;;  %v881_v9 = vpop.f32.mrb[1].mxu0 }
  0xe7   : > { %v1146_v8 = vadd.f32 %v2243_v6, %v2573_v4  ;;  %v1137_v10 = vpop.f32.mrb[1].mxu1  ;;  %v882_v11 = vadd.f32 %v2573_v4, %v881_v9  ;;  %v2180_v13 = vpop.f32.mrb[2].mxu0 }
  0xe8   : > { %v1138_v12 = vadd.f32 %v2573_v4, %v1137_v10  ;;  %v2244_v14 = vpop.f32.mrb[2].mxu1  ;;  %vm1394_vm3 = vcmp.ge.f32.partialorder %v890_v7, 0.0  ;;  %v1522_v15 = vmul.f32 0.2, %v890_v7  ;;  %v893_v21 = vadd.f32 %v2180_v13, %v2573_v4  ;;  %v884_v23 = vpop.f32.mrb[3].mxu0 }
  0xe9   : > { %vm1458_vm4 = vcmp.ge.f32.partialorder %v1146_v8, 0.0  ;;  %v1586_v16 = vmul.f32 0.2, %v1146_v8  ;;  %vm1392_vm5 = vcmp.ge.f32.partialorder %v882_v11, 0.0  ;;  %v1520_v17 = vmul.f32 0.2, %v882_v11 }
  0xea   : > { %vm1456_vm6 = vcmp.ge.f32.partialorder %v1138_v12, 0.0  ;;  %v1584_v18 = vmul.f32 0.2, %v1138_v12  ;;  %v1650_v19 = vsel %vm1394_vm3, %v890_v7, %v1522_v15  ;;  %v1149_v22 = vadd.f32 %v2244_v14, %v2573_v4  ;;  %v1140_v24 = vpop.f32.mrb[3].mxu1 }
  0xeb   : > { %v1714_v20 = vsel %vm1458_vm4, %v1146_v8, %v1586_v16  ;;  %1779 = vst.msk [vmem:[%s2583_s30 + $0x10] sm:$0xff] %vm1776_vm2, %v1650_v19  ;;  %v1648_v25 = vsel %vm1392_vm5, %v882_v11, %v1520_v17  ;;  %v885_v27 = vadd.f32 %v2573_v4, %v884_v23  ;;  %v1141_v28 = vadd.f32 %v2573_v4, %v1140_v24 }
  0xec   : > { %1843 = vst.msk [vmem:[%s2583_s30 + $0x210] sm:$0xff] %vm1776_vm2, %v1714_v20  ;;  %v1712_v26 = vsel %vm1456_vm6, %v1138_v12, %v1584_v18  ;;  %1777 = vst.msk [vmem:[%s2583_s30] sm:$0xff] %vm1776_vm2, %v1648_v25  ;;  %vm1395_vm7 = vcmp.ge.f32.partialorder %v893_v21, 0.0  ;;  %v1523_v29 = vmul.f32 0.2, %v893_v21  ;;  %vm1459_vm8 = vcmp.ge.f32.partialorder %v1149_v22, 0.0 }
  0xed   : > { %1841 = vst.msk [vmem:[%s2583_s30 + $0x200] sm:$0xff] %vm1776_vm2, %v1712_v26  ;;  %v1587_v30 = vmul.f32 0.2, %v1149_v22  ;;  %vm1393_vm9 = vcmp.ge.f32.partialorder %v885_v27, 0.0  ;;  %v1521_v31 = vmul.f32 0.2, %v885_v27 }
  0xee   : > { %vm1457_vm10 = vcmp.ge.f32.partialorder %v1141_v28, 0.0  ;;  %v1585_v32 = vmul.f32 0.2, %v1141_v28  ;;  %v1651_v33 = vsel %vm1395_vm7, %v893_v21, %v1523_v29  ;;  %v2183_v35 = vpop.f32.mrb[4].mxu0  ;;  %v2247_v36 = vpop.f32.mrb[4].mxu1 }
  0xef   : > { %v1715_v34 = vsel %vm1459_vm8, %v1149_v22, %v1587_v30  ;;  %1780 = vst.msk [vmem:[%s2583_s30 + $0x18] sm:$0xff] %vm1776_vm2, %v1651_v33  ;;  %v1649_v37 = vsel %vm1393_vm9, %v885_v27, %v1521_v31  ;;  %v906_v39 = vadd.f32 %v2183_v35, %v2573_v4  ;;  %v1162_v40 = vadd.f32 %v2247_v36, %v2573_v4  ;;  %v897_v41 = vpop.f32.mrb[5].mxu0  ;;  %v1153_v42 = vpop.f32.mrb[5].mxu1 }
  0xf0   : > { %1844 = vst.msk [vmem:[%s2583_s30 + $0x218] sm:$0xff] %vm1776_vm2, %v1715_v34  ;;  %v1713_v38 = vsel %vm1457_vm10, %v1141_v28, %v1585_v32  ;;  %1778 = vst.msk [vmem:[%s2583_s30 + $0x8] sm:$0xff] %vm1776_vm2, %v1649_v37  ;;  %v898_v43 = vadd.f32 %v2573_v4, %v897_v41  ;;  %v1154_v44 = vadd.f32 %v2573_v4, %v1153_v42  ;;  %v2184_v45 = vpop.f32.mrb[6].mxu0  ;;  %v2248_v46 = vpop.f32.mrb[6].mxu1 }
  0xf1   : > { %1842 = vst.msk [vmem:[%s2583_s30 + $0x208] sm:$0xff] %vm1776_vm2, %v1713_v38  ;;  %vm1398_vm11 = vcmp.ge.f32.partialorder %v906_v39, 0.0  ;;  %v1526_v47 = vmul.f32 0.2, %v906_v39  ;;  %vm1462_vm12 = vcmp.ge.f32.partialorder %v1162_v40, 0.0  ;;  %v909_v53 = vadd.f32 %v2184_v45, %v2573_v4  ;;  %v900_v55 = vpop.f32.mrb[7].mxu0 }
  0xf2   : > { %v1590_v48 = vmul.f32 0.2, %v1162_v40  ;;  %vm1396_vm13 = vcmp.ge.f32.partialorder %v898_v43, 0.0  ;;  %v1524_v49 = vmul.f32 0.2, %v898_v43  ;;  %vm1460_vm14 = vcmp.ge.f32.partialorder %v1154_v44, 0.0 }
  0xf3   : > { %v1588_v50 = vmul.f32 0.2, %v1154_v44  ;;  %v1654_v51 = vsel %vm1398_vm11, %v906_v39, %v1526_v47  ;;  %v1165_v54 = vadd.f32 %v2248_v46, %v2573_v4  ;;  %v1156_v56 = vpop.f32.mrb[7].mxu1  ;;  %v901_v59 = vadd.f32 %v2573_v4, %v900_v55 }
  0xf4   : > { %v1718_v52 = vsel %vm1462_vm12, %v1162_v40, %v1590_v48  ;;  %1783 = vst.msk [vmem:[%s2583_s30 + $0x30] sm:$0xff] %vm1776_vm2, %v1654_v51  ;;  %v1652_v57 = vsel %vm1396_vm13, %v898_v43, %v1524_v49  ;;  %v1157_v60 = vadd.f32 %v2573_v4, %v1156_v56  ;;  %vm1399_vm15 = vcmp.ge.f32.partialorder %v909_v53, 0.0 }
  0xf5   : > { %1847 = vst.msk [vmem:[%s2583_s30 + $0x230] sm:$0xff] %vm1776_vm2, %v1718_v52  ;;  %v1716_v58 = vsel %vm1460_vm14, %v1154_v44, %v1588_v50  ;;  %1781 = vst.msk [vmem:[%s2583_s30 + $0x20] sm:$0xff] %vm1776_vm2, %v1652_v57  ;;  %v1527_v61 = vmul.f32 0.2, %v909_v53  ;;  %vm1463_vm0 = vcmp.ge.f32.partialorder %v1165_v54, 0.0  ;;  %vm1397_vm1 = vcmp.ge.f32.partialorder %v901_v59, 0.0 }
  0xf6   : > { %1845 = vst.msk [vmem:[%s2583_s30 + $0x220] sm:$0xff] %vm1776_vm2, %v1716_v58  ;;  %v1591_v62 = vmul.f32 0.2, %v1165_v54  ;;  %v1525_v63 = vmul.f32 0.2, %v901_v59  ;;  %vm1461_vm3 = vcmp.ge.f32.partialorder %v1157_v60, 0.0 }
  0xf7   : > { %v1589_v0 = vmul.f32 0.2, %v1157_v60  ;;  %v1655_v1 = vsel %vm1399_vm15, %v909_v53, %v1527_v61  ;;  %v2187_v3 = vpop.f32.mrb[8].mxu0  ;;  %v2251_v5 = vpop.f32.mrb[8].mxu1 }
  0xf8   : > { %v1719_v2 = vsel %vm1463_vm0, %v1165_v54, %v1591_v62  ;;  %1784 = vst.msk [vmem:[%s2583_s30 + $0x38] sm:$0xff] %vm1776_vm2, %v1655_v1  ;;  %v1653_v6 = vsel %vm1397_vm1, %v901_v59, %v1525_v63  ;;  %v922_v8 = vadd.f32 %v2187_v3, %v2573_v4  ;;  %v1178_v9 = vadd.f32 %v2251_v5, %v2573_v4  ;;  %v913_v10 = vpop.f32.mrb[9].mxu0  ;;  %v1169_v11 = vpop.f32.mrb[9].mxu1 }
  0xf9   : > { %1848 = vst.msk [vmem:[%s2583_s30 + $0x238] sm:$0xff] %vm1776_vm2, %v1719_v2  ;;  %v1717_v7 = vsel %vm1461_vm3, %v1157_v60, %v1589_v0  ;;  %1782 = vst.msk [vmem:[%s2583_s30 + $0x28] sm:$0xff] %vm1776_vm2, %v1653_v6  ;;  %v914_v12 = vadd.f32 %v2573_v4, %v913_v10  ;;  %v1170_v13 = vadd.f32 %v2573_v4, %v1169_v11  ;;  %v2188_v14 = vpop.f32.mrb[10].mxu0  ;;  %v2252_v15 = vpop.f32.mrb[10].mxu1 }
  0xfa   : > { %1846 = vst.msk [vmem:[%s2583_s30 + $0x228] sm:$0xff] %vm1776_vm2, %v1717_v7  ;;  %vm1402_vm4 = vcmp.ge.f32.partialorder %v922_v8, 0.0  ;;  %v1530_v16 = vmul.f32 0.2, %v922_v8  ;;  %vm1466_vm5 = vcmp.ge.f32.partialorder %v1178_v9, 0.0  ;;  %v925_v22 = vadd.f32 %v2188_v14, %v2573_v4  ;;  %v916_v24 = vpop.f32.mrb[11].mxu0 }
  0xfb   : > { %v1594_v17 = vmul.f32 0.2, %v1178_v9  ;;  %vm1400_vm6 = vcmp.ge.f32.partialorder %v914_v12, 0.0  ;;  %v1528_v18 = vmul.f32 0.2, %v914_v12  ;;  %vm1464_vm7 = vcmp.ge.f32.partialorder %v1170_v13, 0.0 }
  0xfc   : > { %v1592_v19 = vmul.f32 0.2, %v1170_v13  ;;  %v1658_v20 = vsel %vm1402_vm4, %v922_v8, %v1530_v16  ;;  %v1181_v23 = vadd.f32 %v2252_v15, %v2573_v4  ;;  %v1172_v25 = vpop.f32.mrb[11].mxu1  ;;  %v917_v28 = vadd.f32 %v2573_v4, %v916_v24 }
  0xfd   : > { %v1722_v21 = vsel %vm1466_vm5, %v1178_v9, %v1594_v17  ;;  %1787 = vst.msk [vmem:[%s2583_s30 + $0x50] sm:$0xff] %vm1776_vm2, %v1658_v20  ;;  %v1656_v26 = vsel %vm1400_vm6, %v914_v12, %v1528_v18  ;;  %v1173_v29 = vadd.f32 %v2573_v4, %v1172_v25  ;;  %v2191_v30 = vpop.f32.mrb[12].mxu0  ;;  %vm1403_vm8 = vcmp.ge.f32.partialorder %v925_v22, 0.0 }
  0xfe   : > { %1851 = vst.msk [vmem:[%s2583_s30 + $0x250] sm:$0xff] %vm1776_vm2, %v1722_v21  ;;  %v1720_v27 = vsel %vm1464_vm7, %v1170_v13, %v1592_v19  ;;  %v2255_v31 = vpop.f32.mrb[12].mxu1  ;;  %1785 = vst.msk [vmem:[%s2583_s30 + $0x40] sm:$0xff] %vm1776_vm2, %v1656_v26  ;;  %v1531_v32 = vmul.f32 0.2, %v925_v22  ;;  %vm1467_vm9 = vcmp.ge.f32.partialorder %v1181_v23, 0.0  ;;  %v938_v38 = vadd.f32 %v2191_v30, %v2573_v4 }
  0xff   : > { %1849 = vst.msk [vmem:[%s2583_s30 + $0x240] sm:$0xff] %vm1776_vm2, %v1720_v27  ;;  %v1595_v33 = vmul.f32 0.2, %v1181_v23  ;;  %vm1401_vm10 = vcmp.ge.f32.partialorder %v917_v28, 0.0  ;;  %v1529_v34 = vmul.f32 0.2, %v917_v28  ;;  %v1194_v39 = vadd.f32 %v2255_v31, %v2573_v4 }
 0x100   : > { %vm1465_vm11 = vcmp.ge.f32.partialorder %v1173_v29, 0.0  ;;  %v1593_v35 = vmul.f32 0.2, %v1173_v29  ;;  %v1659_v36 = vsel %vm1403_vm8, %v925_v22, %v1531_v32  ;;  %v929_v40 = vpop.f32.mrb[13].mxu0  ;;  %v1185_v41 = vpop.f32.mrb[13].mxu1  ;;  %vm1406_vm12 = vcmp.ge.f32.partialorder %v938_v38, 0.0 }
 0x101   : > { %v1723_v37 = vsel %vm1467_vm9, %v1181_v23, %v1595_v33  ;;  %1788 = vst.msk [vmem:[%s2583_s30 + $0x58] sm:$0xff] %vm1776_vm2, %v1659_v36  ;;  %v1657_v42 = vsel %vm1401_vm10, %v917_v28, %v1529_v34  ;;  %v930_v44 = vadd.f32 %v2573_v4, %v929_v40  ;;  %v1186_v45 = vadd.f32 %v2573_v4, %v1185_v41  ;;  %v2192_v46 = vpop.f32.mrb[14].mxu0  ;;  %v2256_v47 = vpop.f32.mrb[14].mxu1 }
 0x102   : > { %1852 = vst.msk [vmem:[%s2583_s30 + $0x258] sm:$0xff] %vm1776_vm2, %v1723_v37  ;;  %v1721_v43 = vsel %vm1465_vm11, %v1173_v29, %v1593_v35  ;;  %1786 = vst.msk [vmem:[%s2583_s30 + $0x48] sm:$0xff] %vm1776_vm2, %v1657_v42  ;;  %v1534_v48 = vmul.f32 0.2, %v938_v38  ;;  %vm1470_vm13 = vcmp.ge.f32.partialorder %v1194_v39, 0.0  ;;  %v941_v54 = vadd.f32 %v2192_v46, %v2573_v4  ;;  %v932_v56 = vpop.f32.mrb[15].mxu0 }
 0x103   : > { %1850 = vst.msk [vmem:[%s2583_s30 + $0x248] sm:$0xff] %vm1776_vm2, %v1721_v43  ;;  %v1598_v49 = vmul.f32 0.2, %v1194_v39  ;;  %vm1404_vm14 = vcmp.ge.f32.partialorder %v930_v44, 0.0  ;;  %v1532_v50 = vmul.f32 0.2, %v930_v44  ;;  %v1197_v55 = vadd.f32 %v2256_v47, %v2573_v4 }
 0x104   : > { %vm1468_vm15 = vcmp.ge.f32.partialorder %v1186_v45, 0.0  ;;  %v1596_v51 = vmul.f32 0.2, %v1186_v45  ;;  %v1662_v52 = vsel %vm1406_vm12, %v938_v38, %v1534_v48  ;;  %v1188_v57 = vpop.f32.mrb[15].mxu1  ;;  %v933_v60 = vadd.f32 %v2573_v4, %v932_v56 }
 0x105   : > { %v1726_v53 = vsel %vm1470_vm13, %v1194_v39, %v1598_v49  ;;  %1791 = vst.msk [vmem:[%s2583_s30 + $0x70] sm:$0xff] %vm1776_vm2, %v1662_v52  ;;  %v1660_v58 = vsel %vm1404_vm14, %v930_v44, %v1532_v50  ;;  %v1189_v61 = vadd.f32 %v2573_v4, %v1188_v57  ;;  %v2195_v62 = vpop.f32.mrb[16].mxu0  ;;  %vm1407_vm0 = vcmp.ge.f32.partialorder %v941_v54, 0.0 }
 0x106   : > { %1855 = vst.msk [vmem:[%s2583_s30 + $0x270] sm:$0xff] %vm1776_vm2, %v1726_v53  ;;  %v1724_v59 = vsel %vm1468_vm15, %v1186_v45, %v1596_v51  ;;  %v2259_v63 = vpop.f32.mrb[16].mxu1  ;;  %1789 = vst.msk [vmem:[%s2583_s30 + $0x60] sm:$0xff] %vm1776_vm2, %v1660_v58  ;;  %v1535_v0 = vmul.f32 0.2, %v941_v54  ;;  %vm1471_vm1 = vcmp.ge.f32.partialorder %v1197_v55, 0.0  ;;  %v954_v7 = vadd.f32 %v2195_v62, %v2573_v4 }
 0x107   : > { %1853 = vst.msk [vmem:[%s2583_s30 + $0x260] sm:$0xff] %vm1776_vm2, %v1724_v59  ;;  %v1599_v1 = vmul.f32 0.2, %v1197_v55  ;;  %vm1405_vm3 = vcmp.ge.f32.partialorder %v933_v60, 0.0  ;;  %v1533_v2 = vmul.f32 0.2, %v933_v60  ;;  %v1210_v8 = vadd.f32 %v2259_v63, %v2573_v4 }
 0x108   : > { %vm1469_vm4 = vcmp.ge.f32.partialorder %v1189_v61, 0.0  ;;  %v1597_v3 = vmul.f32 0.2, %v1189_v61  ;;  %v1663_v5 = vsel %vm1407_vm0, %v941_v54, %v1535_v0  ;;  %v945_v9 = vpop.f32.mrb[17].mxu0  ;;  %v1201_v10 = vpop.f32.mrb[17].mxu1  ;;  %vm1410_vm5 = vcmp.ge.f32.partialorder %v954_v7, 0.0 }
 0x109   : > { %v1727_v6 = vsel %vm1471_vm1, %v1197_v55, %v1599_v1  ;;  %1792 = vst.msk [vmem:[%s2583_s30 + $0x78] sm:$0xff] %vm1776_vm2, %v1663_v5  ;;  %v1661_v11 = vsel %vm1405_vm3, %v933_v60, %v1533_v2  ;;  %v946_v13 = vadd.f32 %v2573_v4, %v945_v9  ;;  %v1202_v14 = vadd.f32 %v2573_v4, %v1201_v10  ;;  %v2196_v15 = vpop.f32.mrb[18].mxu0  ;;  %v2260_v16 = vpop.f32.mrb[18].mxu1 }
 0x10a   : > { %1856 = vst.msk [vmem:[%s2583_s30 + $0x278] sm:$0xff] %vm1776_vm2, %v1727_v6  ;;  %v1725_v12 = vsel %vm1469_vm4, %v1189_v61, %v1597_v3  ;;  %1790 = vst.msk [vmem:[%s2583_s30 + $0x68] sm:$0xff] %vm1776_vm2, %v1661_v11  ;;  %v1538_v17 = vmul.f32 0.2, %v954_v7  ;;  %vm1474_vm6 = vcmp.ge.f32.partialorder %v1210_v8, 0.0  ;;  %v957_v23 = vadd.f32 %v2196_v15, %v2573_v4  ;;  %v948_v25 = vpop.f32.mrb[19].mxu0 }
 0x10b   : > { %1854 = vst.msk [vmem:[%s2583_s30 + $0x268] sm:$0xff] %vm1776_vm2, %v1725_v12  ;;  %v1602_v18 = vmul.f32 0.2, %v1210_v8  ;;  %vm1408_vm7 = vcmp.ge.f32.partialorder %v946_v13, 0.0  ;;  %v1536_v19 = vmul.f32 0.2, %v946_v13  ;;  %v1213_v24 = vadd.f32 %v2260_v16, %v2573_v4 }
 0x10c   : > { %vm1472_vm8 = vcmp.ge.f32.partialorder %v1202_v14, 0.0  ;;  %v1600_v20 = vmul.f32 0.2, %v1202_v14  ;;  %v1666_v21 = vsel %vm1410_vm5, %v954_v7, %v1538_v17  ;;  %v1204_v26 = vpop.f32.mrb[19].mxu1  ;;  %v949_v29 = vadd.f32 %v2573_v4, %v948_v25 }
 0x10d   : > { %v1730_v22 = vsel %vm1474_vm6, %v1210_v8, %v1602_v18  ;;  %1795 = vst.msk [vmem:[%s2583_s30 + $0x90] sm:$0xff] %vm1776_vm2, %v1666_v21  ;;  %v1664_v27 = vsel %vm1408_vm7, %v946_v13, %v1536_v19  ;;  %v1205_v30 = vadd.f32 %v2573_v4, %v1204_v26  ;;  %v2199_v31 = vpop.f32.mrb[20].mxu0  ;;  %vm1411_vm9 = vcmp.ge.f32.partialorder %v957_v23, 0.0 }
 0x10e   : > { %1859 = vst.msk [vmem:[%s2583_s30 + $0x290] sm:$0xff] %vm1776_vm2, %v1730_v22  ;;  %v1728_v28 = vsel %vm1472_vm8, %v1202_v14, %v1600_v20  ;;  %v2263_v32 = vpop.f32.mrb[20].mxu1  ;;  %1793 = vst.msk [vmem:[%s2583_s30 + $0x80] sm:$0xff] %vm1776_vm2, %v1664_v27  ;;  %v1539_v33 = vmul.f32 0.2, %v957_v23  ;;  %vm1475_vm10 = vcmp.ge.f32.partialorder %v1213_v24, 0.0  ;;  %v970_v39 = vadd.f32 %v2199_v31, %v2573_v4 }
 0x10f   : > { %1857 = vst.msk [vmem:[%s2583_s30 + $0x280] sm:$0xff] %vm1776_vm2, %v1728_v28  ;;  %v1603_v34 = vmul.f32 0.2, %v1213_v24  ;;  %vm1409_vm11 = vcmp.ge.f32.partialorder %v949_v29, 0.0  ;;  %v1537_v35 = vmul.f32 0.2, %v949_v29  ;;  %v1226_v40 = vadd.f32 %v2263_v32, %v2573_v4 }
 0x110   : > { %vm1473_vm12 = vcmp.ge.f32.partialorder %v1205_v30, 0.0  ;;  %v1601_v36 = vmul.f32 0.2, %v1205_v30  ;;  %v1667_v37 = vsel %vm1411_vm9, %v957_v23, %v1539_v33  ;;  %v961_v41 = vpop.f32.mrb[21].mxu0  ;;  %v1217_v42 = vpop.f32.mrb[21].mxu1  ;;  %vm1414_vm13 = vcmp.ge.f32.partialorder %v970_v39, 0.0 }
 0x111   : > { %v1731_v38 = vsel %vm1475_vm10, %v1213_v24, %v1603_v34  ;;  %1796 = vst.msk [vmem:[%s2583_s30 + $0x98] sm:$0xff] %vm1776_vm2, %v1667_v37  ;;  %v1665_v43 = vsel %vm1409_vm11, %v949_v29, %v1537_v35  ;;  %v962_v45 = vadd.f32 %v2573_v4, %v961_v41  ;;  %v1218_v46 = vadd.f32 %v2573_v4, %v1217_v42  ;;  %v2200_v47 = vpop.f32.mrb[22].mxu0  ;;  %v2264_v48 = vpop.f32.mrb[22].mxu1 }
 0x112   : > { %1860 = vst.msk [vmem:[%s2583_s30 + $0x298] sm:$0xff] %vm1776_vm2, %v1731_v38  ;;  %v1729_v44 = vsel %vm1473_vm12, %v1205_v30, %v1601_v36  ;;  %1794 = vst.msk [vmem:[%s2583_s30 + $0x88] sm:$0xff] %vm1776_vm2, %v1665_v43  ;;  %v1542_v49 = vmul.f32 0.2, %v970_v39  ;;  %vm1478_vm14 = vcmp.ge.f32.partialorder %v1226_v40, 0.0  ;;  %v973_v55 = vadd.f32 %v2200_v47, %v2573_v4  ;;  %v964_v57 = vpop.f32.mrb[23].mxu0 }
 0x113   : > { %1858 = vst.msk [vmem:[%s2583_s30 + $0x288] sm:$0xff] %vm1776_vm2, %v1729_v44  ;;  %v1606_v50 = vmul.f32 0.2, %v1226_v40  ;;  %vm1412_vm15 = vcmp.ge.f32.partialorder %v962_v45, 0.0  ;;  %v1540_v51 = vmul.f32 0.2, %v962_v45  ;;  %v1229_v56 = vadd.f32 %v2264_v48, %v2573_v4 }
 0x114   : > { %vm1476_vm0 = vcmp.ge.f32.partialorder %v1218_v46, 0.0  ;;  %v1604_v52 = vmul.f32 0.2, %v1218_v46  ;;  %v1670_v53 = vsel %vm1414_vm13, %v970_v39, %v1542_v49  ;;  %v1220_v58 = vpop.f32.mrb[23].mxu1  ;;  %v965_v61 = vadd.f32 %v2573_v4, %v964_v57 }
 0x115   : > { %v1734_v54 = vsel %vm1478_vm14, %v1226_v40, %v1606_v50  ;;  %1799 = vst.msk [vmem:[%s2583_s30 + $0xb0] sm:$0xff] %vm1776_vm2, %v1670_v53  ;;  %v1668_v59 = vsel %vm1412_vm15, %v962_v45, %v1540_v51  ;;  %v1221_v62 = vadd.f32 %v2573_v4, %v1220_v58  ;;  %v2203_v63 = vpop.f32.mrb[24].mxu0  ;;  %vm1415_vm1 = vcmp.ge.f32.partialorder %v973_v55, 0.0 }
 0x116   : > { %1863 = vst.msk [vmem:[%s2583_s30 + $0x2b0] sm:$0xff] %vm1776_vm2, %v1734_v54  ;;  %v1732_v60 = vsel %vm1476_vm0, %v1218_v46, %v1604_v52  ;;  %v2267_v0 = vpop.f32.mrb[24].mxu1  ;;  %1797 = vst.msk [vmem:[%s2583_s30 + $0xa0] sm:$0xff] %vm1776_vm2, %v1668_v59  ;;  %v1543_v1 = vmul.f32 0.2, %v973_v55  ;;  %vm1479_vm3 = vcmp.ge.f32.partialorder %v1229_v56, 0.0  ;;  %v986_v8 = vadd.f32 %v2203_v63, %v2573_v4 }
 0x117   : > { %1861 = vst.msk [vmem:[%s2583_s30 + $0x2a0] sm:$0xff] %vm1776_vm2, %v1732_v60  ;;  %v1607_v2 = vmul.f32 0.2, %v1229_v56  ;;  %vm1413_vm4 = vcmp.ge.f32.partialorder %v965_v61, 0.0  ;;  %v1541_v3 = vmul.f32 0.2, %v965_v61  ;;  %v1242_v9 = vadd.f32 %v2267_v0, %v2573_v4 }
 0x118   : > { %vm1477_vm5 = vcmp.ge.f32.partialorder %v1221_v62, 0.0  ;;  %v1605_v5 = vmul.f32 0.2, %v1221_v62  ;;  %v1671_v6 = vsel %vm1415_vm1, %v973_v55, %v1543_v1  ;;  %v977_v10 = vpop.f32.mrb[25].mxu0  ;;  %v1233_v11 = vpop.f32.mrb[25].mxu1  ;;  %vm1418_vm6 = vcmp.ge.f32.partialorder %v986_v8, 0.0 }
 0x119   : > { %v1735_v7 = vsel %vm1479_vm3, %v1229_v56, %v1607_v2  ;;  %1800 = vst.msk [vmem:[%s2583_s30 + $0xb8] sm:$0xff] %vm1776_vm2, %v1671_v6  ;;  %v1669_v12 = vsel %vm1413_vm4, %v965_v61, %v1541_v3  ;;  %v978_v14 = vadd.f32 %v2573_v4, %v977_v10  ;;  %v1234_v15 = vadd.f32 %v2573_v4, %v1233_v11  ;;  %v2204_v16 = vpop.f32.mrb[26].mxu0  ;;  %v2268_v17 = vpop.f32.mrb[26].mxu1 }
 0x11a   : > { %1864 = vst.msk [vmem:[%s2583_s30 + $0x2b8] sm:$0xff] %vm1776_vm2, %v1735_v7  ;;  %v1733_v13 = vsel %vm1477_vm5, %v1221_v62, %v1605_v5  ;;  %1798 = vst.msk [vmem:[%s2583_s30 + $0xa8] sm:$0xff] %vm1776_vm2, %v1669_v12  ;;  %v1546_v18 = vmul.f32 0.2, %v986_v8  ;;  %vm1482_vm7 = vcmp.ge.f32.partialorder %v1242_v9, 0.0  ;;  %v989_v24 = vadd.f32 %v2204_v16, %v2573_v4  ;;  %v980_v26 = vpop.f32.mrb[27].mxu0 }
 0x11b   : > { %1862 = vst.msk [vmem:[%s2583_s30 + $0x2a8] sm:$0xff] %vm1776_vm2, %v1733_v13  ;;  %v1610_v19 = vmul.f32 0.2, %v1242_v9  ;;  %vm1416_vm8 = vcmp.ge.f32.partialorder %v978_v14, 0.0  ;;  %v1544_v20 = vmul.f32 0.2, %v978_v14  ;;  %v1245_v25 = vadd.f32 %v2268_v17, %v2573_v4 }
 0x11c   : > { %vm1480_vm9 = vcmp.ge.f32.partialorder %v1234_v15, 0.0  ;;  %v1608_v21 = vmul.f32 0.2, %v1234_v15  ;;  %v1674_v22 = vsel %vm1418_vm6, %v986_v8, %v1546_v18  ;;  %v1236_v27 = vpop.f32.mrb[27].mxu1  ;;  %v981_v30 = vadd.f32 %v2573_v4, %v980_v26 }
 0x11d   : > { %v1738_v23 = vsel %vm1482_vm7, %v1242_v9, %v1610_v19  ;;  %1803 = vst.msk [vmem:[%s2583_s30 + $0xd0] sm:$0xff] %vm1776_vm2, %v1674_v22  ;;  %v1672_v28 = vsel %vm1416_vm8, %v978_v14, %v1544_v20  ;;  %v1237_v31 = vadd.f32 %v2573_v4, %v1236_v27  ;;  %v2207_v32 = vpop.f32.mrb[28].mxu0  ;;  %vm1419_vm10 = vcmp.ge.f32.partialorder %v989_v24, 0.0 }
 0x11e   : > { %1867 = vst.msk [vmem:[%s2583_s30 + $0x2d0] sm:$0xff] %vm1776_vm2, %v1738_v23  ;;  %v1736_v29 = vsel %vm1480_vm9, %v1234_v15, %v1608_v21  ;;  %v2271_v33 = vpop.f32.mrb[28].mxu1  ;;  %1801 = vst.msk [vmem:[%s2583_s30 + $0xc0] sm:$0xff] %vm1776_vm2, %v1672_v28  ;;  %v1547_v34 = vmul.f32 0.2, %v989_v24  ;;  %vm1483_vm11 = vcmp.ge.f32.partialorder %v1245_v25, 0.0  ;;  %v1002_v40 = vadd.f32 %v2207_v32, %v2573_v4 }
 0x11f   : > { %1865 = vst.msk [vmem:[%s2583_s30 + $0x2c0] sm:$0xff] %vm1776_vm2, %v1736_v29  ;;  %v1611_v35 = vmul.f32 0.2, %v1245_v25  ;;  %vm1417_vm12 = vcmp.ge.f32.partialorder %v981_v30, 0.0  ;;  %v1545_v36 = vmul.f32 0.2, %v981_v30  ;;  %v1258_v41 = vadd.f32 %v2271_v33, %v2573_v4 }
 0x120   : > { %vm1481_vm13 = vcmp.ge.f32.partialorder %v1237_v31, 0.0  ;;  %v1609_v37 = vmul.f32 0.2, %v1237_v31  ;;  %v1675_v38 = vsel %vm1419_vm10, %v989_v24, %v1547_v34  ;;  %v993_v42 = vpop.f32.mrb[29].mxu0  ;;  %v1249_v43 = vpop.f32.mrb[29].mxu1  ;;  %vm1422_vm14 = vcmp.ge.f32.partialorder %v1002_v40, 0.0 }
 0x121   : > { %v1739_v39 = vsel %vm1483_vm11, %v1245_v25, %v1611_v35  ;;  %1804 = vst.msk [vmem:[%s2583_s30 + $0xd8] sm:$0xff] %vm1776_vm2, %v1675_v38  ;;  %v1673_v44 = vsel %vm1417_vm12, %v981_v30, %v1545_v36  ;;  %v994_v46 = vadd.f32 %v2573_v4, %v993_v42  ;;  %v1250_v47 = vadd.f32 %v2573_v4, %v1249_v43  ;;  %v2208_v48 = vpop.f32.mrb[30].mxu0  ;;  %v2272_v49 = vpop.f32.mrb[30].mxu1 }
 0x122   : > { %1868 = vst.msk [vmem:[%s2583_s30 + $0x2d8] sm:$0xff] %vm1776_vm2, %v1739_v39  ;;  %v1737_v45 = vsel %vm1481_vm13, %v1237_v31, %v1609_v37  ;;  %1802 = vst.msk [vmem:[%s2583_s30 + $0xc8] sm:$0xff] %vm1776_vm2, %v1673_v44  ;;  %v1550_v50 = vmul.f32 0.2, %v1002_v40  ;;  %vm1486_vm15 = vcmp.ge.f32.partialorder %v1258_v41, 0.0  ;;  %v1005_v56 = vadd.f32 %v2208_v48, %v2573_v4  ;;  %v996_v58 = vpop.f32.mrb[31].mxu0 }
 0x123   : > { %1866 = vst.msk [vmem:[%s2583_s30 + $0x2c8] sm:$0xff] %vm1776_vm2, %v1737_v45  ;;  %v1614_v51 = vmul.f32 0.2, %v1258_v41  ;;  %vm1420_vm0 = vcmp.ge.f32.partialorder %v994_v46, 0.0  ;;  %v1548_v52 = vmul.f32 0.2, %v994_v46  ;;  %v1261_v57 = vadd.f32 %v2272_v49, %v2573_v4 }
 0x124   : > { %vm1484_vm1 = vcmp.ge.f32.partialorder %v1250_v47, 0.0  ;;  %v1612_v53 = vmul.f32 0.2, %v1250_v47  ;;  %v1678_v54 = vsel %vm1422_vm14, %v1002_v40, %v1550_v50  ;;  %v1252_v59 = vpop.f32.mrb[31].mxu1  ;;  %v997_v62 = vadd.f32 %v2573_v4, %v996_v58 }
 0x125   : > { %v1742_v55 = vsel %vm1486_vm15, %v1258_v41, %v1614_v51  ;;  %1807 = vst.msk [vmem:[%s2583_s30 + $0xf0] sm:$0xff] %vm1776_vm2, %v1678_v54  ;;  %v1676_v60 = vsel %vm1420_vm0, %v994_v46, %v1548_v52  ;;  %v1253_v63 = vadd.f32 %v2573_v4, %v1252_v59  ;;  %v2211_v0 = vpop.f32.mrb[32].mxu0  ;;  %vm1423_vm3 = vcmp.ge.f32.partialorder %v1005_v56, 0.0 }
 0x126   : > { %1871 = vst.msk [vmem:[%s2583_s30 + $0x2f0] sm:$0xff] %vm1776_vm2, %v1742_v55  ;;  %v1740_v61 = vsel %vm1484_vm1, %v1250_v47, %v1612_v53  ;;  %v2275_v1 = vpop.f32.mrb[32].mxu1  ;;  %1805 = vst.msk [vmem:[%s2583_s30 + $0xe0] sm:$0xff] %vm1776_vm2, %v1676_v60  ;;  %v1551_v2 = vmul.f32 0.2, %v1005_v56  ;;  %vm1487_vm4 = vcmp.ge.f32.partialorder %v1261_v57, 0.0  ;;  %v1018_v9 = vadd.f32 %v2211_v0, %v2573_v4 }
 0x127   : > { %1869 = vst.msk [vmem:[%s2583_s30 + $0x2e0] sm:$0xff] %vm1776_vm2, %v1740_v61  ;;  %v1615_v3 = vmul.f32 0.2, %v1261_v57  ;;  %vm1421_vm5 = vcmp.ge.f32.partialorder %v997_v62, 0.0  ;;  %v1549_v5 = vmul.f32 0.2, %v997_v62  ;;  %v1274_v10 = vadd.f32 %v2275_v1, %v2573_v4 }
 0x128   : > { %vm1485_vm6 = vcmp.ge.f32.partialorder %v1253_v63, 0.0  ;;  %v1613_v6 = vmul.f32 0.2, %v1253_v63  ;;  %v1679_v7 = vsel %vm1423_vm3, %v1005_v56, %v1551_v2  ;;  %v1009_v11 = vpop.f32.mrb[33].mxu0  ;;  %v1265_v12 = vpop.f32.mrb[33].mxu1  ;;  %vm1426_vm7 = vcmp.ge.f32.partialorder %v1018_v9, 0.0 }
 0x129   : > { %v1743_v8 = vsel %vm1487_vm4, %v1261_v57, %v1615_v3  ;;  %1808 = vst.msk [vmem:[%s2583_s30 + $0xf8] sm:$0xff] %vm1776_vm2, %v1679_v7  ;;  %v1677_v13 = vsel %vm1421_vm5, %v997_v62, %v1549_v5  ;;  %v1010_v15 = vadd.f32 %v2573_v4, %v1009_v11  ;;  %v1266_v16 = vadd.f32 %v2573_v4, %v1265_v12  ;;  %v2212_v17 = vpop.f32.mrb[34].mxu0  ;;  %v2276_v18 = vpop.f32.mrb[34].mxu1 }
 0x12a   : > { %1872 = vst.msk [vmem:[%s2583_s30 + $0x2f8] sm:$0xff] %vm1776_vm2, %v1743_v8  ;;  %v1741_v14 = vsel %vm1485_vm6, %v1253_v63, %v1613_v6  ;;  %1806 = vst.msk [vmem:[%s2583_s30 + $0xe8] sm:$0xff] %vm1776_vm2, %v1677_v13  ;;  %v1554_v19 = vmul.f32 0.2, %v1018_v9  ;;  %vm1490_vm8 = vcmp.ge.f32.partialorder %v1274_v10, 0.0  ;;  %v1021_v25 = vadd.f32 %v2212_v17, %v2573_v4  ;;  %v1012_v27 = vpop.f32.mrb[35].mxu0 }
 0x12b   : > { %1870 = vst.msk [vmem:[%s2583_s30 + $0x2e8] sm:$0xff] %vm1776_vm2, %v1741_v14  ;;  %v1618_v20 = vmul.f32 0.2, %v1274_v10  ;;  %vm1424_vm9 = vcmp.ge.f32.partialorder %v1010_v15, 0.0  ;;  %v1552_v21 = vmul.f32 0.2, %v1010_v15  ;;  %v1277_v26 = vadd.f32 %v2276_v18, %v2573_v4 }
 0x12c   : > { %vm1488_vm10 = vcmp.ge.f32.partialorder %v1266_v16, 0.0  ;;  %v1616_v22 = vmul.f32 0.2, %v1266_v16  ;;  %v1682_v23 = vsel %vm1426_vm7, %v1018_v9, %v1554_v19  ;;  %v1268_v28 = vpop.f32.mrb[35].mxu1  ;;  %v1013_v31 = vadd.f32 %v2573_v4, %v1012_v27 }
 0x12d   : > { %v1746_v24 = vsel %vm1490_vm8, %v1274_v10, %v1618_v20  ;;  %1811 = vst.msk [vmem:[%s2583_s30 + $0x110] sm:$0xff] %vm1776_vm2, %v1682_v23  ;;  %v1680_v29 = vsel %vm1424_vm9, %v1010_v15, %v1552_v21  ;;  %v1269_v32 = vadd.f32 %v2573_v4, %v1268_v28  ;;  %v2215_v33 = vpop.f32.mrb[36].mxu0  ;;  %vm1427_vm11 = vcmp.ge.f32.partialorder %v1021_v25, 0.0 }
 0x12e   : > { %1875 = vst.msk [vmem:[%s2583_s30 + $0x310] sm:$0xff] %vm1776_vm2, %v1746_v24  ;;  %v1744_v30 = vsel %vm1488_vm10, %v1266_v16, %v1616_v22  ;;  %v2279_v34 = vpop.f32.mrb[36].mxu1  ;;  %1809 = vst.msk [vmem:[%s2583_s30 + $0x100] sm:$0xff] %vm1776_vm2, %v1680_v29  ;;  %v1555_v35 = vmul.f32 0.2, %v1021_v25  ;;  %vm1491_vm12 = vcmp.ge.f32.partialorder %v1277_v26, 0.0  ;;  %v1034_v41 = vadd.f32 %v2215_v33, %v2573_v4 }
 0x12f   : > { %1873 = vst.msk [vmem:[%s2583_s30 + $0x300] sm:$0xff] %vm1776_vm2, %v1744_v30  ;;  %v1619_v36 = vmul.f32 0.2, %v1277_v26  ;;  %vm1425_vm13 = vcmp.ge.f32.partialorder %v1013_v31, 0.0  ;;  %v1553_v37 = vmul.f32 0.2, %v1013_v31  ;;  %v1290_v42 = vadd.f32 %v2279_v34, %v2573_v4 }
 0x130   : > { %vm1489_vm14 = vcmp.ge.f32.partialorder %v1269_v32, 0.0  ;;  %v1617_v38 = vmul.f32 0.2, %v1269_v32  ;;  %v1683_v39 = vsel %vm1427_vm11, %v1021_v25, %v1555_v35  ;;  %v1025_v43 = vpop.f32.mrb[37].mxu0  ;;  %v1281_v44 = vpop.f32.mrb[37].mxu1  ;;  %vm1430_vm15 = vcmp.ge.f32.partialorder %v1034_v41, 0.0 }
 0x131   : > { %v1747_v40 = vsel %vm1491_vm12, %v1277_v26, %v1619_v36  ;;  %1812 = vst.msk [vmem:[%s2583_s30 + $0x118] sm:$0xff] %vm1776_vm2, %v1683_v39  ;;  %v1681_v45 = vsel %vm1425_vm13, %v1013_v31, %v1553_v37  ;;  %v1026_v47 = vadd.f32 %v2573_v4, %v1025_v43  ;;  %v1282_v48 = vadd.f32 %v2573_v4, %v1281_v44  ;;  %v2216_v49 = vpop.f32.mrb[38].mxu0  ;;  %v2280_v50 = vpop.f32.mrb[38].mxu1 }
 0x132   : > { %1876 = vst.msk [vmem:[%s2583_s30 + $0x318] sm:$0xff] %vm1776_vm2, %v1747_v40  ;;  %v1745_v46 = vsel %vm1489_vm14, %v1269_v32, %v1617_v38  ;;  %1810 = vst.msk [vmem:[%s2583_s30 + $0x108] sm:$0xff] %vm1776_vm2, %v1681_v45  ;;  %v1558_v51 = vmul.f32 0.2, %v1034_v41  ;;  %vm1494_vm0 = vcmp.ge.f32.partialorder %v1290_v42, 0.0  ;;  %v1037_v57 = vadd.f32 %v2216_v49, %v2573_v4  ;;  %v1028_v59 = vpop.f32.mrb[39].mxu0 }
 0x133   : > { %1874 = vst.msk [vmem:[%s2583_s30 + $0x308] sm:$0xff] %vm1776_vm2, %v1745_v46  ;;  %v1622_v52 = vmul.f32 0.2, %v1290_v42  ;;  %vm1428_vm1 = vcmp.ge.f32.partialorder %v1026_v47, 0.0  ;;  %v1556_v53 = vmul.f32 0.2, %v1026_v47  ;;  %v1293_v58 = vadd.f32 %v2280_v50, %v2573_v4 }
 0x134   : > { %vm1492_vm3 = vcmp.ge.f32.partialorder %v1282_v48, 0.0  ;;  %v1620_v54 = vmul.f32 0.2, %v1282_v48  ;;  %v1686_v55 = vsel %vm1430_vm15, %v1034_v41, %v1558_v51  ;;  %v1284_v60 = vpop.f32.mrb[39].mxu1  ;;  %v1029_v63 = vadd.f32 %v2573_v4, %v1028_v59  ;;  %v2834_v32 = vld [vmem:[%s2975_s2] ss:$0 sm:$0xff] }
 0x135   : > { %v1750_v56 = vsel %vm1494_vm0, %v1290_v42, %v1622_v52  ;;  %1815 = vst.msk [vmem:[%s2583_s30 + $0x130] sm:$0xff] %vm1776_vm2, %v1686_v55  ;;  %v1684_v61 = vsel %vm1428_vm1, %v1026_v47, %v1556_v53  ;;  %v1285_v0 = vadd.f32 %v2573_v4, %v1284_v60  ;;  %v2219_v1 = vpop.f32.mrb[40].mxu0  ;;  %vm1431_vm4 = vcmp.ge.f32.partialorder %v1037_v57, 0.0 }
 0x136   : > { %1879 = vst.msk [vmem:[%s2583_s30 + $0x330] sm:$0xff] %vm1776_vm2, %v1750_v56  ;;  %v1748_v62 = vsel %vm1492_vm3, %v1282_v48, %v1620_v54  ;;  %v2283_v2 = vpop.f32.mrb[40].mxu1  ;;  %1813 = vst.msk [vmem:[%s2583_s30 + $0x120] sm:$0xff] %vm1776_vm2, %v1684_v61  ;;  %v1559_v3 = vmul.f32 0.2, %v1037_v57  ;;  %vm1495_vm5 = vcmp.ge.f32.partialorder %v1293_v58, 0.0  ;;  %v1050_v10 = vadd.f32 %v2219_v1, %v2573_v4 }
 0x137   : > { %1877 = vst.msk [vmem:[%s2583_s30 + $0x320] sm:$0xff] %vm1776_vm2, %v1748_v62  ;;  %v1623_v5 = vmul.f32 0.2, %v1293_v58  ;;  %vm1429_vm6 = vcmp.ge.f32.partialorder %v1029_v63, 0.0  ;;  %v1557_v6 = vmul.f32 0.2, %v1029_v63  ;;  %v1306_v11 = vadd.f32 %v2283_v2, %v2573_v4 }
 0x138   : > { %vm1493_vm7 = vcmp.ge.f32.partialorder %v1285_v0, 0.0  ;;  %v1621_v7 = vmul.f32 0.2, %v1285_v0  ;;  %v1687_v8 = vsel %vm1431_vm4, %v1037_v57, %v1559_v3  ;;  %v1041_v12 = vpop.f32.mrb[41].mxu0  ;;  %v1297_v13 = vpop.f32.mrb[41].mxu1  ;;  %vm1434_vm8 = vcmp.ge.f32.partialorder %v1050_v10, 0.0 }
 0x139   : > { %v1751_v9 = vsel %vm1495_vm5, %v1293_v58, %v1623_v5  ;;  %1816 = vst.msk [vmem:[%s2583_s30 + $0x138] sm:$0xff] %vm1776_vm2, %v1687_v8  ;;  %v1685_v14 = vsel %vm1429_vm6, %v1029_v63, %v1557_v6  ;;  %v1042_v16 = vadd.f32 %v2573_v4, %v1041_v12  ;;  %v1298_v17 = vadd.f32 %v2573_v4, %v1297_v13  ;;  %v2220_v18 = vpop.f32.mrb[42].mxu0  ;;  %v2284_v19 = vpop.f32.mrb[42].mxu1 }
 0x13a   : > { %1880 = vst.msk [vmem:[%s2583_s30 + $0x338] sm:$0xff] %vm1776_vm2, %v1751_v9  ;;  %v1749_v15 = vsel %vm1493_vm7, %v1285_v0, %v1621_v7  ;;  %1814 = vst.msk [vmem:[%s2583_s30 + $0x128] sm:$0xff] %vm1776_vm2, %v1685_v14  ;;  %v1562_v20 = vmul.f32 0.2, %v1050_v10  ;;  %vm1498_vm9 = vcmp.ge.f32.partialorder %v1306_v11, 0.0  ;;  %v1053_v26 = vadd.f32 %v2220_v18, %v2573_v4  ;;  %v1044_v28 = vpop.f32.mrb[43].mxu0 }
 0x13b   : > { %1878 = vst.msk [vmem:[%s2583_s30 + $0x328] sm:$0xff] %vm1776_vm2, %v1749_v15  ;;  %v1626_v21 = vmul.f32 0.2, %v1306_v11  ;;  %vm1432_vm10 = vcmp.ge.f32.partialorder %v1042_v16, 0.0  ;;  %v1560_v22 = vmul.f32 0.2, %v1042_v16  ;;  %v1309_v27 = vadd.f32 %v2284_v19, %v2573_v4 }
 0x13c   : > { %vm1496_vm11 = vcmp.ge.f32.partialorder %v1298_v17, 0.0  ;;  %v1624_v23 = vmul.f32 0.2, %v1298_v17  ;;  %v1690_v24 = vsel %vm1434_vm8, %v1050_v10, %v1562_v20  ;;  %v1300_v29 = vpop.f32.mrb[43].mxu1  ;;  %v1045_v33 = vadd.f32 %v2834_v32, %v1044_v28 }
 0x13d   : > { %v1754_v25 = vsel %vm1498_vm9, %v1306_v11, %v1626_v21  ;;  %1819 = vst.msk [vmem:[%s2583_s30 + $0x150] sm:$0xff] %vm1776_vm2, %v1690_v24  ;;  %v1688_v30 = vsel %vm1432_vm10, %v1042_v16, %v1560_v22  ;;  %v1301_v34 = vadd.f32 %v2834_v32, %v1300_v29  ;;  %v2223_v35 = vpop.f32.mrb[44].mxu0  ;;  %vm1435_vm12 = vcmp.ge.f32.partialorder %v1053_v26, 0.0 }
 0x13e   : > { %1883 = vst.msk [vmem:[%s2583_s30 + $0x350] sm:$0xff] %vm1776_vm2, %v1754_v25  ;;  %v1752_v31 = vsel %vm1496_vm11, %v1298_v17, %v1624_v23  ;;  %v2287_v36 = vpop.f32.mrb[44].mxu1  ;;  %1817 = vst.msk [vmem:[%s2583_s30 + $0x140] sm:$0xff] %vm1776_vm2, %v1688_v30  ;;  %v1563_v4 = vmul.f32 0.2, %v1053_v26  ;;  %vm1499_vm13 = vcmp.ge.f32.partialorder %v1309_v27, 0.0  ;;  %v1066_v42 = vadd.f32 %v2834_v32, %v2223_v35 }
 0x13f   : > { %1881 = vst.msk [vmem:[%s2583_s30 + $0x340] sm:$0xff] %vm1776_vm2, %v1752_v31  ;;  %v1627_v37 = vmul.f32 0.2, %v1309_v27  ;;  %vm1433_vm14 = vcmp.ge.f32.partialorder %v1045_v33, 0.0  ;;  %v1561_v38 = vmul.f32 0.2, %v1045_v33  ;;  %v1322_v43 = vadd.f32 %v2834_v32, %v2287_v36 }
 0x140   : > { %vm1497_vm15 = vcmp.ge.f32.partialorder %v1301_v34, 0.0  ;;  %v1625_v39 = vmul.f32 0.2, %v1301_v34  ;;  %v1691_v40 = vsel %vm1435_vm12, %v1053_v26, %v1563_v4  ;;  %v1057_v44 = vpop.f32.mrb[45].mxu0  ;;  %v1313_v45 = vpop.f32.mrb[45].mxu1  ;;  %vm1438_vm0 = vcmp.ge.f32.partialorder %v1066_v42, 0.0 }
 0x141   : > { %v1755_v41 = vsel %vm1499_vm13, %v1309_v27, %v1627_v37  ;;  %1820 = vst.msk [vmem:[%s2583_s30 + $0x158] sm:$0xff] %vm1776_vm2, %v1691_v40  ;;  %v1689_v46 = vsel %vm1433_vm14, %v1045_v33, %v1561_v38  ;;  %v1058_v48 = vadd.f32 %v2834_v32, %v1057_v44  ;;  %v1314_v49 = vadd.f32 %v2834_v32, %v1313_v45  ;;  %v2224_v50 = vpop.f32.mrb[46].mxu0  ;;  %v2288_v51 = vpop.f32.mrb[46].mxu1 }
 0x142   : > { %1884 = vst.msk [vmem:[%s2583_s30 + $0x358] sm:$0xff] %vm1776_vm2, %v1755_v41  ;;  %v1753_v47 = vsel %vm1497_vm15, %v1301_v34, %v1625_v39  ;;  %1818 = vst.msk [vmem:[%s2583_s30 + $0x148] sm:$0xff] %vm1776_vm2, %v1689_v46  ;;  %v1566_v52 = vmul.f32 0.2, %v1066_v42  ;;  %vm1502_vm1 = vcmp.ge.f32.partialorder %v1322_v43, 0.0  ;;  %v1069_v58 = vadd.f32 %v2834_v32, %v2224_v50  ;;  %v1060_v60 = vpop.f32.mrb[47].mxu0 }
 0x143   : > { %1882 = vst.msk [vmem:[%s2583_s30 + $0x348] sm:$0xff] %vm1776_vm2, %v1753_v47  ;;  %v1630_v53 = vmul.f32 0.2, %v1322_v43  ;;  %vm1436_vm3 = vcmp.ge.f32.partialorder %v1058_v48, 0.0  ;;  %v1564_v54 = vmul.f32 0.2, %v1058_v48  ;;  %v1325_v59 = vadd.f32 %v2834_v32, %v2288_v51 }
 0x144   : > { %vm1500_vm4 = vcmp.ge.f32.partialorder %v1314_v49, 0.0  ;;  %v1628_v55 = vmul.f32 0.2, %v1314_v49  ;;  %v1694_v56 = vsel %vm1438_vm0, %v1066_v42, %v1566_v52  ;;  %v1316_v61 = vpop.f32.mrb[47].mxu1  ;;  %v1061_v0 = vadd.f32 %v2834_v32, %v1060_v60 }
 0x145   : > { %v1758_v57 = vsel %vm1502_vm1, %v1322_v43, %v1630_v53  ;;  %1823 = vst.msk [vmem:[%s2583_s30 + $0x170] sm:$0xff] %vm1776_vm2, %v1694_v56  ;;  %v1692_v62 = vsel %vm1436_vm3, %v1058_v48, %v1564_v54  ;;  %v1317_v1 = vadd.f32 %v2834_v32, %v1316_v61  ;;  %v2227_v2 = vpop.f32.mrb[48].mxu0  ;;  %vm1439_vm5 = vcmp.ge.f32.partialorder %v1069_v58, 0.0 }
 0x146   : > { %1887 = vst.msk [vmem:[%s2583_s30 + $0x370] sm:$0xff] %vm1776_vm2, %v1758_v57  ;;  %v1756_v63 = vsel %vm1500_vm4, %v1314_v49, %v1628_v55  ;;  %v2291_v3 = vpop.f32.mrb[48].mxu1  ;;  %1821 = vst.msk [vmem:[%s2583_s30 + $0x160] sm:$0xff] %vm1776_vm2, %v1692_v62  ;;  %v1567_v5 = vmul.f32 0.2, %v1069_v58  ;;  %vm1503_vm6 = vcmp.ge.f32.partialorder %v1325_v59, 0.0  ;;  %v1082_v11 = vadd.f32 %v2834_v32, %v2227_v2 }
 0x147   : > { %1885 = vst.msk [vmem:[%s2583_s30 + $0x360] sm:$0xff] %vm1776_vm2, %v1756_v63  ;;  %v1631_v6 = vmul.f32 0.2, %v1325_v59  ;;  %vm1437_vm7 = vcmp.ge.f32.partialorder %v1061_v0, 0.0  ;;  %v1565_v7 = vmul.f32 0.2, %v1061_v0  ;;  %v1338_v12 = vadd.f32 %v2834_v32, %v2291_v3 }
 0x148   : > { %vm1501_vm8 = vcmp.ge.f32.partialorder %v1317_v1, 0.0  ;;  %v1629_v8 = vmul.f32 0.2, %v1317_v1  ;;  %v1695_v9 = vsel %vm1439_vm5, %v1069_v58, %v1567_v5  ;;  %v1073_v13 = vpop.f32.mrb[49].mxu0  ;;  %v1329_v14 = vpop.f32.mrb[49].mxu1  ;;  %vm1442_vm9 = vcmp.ge.f32.partialorder %v1082_v11, 0.0 }
 0x149   : > { %v1759_v10 = vsel %vm1503_vm6, %v1325_v59, %v1631_v6  ;;  %1824 = vst.msk [vmem:[%s2583_s30 + $0x178] sm:$0xff] %vm1776_vm2, %v1695_v9  ;;  %v1693_v15 = vsel %vm1437_vm7, %v1061_v0, %v1565_v7  ;;  %v1074_v17 = vadd.f32 %v2834_v32, %v1073_v13  ;;  %v1330_v18 = vadd.f32 %v2834_v32, %v1329_v14  ;;  %v2228_v19 = vpop.f32.mrb[50].mxu0  ;;  %v2292_v20 = vpop.f32.mrb[50].mxu1 }
 0x14a   : > { %1888 = vst.msk [vmem:[%s2583_s30 + $0x378] sm:$0xff] %vm1776_vm2, %v1759_v10  ;;  %v1757_v16 = vsel %vm1501_vm8, %v1317_v1, %v1629_v8  ;;  %1822 = vst.msk [vmem:[%s2583_s30 + $0x168] sm:$0xff] %vm1776_vm2, %v1693_v15  ;;  %v1570_v21 = vmul.f32 0.2, %v1082_v11  ;;  %vm1506_vm10 = vcmp.ge.f32.partialorder %v1338_v12, 0.0  ;;  %v1085_v27 = vadd.f32 %v2834_v32, %v2228_v19  ;;  %v1076_v29 = vpop.f32.mrb[51].mxu0 }
 0x14b   : > { %1886 = vst.msk [vmem:[%s2583_s30 + $0x368] sm:$0xff] %vm1776_vm2, %v1757_v16  ;;  %v1634_v22 = vmul.f32 0.2, %v1338_v12  ;;  %vm1440_vm11 = vcmp.ge.f32.partialorder %v1074_v17, 0.0  ;;  %v1568_v23 = vmul.f32 0.2, %v1074_v17  ;;  %v1341_v28 = vadd.f32 %v2834_v32, %v2292_v20 }
 0x14c   : > { %vm1504_vm12 = vcmp.ge.f32.partialorder %v1330_v18, 0.0  ;;  %v1632_v24 = vmul.f32 0.2, %v1330_v18  ;;  %v1698_v25 = vsel %vm1442_vm9, %v1082_v11, %v1570_v21  ;;  %v1332_v30 = vpop.f32.mrb[51].mxu1  ;;  %v1077_v34 = vadd.f32 %v2834_v32, %v1076_v29 }
 0x14d   : > { %v1762_v26 = vsel %vm1506_vm10, %v1338_v12, %v1634_v22  ;;  %1827 = vst.msk [vmem:[%s2583_s30 + $0x190] sm:$0xff] %vm1776_vm2, %v1698_v25  ;;  %v1696_v31 = vsel %vm1440_vm11, %v1074_v17, %v1568_v23  ;;  %v1333_v35 = vadd.f32 %v2834_v32, %v1332_v30  ;;  %v2231_v36 = vpop.f32.mrb[52].mxu0  ;;  %vm1443_vm13 = vcmp.ge.f32.partialorder %v1085_v27, 0.0 }
 0x14e   : > { %1891 = vst.msk [vmem:[%s2583_s30 + $0x390] sm:$0xff] %vm1776_vm2, %v1762_v26  ;;  %v1760_v33 = vsel %vm1504_vm12, %v1330_v18, %v1632_v24  ;;  %v2295_v4 = vpop.f32.mrb[52].mxu1  ;;  %1825 = vst.msk [vmem:[%s2583_s30 + $0x180] sm:$0xff] %vm1776_vm2, %v1696_v31  ;;  %v1571_v37 = vmul.f32 0.2, %v1085_v27  ;;  %vm1507_vm14 = vcmp.ge.f32.partialorder %v1341_v28, 0.0  ;;  %v1098_v43 = vadd.f32 %v2834_v32, %v2231_v36 }
 0x14f   : > { %1889 = vst.msk [vmem:[%s2583_s30 + $0x380] sm:$0xff] %vm1776_vm2, %v1760_v33  ;;  %v1635_v38 = vmul.f32 0.2, %v1341_v28  ;;  %vm1441_vm15 = vcmp.ge.f32.partialorder %v1077_v34, 0.0  ;;  %v1569_v39 = vmul.f32 0.2, %v1077_v34  ;;  %v1354_v44 = vadd.f32 %v2834_v32, %v2295_v4 }
 0x150   : > { %vm1505_vm0 = vcmp.ge.f32.partialorder %v1333_v35, 0.0  ;;  %v1633_v40 = vmul.f32 0.2, %v1333_v35  ;;  %v1699_v41 = vsel %vm1443_vm13, %v1085_v27, %v1571_v37  ;;  %v1089_v45 = vpop.f32.mrb[53].mxu0  ;;  %v1345_v46 = vpop.f32.mrb[53].mxu1  ;;  %vm1446_vm1 = vcmp.ge.f32.partialorder %v1098_v43, 0.0 }
 0x151   : > { %v1763_v42 = vsel %vm1507_vm14, %v1341_v28, %v1635_v38  ;;  %1828 = vst.msk [vmem:[%s2583_s30 + $0x198] sm:$0xff] %vm1776_vm2, %v1699_v41  ;;  %v1697_v47 = vsel %vm1441_vm15, %v1077_v34, %v1569_v39  ;;  %v1090_v49 = vadd.f32 %v2834_v32, %v1089_v45  ;;  %v1346_v50 = vadd.f32 %v2834_v32, %v1345_v46  ;;  %v2232_v51 = vpop.f32.mrb[54].mxu0  ;;  %v2296_v52 = vpop.f32.mrb[54].mxu1 }
 0x152   : > { %1892 = vst.msk [vmem:[%s2583_s30 + $0x398] sm:$0xff] %vm1776_vm2, %v1763_v42  ;;  %v1761_v48 = vsel %vm1505_vm0, %v1333_v35, %v1633_v40  ;;  %1826 = vst.msk [vmem:[%s2583_s30 + $0x188] sm:$0xff] %vm1776_vm2, %v1697_v47  ;;  %v1574_v53 = vmul.f32 0.2, %v1098_v43  ;;  %vm1510_vm3 = vcmp.ge.f32.partialorder %v1354_v44, 0.0  ;;  %v1101_v59 = vadd.f32 %v2834_v32, %v2232_v51  ;;  %v1092_v61 = vpop.f32.mrb[55].mxu0 }
 0x153   : > { %1890 = vst.msk [vmem:[%s2583_s30 + $0x388] sm:$0xff] %vm1776_vm2, %v1761_v48  ;;  %v1638_v54 = vmul.f32 0.2, %v1354_v44  ;;  %vm1444_vm4 = vcmp.ge.f32.partialorder %v1090_v49, 0.0  ;;  %v1572_v55 = vmul.f32 0.2, %v1090_v49  ;;  %v1357_v60 = vadd.f32 %v2834_v32, %v2296_v52 }
 0x154   : > { %vm1508_vm5 = vcmp.ge.f32.partialorder %v1346_v50, 0.0  ;;  %v1636_v56 = vmul.f32 0.2, %v1346_v50  ;;  %v1702_v57 = vsel %vm1446_vm1, %v1098_v43, %v1574_v53  ;;  %v1348_v62 = vpop.f32.mrb[55].mxu1  ;;  %v1093_v1 = vadd.f32 %v2834_v32, %v1092_v61 }
 0x155   : > { %v1766_v58 = vsel %vm1510_vm3, %v1354_v44, %v1638_v54  ;;  %1831 = vst.msk [vmem:[%s2583_s30 + $0x1b0] sm:$0xff] %vm1776_vm2, %v1702_v57  ;;  %v1700_v63 = vsel %vm1444_vm4, %v1090_v49, %v1572_v55  ;;  %v1349_v2 = vadd.f32 %v2834_v32, %v1348_v62  ;;  %v2235_v3 = vpop.f32.mrb[56].mxu0  ;;  %vm1447_vm6 = vcmp.ge.f32.partialorder %v1101_v59, 0.0 }
 0x156   : > { %1895 = vst.msk [vmem:[%s2583_s30 + $0x3b0] sm:$0xff] %vm1776_vm2, %v1766_v58  ;;  %v1764_v0 = vsel %vm1508_vm5, %v1346_v50, %v1636_v56  ;;  %v2299_v5 = vpop.f32.mrb[56].mxu1  ;;  %1829 = vst.msk [vmem:[%s2583_s30 + $0x1a0] sm:$0xff] %vm1776_vm2, %v1700_v63  ;;  %v1575_v6 = vmul.f32 0.2, %v1101_v59  ;;  %vm1511_vm7 = vcmp.ge.f32.partialorder %v1357_v60, 0.0  ;;  %v1114_v12 = vadd.f32 %v2834_v32, %v2235_v3 }
 0x157   : > { %1893 = vst.msk [vmem:[%s2583_s30 + $0x3a0] sm:$0xff] %vm1776_vm2, %v1764_v0  ;;  %v1639_v7 = vmul.f32 0.2, %v1357_v60  ;;  %vm1445_vm8 = vcmp.ge.f32.partialorder %v1093_v1, 0.0  ;;  %v1573_v8 = vmul.f32 0.2, %v1093_v1  ;;  %v1370_v13 = vadd.f32 %v2834_v32, %v2299_v5 }
 0x158   : > { %vm1509_vm9 = vcmp.ge.f32.partialorder %v1349_v2, 0.0  ;;  %v1637_v9 = vmul.f32 0.2, %v1349_v2  ;;  %v1703_v10 = vsel %vm1447_vm6, %v1101_v59, %v1575_v6  ;;  %v1105_v14 = vpop.f32.mrb[57].mxu0  ;;  %v1361_v15 = vpop.f32.mrb[57].mxu1  ;;  %vm1450_vm10 = vcmp.ge.f32.partialorder %v1114_v12, 0.0 }
 0x159   : > { %v1767_v11 = vsel %vm1511_vm7, %v1357_v60, %v1639_v7  ;;  %1832 = vst.msk [vmem:[%s2583_s30 + $0x1b8] sm:$0xff] %vm1776_vm2, %v1703_v10  ;;  %v1701_v16 = vsel %vm1445_vm8, %v1093_v1, %v1573_v8  ;;  %v1106_v18 = vadd.f32 %v2834_v32, %v1105_v14  ;;  %v1362_v19 = vadd.f32 %v2834_v32, %v1361_v15  ;;  %v2236_v20 = vpop.f32.mrb[58].mxu0  ;;  %v2300_v21 = vpop.f32.mrb[58].mxu1 }
 0x15a   : > { %1896 = vst.msk [vmem:[%s2583_s30 + $0x3b8] sm:$0xff] %vm1776_vm2, %v1767_v11  ;;  %v1765_v17 = vsel %vm1509_vm9, %v1349_v2, %v1637_v9  ;;  %1830 = vst.msk [vmem:[%s2583_s30 + $0x1a8] sm:$0xff] %vm1776_vm2, %v1701_v16  ;;  %v1578_v22 = vmul.f32 0.2, %v1114_v12  ;;  %vm1514_vm11 = vcmp.ge.f32.partialorder %v1370_v13, 0.0  ;;  %v1117_v28 = vadd.f32 %v2834_v32, %v2236_v20  ;;  %v1108_v30 = vpop.f32.mrb[59].mxu0 }
 0x15b   : > { %1894 = vst.msk [vmem:[%s2583_s30 + $0x3a8] sm:$0xff] %vm1776_vm2, %v1765_v17  ;;  %v1642_v23 = vmul.f32 0.2, %v1370_v13  ;;  %vm1448_vm12 = vcmp.ge.f32.partialorder %v1106_v18, 0.0  ;;  %v1576_v24 = vmul.f32 0.2, %v1106_v18  ;;  %v1373_v29 = vadd.f32 %v2834_v32, %v2300_v21 }
 0x15c   : > { %vm1512_vm13 = vcmp.ge.f32.partialorder %v1362_v19, 0.0  ;;  %v1640_v25 = vmul.f32 0.2, %v1362_v19  ;;  %v1706_v26 = vsel %vm1450_vm10, %v1114_v12, %v1578_v22  ;;  %v1364_v31 = vpop.f32.mrb[59].mxu1  ;;  %v1109_v35 = vadd.f32 %v2834_v32, %v1108_v30 }
 0x15d   : > { %v1770_v27 = vsel %vm1514_vm11, %v1370_v13, %v1642_v23  ;;  %1835 = vst.msk [vmem:[%s2583_s30 + $0x1d0] sm:$0xff] %vm1776_vm2, %v1706_v26  ;;  %v1704_v33 = vsel %vm1448_vm12, %v1106_v18, %v1576_v24  ;;  %v1365_v36 = vadd.f32 %v2834_v32, %v1364_v31  ;;  %v2239_v4 = vpop.f32.mrb[60].mxu0  ;;  %vm1451_vm14 = vcmp.ge.f32.partialorder %v1117_v28, 0.0 }
 0x15e   : > { %1899 = vst.msk [vmem:[%s2583_s30 + $0x3d0] sm:$0xff] %vm1776_vm2, %v1770_v27  ;;  %v1768_v34 = vsel %vm1512_vm13, %v1362_v19, %v1640_v25  ;;  %v2303_v37 = vpop.f32.mrb[60].mxu1  ;;  %1833 = vst.msk [vmem:[%s2583_s30 + $0x1c0] sm:$0xff] %vm1776_vm2, %v1704_v33  ;;  %v1579_v38 = vmul.f32 0.2, %v1117_v28  ;;  %vm1515_vm15 = vcmp.ge.f32.partialorder %v1373_v29, 0.0  ;;  %v1130_v44 = vadd.f32 %v2834_v32, %v2239_v4 }
 0x15f   : > { %1897 = vst.msk [vmem:[%s2583_s30 + $0x3c0] sm:$0xff] %vm1776_vm2, %v1768_v34  ;;  %v1643_v39 = vmul.f32 0.2, %v1373_v29  ;;  %vm1449_vm0 = vcmp.ge.f32.partialorder %v1109_v35, 0.0  ;;  %v1577_v40 = vmul.f32 0.2, %v1109_v35  ;;  %v1386_v45 = vadd.f32 %v2834_v32, %v2303_v37 }
 0x160   : > { %vm1513_vm1 = vcmp.ge.f32.partialorder %v1365_v36, 0.0  ;;  %v1641_v41 = vmul.f32 0.2, %v1365_v36  ;;  %v1707_v42 = vsel %vm1451_vm14, %v1117_v28, %v1579_v38  ;;  %v1121_v46 = vpop.f32.mrb[61].mxu0  ;;  %v1377_v47 = vpop.f32.mrb[61].mxu1  ;;  %vm1454_vm3 = vcmp.ge.f32.partialorder %v1130_v44, 0.0 }
 0x161   : > { %v1771_v43 = vsel %vm1515_vm15, %v1373_v29, %v1643_v39  ;;  %1836 = vst.msk [vmem:[%s2583_s30 + $0x1d8] sm:$0xff] %vm1776_vm2, %v1707_v42  ;;  %v1705_v48 = vsel %vm1449_vm0, %v1109_v35, %v1577_v40  ;;  %v1122_v50 = vadd.f32 %v2834_v32, %v1121_v46  ;;  %v1378_v51 = vadd.f32 %v2834_v32, %v1377_v47  ;;  %v2240_v52 = vpop.f32.mrb[62].mxu0  ;;  %v2304_v53 = vpop.f32.mrb[62].mxu1 }
 0x162   : > { %1900 = vst.msk [vmem:[%s2583_s30 + $0x3d8] sm:$0xff] %vm1776_vm2, %v1771_v43  ;;  %v1769_v49 = vsel %vm1513_vm1, %v1365_v36, %v1641_v41  ;;  %1834 = vst.msk [vmem:[%s2583_s30 + $0x1c8] sm:$0xff] %vm1776_vm2, %v1705_v48  ;;  %v1582_v54 = vmul.f32 0.2, %v1130_v44  ;;  %vm1518_vm4 = vcmp.ge.f32.partialorder %v1386_v45, 0.0  ;;  %v1133_v60 = vadd.f32 %v2834_v32, %v2240_v52  ;;  %v1124_v62 = vpop.f32.mrb[63].mxu0 }
 0x163   : > { %1898 = vst.msk [vmem:[%s2583_s30 + $0x3c8] sm:$0xff] %vm1776_vm2, %v1769_v49  ;;  %v1646_v55 = vmul.f32 0.2, %v1386_v45  ;;  %vm1452_vm5 = vcmp.ge.f32.partialorder %v1122_v50, 0.0  ;;  %v1580_v56 = vmul.f32 0.2, %v1122_v50  ;;  %v1389_v61 = vadd.f32 %v2834_v32, %v2304_v53 }
 0x164   : > { %vm1516_vm6 = vcmp.ge.f32.partialorder %v1378_v51, 0.0  ;;  %v1644_v57 = vmul.f32 0.2, %v1378_v51  ;;  %v1710_v58 = vsel %vm1454_vm3, %v1130_v44, %v1582_v54  ;;  %v1380_v63 = vpop.f32.mrb[63].mxu1  ;;  %v1125_v2 = vadd.f32 %v2834_v32, %v1124_v62 }
 0x165   : > { %v1774_v59 = vsel %vm1518_vm4, %v1386_v45, %v1646_v55  ;;  %1839 = vst.msk [vmem:[%s2583_s30 + $0x1f0] sm:$0xff] %vm1776_vm2, %v1710_v58  ;;  %v1708_v0 = vsel %vm1452_vm5, %v1122_v50, %v1580_v56  ;;  %v1381_v3 = vadd.f32 %v2834_v32, %v1380_v63  ;;  %vm1455_vm7 = vcmp.ge.f32.partialorder %v1133_v60, 0.0 }
 0x166   : > { %1903 = vst.msk [vmem:[%s2583_s30 + $0x3f0] sm:$0xff] %vm1776_vm2, %v1774_v59  ;;  %v1772_v1 = vsel %vm1516_vm6, %v1378_v51, %v1644_v57  ;;  %1837 = vst.msk [vmem:[%s2583_s30 + $0x1e0] sm:$0xff] %vm1776_vm2, %v1708_v0  ;;  %v1583_v5 = vmul.f32 0.2, %v1133_v60  ;;  %vm1519_vm8 = vcmp.ge.f32.partialorder %v1389_v61, 0.0  ;;  %vm1453_vm9 = vcmp.ge.f32.partialorder %v1125_v2, 0.0 }
 0x167   : > { %1901 = vst.msk [vmem:[%s2583_s30 + $0x3e0] sm:$0xff] %vm1776_vm2, %v1772_v1  ;;  %v1647_v6 = vmul.f32 0.2, %v1389_v61  ;;  %v1581_v7 = vmul.f32 0.2, %v1125_v2  ;;  %vm1517_vm10 = vcmp.ge.f32.partialorder %v1381_v3, 0.0 }
 0x168   : > { %v1645_v8 = vmul.f32 0.2, %v1381_v3  ;;  %v1711_v9 = vsel %vm1455_vm7, %v1133_v60, %v1583_v5 }
 0x169   : > { %v1775_v10 = vsel %vm1519_vm8, %v1389_v61, %v1647_v6  ;;  %1840 = vst.msk [vmem:[%s2583_s30 + $0x1f8] sm:$0xff] %vm1776_vm2, %v1711_v9  ;;  %v1709_v32 = vsel %vm1453_vm9, %v1125_v2, %v1581_v7 }
 0x16a   : > { %1904 = vst.msk [vmem:[%s2583_s30 + $0x3f8] sm:$0xff] %vm1776_vm2, %v1775_v10  ;;  %v1773_v11 = vsel %vm1517_vm10, %v1381_v3, %v1645_v8  ;;  %1838 = vst.msk [vmem:[%s2583_s30 + $0x1e8] sm:$0xff] %vm1776_vm2, %v1709_v32 }
 0x16b   : > { %1902 = vst.msk [vmem:[%s2583_s30 + $0x3e8] sm:$0xff] %vm1776_vm2, %v1773_v11 }
 0x16c PF: > { %s13_s12 = sadd.s32 1, %s2395_s12  }
 0x16d   : > { %p10_p4 = scmp.ge.s32.totalorder %s13_s12, 4  }
 0x16f   :  { %12 = sbr.rel (!%p10_p4) target bundleno = 1 (0x1), region = 62 }

// kernel: encoder_depth_fwd.14
= control target key start
LH: loop header
LB: loop body
LE: loop exit
PB: predicated region body
PF: predicated region fallthrough
CT: control target
= control target key end

     0   :  { %s1072_s12 = smov 0   ;;  %s1243_s0 = inlined_call_operand.vmem [shape: bf16[512,36], index: 0, kind: input, shape index: {}]   ;;  %s1244_s1 = inlined_call_operand.vmem [shape: bf16[36,8], index: 1, kind: input, shape index: {}]   ;;  %s1245_s2 = inlined_call_operand.vmem [shape: f32[1,8], index: 2, kind: input, shape index: {}]   ;;  %s1246_s3 = inlined_call_operand.vmem [shape: bf16[512,8], index: 3, kind: output, shape index: {}]  }
   0x1 LB: > { %s841_s13 = sadd.s32 4294967295, %s1050_s12   ;;  %p845_p0 = scmp.ge.s32.totalorder %s1050_s12, 1  ;;  %s1050_s12 = sphi %s1072_s12, %s13_s12  }
   0x2   : > { %p138_p1 = scmp.lt.s32.totalorder %s1050_s12, 3 }
   0x4   : > { %p139_p2 = pnand %p845_p0, %p138_p1 }
   0x5   : > { %v1025_v0 = vld [vmem:[%s1244_s1] sm:$0xff] (!%p139_p2)   ;;  %v1026_v1 = vld [vmem:[%s1244_s1 + $0x8] sm:$0xff] (!%p139_p2)   ;;  %s846_s18 = sshll.u32 (!%p139_p2), %s841_s13, 5  ;;  %v1027_v2 = vld [vmem:[%s1244_s1 + $0x10] ss:$0 sps:$4 sm:$0x33] (!%p139_p2)  }
   0x6   : > { %142 = sbr.rel (%p139_p2) target bundleno = 278 (0x116), region = 32  ;;  %971 = vmatprep.subr.bf16.mxu0 (!%p139_p2), %v1025_v0  ;;  %1009 = vmatprep.subr.bf16.mxu1 (!%p139_p2), %v1025_v0  ;;  %p163_p3 = scmp.lt.s32.totalorder (!%p139_p2), %s846_s18, 63  ;;  %vm363_vm0 = vcmask (!%p139_p2), 1041408   ;;  %vm314_vm1 = vcmask (!%p139_p2), 293888   ;;  %v1134_v20 = vld [vmem:[%s1245_s2] ss:$0 sm:$0xff] (!%p139_p2) }
   0x7   : > { %972 = vmatpush3.bf16.msra.mxu0 (!%p139_p2), %v1025_v0  ;;  %1012 = vmatpush3.bf16.msra.mxu1 (!%p139_p2), %v1025_v0  ;;  %v365_v3 = vsel (!%p139_p2), %vm363_vm0, %v1027_v2, 0  ;;  %vm752_vm2 = vcmask (!%p139_p2), 60416  }
   0x8   : > { %973 = vmatprep.subr.bf16.mxu0 (!%p139_p2), %v1026_v1  ;;  %1010 = vmatprep.subr.bf16.mxu1 (!%p139_p2), %v1026_v1 }
   0xb   : > { %974 = vmatpush3.bf16.msra.mxu0 (!%p139_p2), %v1026_v1  ;;  %1013 = vmatpush3.bf16.msra.mxu1 (!%p139_p2), %v1026_v1 }
   0xc   : > { %1015 = vmatprep.subr.msk.bf16.mxu0 (!%p139_p2), %vm363_vm0, %v1027_v2  ;;  %1016 = vmatprep.subr.msk.bf16.mxu1 (!%p139_p2), %vm363_vm0, %v1027_v2 }
   0xd   : > { %s1248_s18 = smov (!%p163_p3, %s846_s18), 63 }
   0xe   : > { %s847_s21 = sshll.u32 %s1248_s18, 2 }
   0xf   : > { %s1097_s24 = scalar_lea.vmem %s1243_s0, %s847_s21  ;;  %976 = vmatpush3.bf16.msra.mxu0 %v365_v3  ;;  %1014 = vmatpush3.bf16.msra.mxu1 %v365_v3  ;;  %s1145_s29 = scalar_lea.vmem %s1246_s3, %s847_s21 }
  0x10   : > { %v1028_v4 = vld [vmem:[%s1097_s24] sm:$0xff]   ;;  %v1030_v6 = vld [vmem:[%s1097_s24 + $0x8] sm:$0xff]   ;;  %v1032_v8 = vld [vmem:[%s1097_s24 + $0x10] sm:$0xff]  }
  0x11   : > { %v1029_v5 = vld [vmem:[%s1097_s24 + $0x40] sm:$0xff]   ;;  %977 = vmatprep.mubr.msk.bf16.mxu0 %vm314_vm1, %v1028_v4  ;;  %v1031_v7 = vld [vmem:[%s1097_s24 + $0x48] sm:$0xff]   ;;  %v1033_v9 = vld [vmem:[%s1097_s24 + $0x50] sm:$0xff]  }
  0x12   : > { %993 = vmatprep.mubr.msk.bf16.mxu1 %vm314_vm1, %v1029_v5  ;;  %978 = vmatmul.mubr.msk.bf16.vlgmr.msra.gmra.mrb[0].mxu0 %vm314_vm1, %v1030_v6  ;;  %v1034_v10 = vld [vmem:[%s1097_s24 + $0x18] sm:$0xff]   ;;  %v1036_v12 = vld [vmem:[%s1097_s24 + $0x20] sm:$0xff]   ;;  %v1038_v14 = vld [vmem:[%s1097_s24 + $0x28] sm:$0xff]  }
  0x13   : > { %994 = vmatmul.mubr.msk.bf16.vlgmr.msra.gmra.mrb[0].mxu1 %vm314_vm1, %v1031_v7  ;;  %981 = vmatprep.mubr.msk.bf16.mxu0 %vm314_vm1, %v1032_v8  ;;  %v1035_v11 = vld [vmem:[%s1097_s24 + $0x58] sm:$0xff]   ;;  %v1037_v13 = vld [vmem:[%s1097_s24 + $0x60] sm:$0xff]   ;;  %v1039_v15 = vld [vmem:[%s1097_s24 + $0x68] sm:$0xff]  }
  0x14   : > { %997 = vmatprep.mubr.msk.bf16.mxu1 %vm314_vm1, %v1033_v9  ;;  %v1040_v16 = vld [vmem:[%s1097_s24 + $0x30] sm:$0xff]   ;;  %v1042_v18 = vld [vmem:[%s1097_s24 + $0x38] sm:$0xff]  }
  0x15   : > { %v1041_v17 = vld [vmem:[%s1097_s24 + $0x70] sm:$0xff]   ;;  %v1043_v19 = vld [vmem:[%s1097_s24 + $0x78] sm:$0xff]  }
  0x1a   : > { %982 = vmatmul.mubr.msk.bf16.gmra.mrb[4].mxu0 %vm314_vm1, %v1034_v10 }
  0x1b   : > { %998 = vmatmul.mubr.msk.bf16.gmra.mrb[4].mxu1 %vm314_vm1, %v1035_v11  ;;  %985 = vmatprep.mubr.msk.bf16.mxu0 %vm314_vm1, %v1036_v12 }
  0x1c   : > { %1001 = vmatprep.mubr.msk.bf16.mxu1 %vm314_vm1, %v1037_v13 }
  0x22   : > { %986 = vmatmul.mubr.msk.bf16.gmra.mrb[8].mxu0 %vm314_vm1, %v1038_v14 }
  0x23   : > { %1002 = vmatmul.mubr.msk.bf16.gmra.mrb[8].mxu1 %vm314_vm1, %v1039_v15  ;;  %989 = vmatprep.mubr.msk.bf16.mxu0 %vm314_vm1, %v1040_v16 }
  0x24   : > { %1005 = vmatprep.mubr.msk.bf16.mxu1 %vm314_vm1, %v1041_v17 }
  0x2a   : > { %990 = vmatmul.mubr.msk.bf16.gmra.mrb[12].mxu0 %vm314_vm1, %v1042_v18 }
  0x2b   : > { %1006 = vmatmul.mubr.msk.bf16.gmra.mrb[12].mxu1 %vm314_vm1, %v1043_v19 }
  0xe5   : > { %v979_v21 = vpop.f32.mrb[0].mxu0 }
  0xe6   : > { %v995_v22 = vpop.f32.mrb[0].mxu1  ;;  %v410_v23 = vadd.f32 %v979_v21, %v1134_v20  ;;  %v401_v25 = vpop.f32.mrb[1].mxu0 }
  0xe7   : > { %v474_v24 = vadd.f32 %v995_v22, %v1134_v20  ;;  %v465_v26 = vpop.f32.mrb[1].mxu1  ;;  %v402_v27 = vadd.f32 %v1134_v20, %v401_v25  ;;  %v980_v29 = vpop.f32.mrb[2].mxu0 }
  0xe8   : > { %v466_v28 = vadd.f32 %v1134_v20, %v465_v26  ;;  %v996_v30 = vpop.f32.mrb[2].mxu1  ;;  %vm530_vm3 = vcmp.ge.f32.partialorder %v410_v23, 0.0  ;;  %v562_v31 = vmul.f32 0.2, %v410_v23  ;;  %v413_v37 = vadd.f32 %v980_v29, %v1134_v20  ;;  %v404_v39 = vpop.f32.mrb[3].mxu0 }
  0xe9   : > { %vm546_vm4 = vcmp.ge.f32.partialorder %v474_v24, 0.0  ;;  %v578_v32 = vmul.f32 0.2, %v474_v24  ;;  %vm528_vm5 = vcmp.ge.f32.partialorder %v402_v27, 0.0  ;;  %v560_v33 = vmul.f32 0.2, %v402_v27 }
  0xea   : > { %vm544_vm6 = vcmp.ge.f32.partialorder %v466_v28, 0.0  ;;  %v576_v34 = vmul.f32 0.2, %v466_v28  ;;  %v594_v35 = vsel %vm530_vm3, %v410_v23, %v562_v31  ;;  %v477_v38 = vadd.f32 %v996_v30, %v1134_v20  ;;  %v468_v40 = vpop.f32.mrb[3].mxu1 }
  0xeb   : > { %v610_v36 = vsel %vm546_vm4, %v474_v24, %v578_v32  ;;  %v922_v41 = vpack.c.bf16 %v594_v35, %v594_v35  ;;  %v592_v43 = vsel %vm528_vm5, %v402_v27, %v560_v33  ;;  %vm531_vm7 = vcmp.ge.f32.partialorder %v413_v37, 0.0 }
  0xec   : > { %v938_v42 = vpack.c.bf16 %v610_v36, %v610_v36  ;;  %v608_v44 = vsel %vm544_vm6, %v466_v28, %v576_v34  ;;  %v920_v45 = vpack.c.bf16 %v592_v43, %v592_v43  ;;  %v563_v47 = vmul.f32 0.2, %v413_v37 }
  0xed   : > { %v936_v46 = vpack.c.bf16 %v608_v44, %v608_v44  ;;  %755 = vst.msk [vmem:[%s1145_s29 + $0x8] sm:$0xf] %vm752_vm2, %v922_v41  ;;  %vm547_vm8 = vcmp.ge.f32.partialorder %v477_v38, 0.0  ;;  %v579_v48 = vmul.f32 0.2, %v477_v38  ;;  %v405_v49 = vadd.f32 %v1134_v20, %v404_v39  ;;  %v983_v51 = vpop.f32.mrb[4].mxu0 }
  0xee   : > { %771 = vst.msk [vmem:[%s1145_s29 + $0x48] sm:$0xf] %vm752_vm2, %v938_v42  ;;  %v469_v50 = vadd.f32 %v1134_v20, %v468_v40  ;;  %v999_v52 = vpop.f32.mrb[4].mxu1  ;;  %753 = vst.msk [vmem:[%s1145_s29] sm:$0xf] %vm752_vm2, %v920_v45  ;;  %v595_v53 = vsel %vm531_vm7, %v413_v37, %v563_v47  ;;  %v426_v54 = vadd.f32 %v983_v51, %v1134_v20  ;;  %v417_v56 = vpop.f32.mrb[5].mxu0 }
  0xef   : > { %769 = vst.msk [vmem:[%s1145_s29 + $0x40] sm:$0xf] %vm752_vm2, %v936_v46  ;;  %v490_v55 = vadd.f32 %v999_v52, %v1134_v20  ;;  %v481_v57 = vpop.f32.mrb[5].mxu1  ;;  %v923_v58 = vpack.c.bf16 %v595_v53, %v595_v53  ;;  %v611_v59 = vsel %vm547_vm8, %v477_v38, %v579_v48  ;;  %vm529_vm9 = vcmp.ge.f32.partialorder %v405_v49, 0.0  ;;  %v984_v61 = vpop.f32.mrb[6].mxu0 }
  0xf0   : > { %v561_v60 = vmul.f32 0.2, %v405_v49  ;;  %v1000_v62 = vpop.f32.mrb[6].mxu1  ;;  %v939_v63 = vpack.c.bf16 %v611_v59, %v611_v59  ;;  %vm545_vm10 = vcmp.ge.f32.partialorder %v469_v50, 0.0  ;;  %v577_v0 = vmul.f32 0.2, %v469_v50 }
  0xf1   : > { %vm534_vm11 = vcmp.ge.f32.partialorder %v426_v54, 0.0  ;;  %v420_v1 = vpop.f32.mrb[7].mxu0  ;;  %v484_v2 = vpop.f32.mrb[7].mxu1  ;;  %756 = vst.msk [vmem:[%s1145_s29 + $0xc] sm:$0xf] %vm752_vm2, %v923_v58  ;;  %vm550_vm12 = vcmp.ge.f32.partialorder %v490_v55, 0.0  ;;  %v418_v8 = vadd.f32 %v1134_v20, %v417_v56  ;;  %v482_v9 = vadd.f32 %v1134_v20, %v481_v57 }
  0xf2   : > { %v593_v3 = vsel %vm529_vm9, %v405_v49, %v561_v60  ;;  %v566_v4 = vmul.f32 0.2, %v426_v54  ;;  %v582_v5 = vmul.f32 0.2, %v490_v55  ;;  %772 = vst.msk [vmem:[%s1145_s29 + $0x4c] sm:$0xf] %vm752_vm2, %v939_v63  ;;  %v609_v7 = vsel %vm545_vm10, %v469_v50, %v577_v0 }
  0xf3   : > { %v921_v6 = vpack.c.bf16 %v593_v3, %v593_v3  ;;  %v937_v10 = vpack.c.bf16 %v609_v7, %v609_v7  ;;  %v429_v13 = vadd.f32 %v984_v61, %v1134_v20  ;;  %vm532_vm13 = vcmp.ge.f32.partialorder %v418_v8, 0.0 }
  0xf4   : > { %v598_v11 = vsel %vm534_vm11, %v426_v54, %v566_v4  ;;  %v614_v12 = vsel %vm550_vm12, %v490_v55, %v582_v5  ;;  %v564_v16 = vmul.f32 0.2, %v418_v8  ;;  %vm548_vm14 = vcmp.ge.f32.partialorder %v482_v9, 0.0 }
  0xf5   : > { %754 = vst.msk [vmem:[%s1145_s29 + $0x4] sm:$0xf] %vm752_vm2, %v921_v6  ;;  %v926_v14 = vpack.c.bf16 %v598_v11, %v598_v11  ;;  %v942_v15 = vpack.c.bf16 %v614_v12, %v614_v12  ;;  %770 = vst.msk [vmem:[%s1145_s29 + $0x44] sm:$0xf] %vm752_vm2, %v937_v10  ;;  %v580_v17 = vmul.f32 0.2, %v482_v9  ;;  %v493_v21 = vadd.f32 %v1000_v62, %v1134_v20 }
  0xf6   : > { %vm535_vm15 = vcmp.ge.f32.partialorder %v429_v13, 0.0  ;;  %v567_v18 = vmul.f32 0.2, %v429_v13  ;;  %v596_v19 = vsel %vm532_vm13, %v418_v8, %v564_v16  ;;  %v421_v22 = vadd.f32 %v1134_v20, %v420_v1  ;;  %v987_v24 = vpop.f32.mrb[8].mxu0  ;;  %v1003_v25 = vpop.f32.mrb[8].mxu1 }
  0xf7   : > { %759 = vst.msk [vmem:[%s1145_s29 + $0x18] sm:$0xf] %vm752_vm2, %v926_v14  ;;  %775 = vst.msk [vmem:[%s1145_s29 + $0x58] sm:$0xf] %vm752_vm2, %v942_v15  ;;  %v485_v23 = vadd.f32 %v1134_v20, %v484_v2  ;;  %v924_v26 = vpack.c.bf16 %v596_v19, %v596_v19  ;;  %v612_v27 = vsel %vm548_vm14, %v482_v9, %v580_v17  ;;  %v433_v30 = vpop.f32.mrb[9].mxu0  ;;  %v497_v31 = vpop.f32.mrb[9].mxu1 }
  0xf8   : > { %v599_v28 = vsel %vm535_vm15, %v429_v13, %v567_v18  ;;  %v442_v29 = vadd.f32 %v987_v24, %v1134_v20  ;;  %v940_v32 = vpack.c.bf16 %v612_v27, %v612_v27  ;;  %vm551_vm0 = vcmp.ge.f32.partialorder %v493_v21, 0.0  ;;  %v988_v35 = vpop.f32.mrb[10].mxu0  ;;  %v1004_v36 = vpop.f32.mrb[10].mxu1 }
  0xf9   : > { %v927_v33 = vpack.c.bf16 %v599_v28, %v599_v28  ;;  %v583_v34 = vmul.f32 0.2, %v493_v21  ;;  %757 = vst.msk [vmem:[%s1145_s29 + $0x10] sm:$0xf] %vm752_vm2, %v924_v26  ;;  %vm533_vm1 = vcmp.ge.f32.partialorder %v421_v22, 0.0  ;;  %vm549_vm3 = vcmp.ge.f32.partialorder %v485_v23, 0.0 }
  0xfa   : > { %v565_v37 = vmul.f32 0.2, %v421_v22  ;;  %v581_v38 = vmul.f32 0.2, %v485_v23  ;;  %773 = vst.msk [vmem:[%s1145_s29 + $0x50] sm:$0xf] %vm752_vm2, %v940_v32  ;;  %v506_v41 = vadd.f32 %v1003_v25, %v1134_v20  ;;  %v434_v47 = vadd.f32 %v1134_v20, %v433_v30 }
  0xfb   : > { %760 = vst.msk [vmem:[%s1145_s29 + $0x1c] sm:$0xf] %vm752_vm2, %v927_v33  ;;  %v615_v39 = vsel %vm551_vm0, %v493_v21, %v583_v34  ;;  %vm538_vm4 = vcmp.ge.f32.partialorder %v442_v29, 0.0  ;;  %v570_v40 = vmul.f32 0.2, %v442_v29  ;;  %v436_v42 = vpop.f32.mrb[11].mxu0  ;;  %v498_v55 = vadd.f32 %v1134_v20, %v497_v31 }
  0xfc   : > { %v500_v43 = vpop.f32.mrb[11].mxu1  ;;  %v943_v44 = vpack.c.bf16 %v615_v39, %v615_v39  ;;  %v597_v45 = vsel %vm533_vm1, %v421_v22, %v565_v37  ;;  %v613_v46 = vsel %vm549_vm3, %v485_v23, %v581_v38  ;;  %vm554_vm5 = vcmp.ge.f32.partialorder %v506_v41, 0.0 }
  0xfd   : > { %v925_v48 = vpack.c.bf16 %v597_v45, %v597_v45  ;;  %v941_v49 = vpack.c.bf16 %v613_v46, %v613_v46  ;;  %v602_v50 = vsel %vm538_vm4, %v442_v29, %v570_v40  ;;  %v586_v52 = vmul.f32 0.2, %v506_v41  ;;  %v991_v54 = vpop.f32.mrb[12].mxu0 }
  0xfe   : > { %776 = vst.msk [vmem:[%s1145_s29 + $0x5c] sm:$0xf] %vm752_vm2, %v943_v44  ;;  %v930_v51 = vpack.c.bf16 %v602_v50, %v602_v50  ;;  %vm536_vm6 = vcmp.ge.f32.partialorder %v434_v47, 0.0  ;;  %v568_v53 = vmul.f32 0.2, %v434_v47  ;;  %v445_v56 = vadd.f32 %v988_v35, %v1134_v20  ;;  %v1007_v59 = vpop.f32.mrb[12].mxu1 }
  0xff   : > { %758 = vst.msk [vmem:[%s1145_s29 + $0x14] sm:$0xf] %vm752_vm2, %v925_v48  ;;  %774 = vst.msk [vmem:[%s1145_s29 + $0x54] sm:$0xf] %vm752_vm2, %v941_v49  ;;  %v509_v57 = vadd.f32 %v1004_v36, %v1134_v20  ;;  %v437_v58 = vadd.f32 %v1134_v20, %v436_v42  ;;  %v449_v60 = vpop.f32.mrb[13].mxu0  ;;  %v618_v61 = vsel %vm554_vm5, %v506_v41, %v586_v52  ;;  %v513_v1 = vpop.f32.mrb[13].mxu1 }
 0x100   : > { %763 = vst.msk [vmem:[%s1145_s29 + $0x28] sm:$0xf] %vm752_vm2, %v930_v51  ;;  %v600_v62 = vsel %vm536_vm6, %v434_v47, %v568_v53  ;;  %v501_v63 = vadd.f32 %v1134_v20, %v500_v43  ;;  %v458_v0 = vadd.f32 %v991_v54, %v1134_v20  ;;  %v992_v2 = vpop.f32.mrb[14].mxu0  ;;  %v946_v3 = vpack.c.bf16 %v618_v61, %v618_v61  ;;  %v1008_v6 = vpop.f32.mrb[14].mxu1 }
 0x101   : > { %v928_v4 = vpack.c.bf16 %v600_v62, %v600_v62  ;;  %vm552_vm7 = vcmp.ge.f32.partialorder %v498_v55, 0.0  ;;  %v584_v5 = vmul.f32 0.2, %v498_v55  ;;  %v452_v7 = vpop.f32.mrb[15].mxu0  ;;  %vm539_vm8 = vcmp.ge.f32.partialorder %v445_v56, 0.0  ;;  %v516_v12 = vpop.f32.mrb[15].mxu1 }
 0x102   : > { %v571_v8 = vmul.f32 0.2, %v445_v56  ;;  %vm555_vm9 = vcmp.ge.f32.partialorder %v509_v57, 0.0  ;;  %v587_v9 = vmul.f32 0.2, %v509_v57  ;;  %vm537_vm10 = vcmp.ge.f32.partialorder %v437_v58, 0.0 }
 0x103   : > { %779 = vst.msk [vmem:[%s1145_s29 + $0x68] sm:$0xf] %vm752_vm2, %v946_v3  ;;  %761 = vst.msk [vmem:[%s1145_s29 + $0x20] sm:$0xf] %vm752_vm2, %v928_v4  ;;  %v616_v10 = vsel %vm552_vm7, %v498_v55, %v584_v5  ;;  %v569_v11 = vmul.f32 0.2, %v437_v58  ;;  %v522_v24 = vadd.f32 %v1007_v59, %v1134_v20  ;;  %v450_v26 = vadd.f32 %v1134_v20, %v449_v60 }
 0x104   : > { %vm553_vm11 = vcmp.ge.f32.partialorder %v501_v63, 0.0  ;;  %v944_v13 = vpack.c.bf16 %v616_v10, %v616_v10  ;;  %v603_v14 = vsel %vm539_vm8, %v445_v56, %v571_v8  ;;  %v619_v15 = vsel %vm555_vm9, %v509_v57, %v587_v9 }
 0x105   : > { %v585_v16 = vmul.f32 0.2, %v501_v63  ;;  %v931_v17 = vpack.c.bf16 %v603_v14, %v603_v14  ;;  %v947_v18 = vpack.c.bf16 %v619_v15, %v619_v15  ;;  %v601_v19 = vsel %vm537_vm10, %v437_v58, %v569_v11 }
 0x106   : > { %vm542_vm12 = vcmp.ge.f32.partialorder %v458_v0, 0.0  ;;  %777 = vst.msk [vmem:[%s1145_s29 + $0x60] sm:$0xf] %vm752_vm2, %v944_v13  ;;  %v929_v21 = vpack.c.bf16 %v601_v19, %v601_v19  ;;  %v574_v23 = vmul.f32 0.2, %v458_v0  ;;  %v514_v27 = vadd.f32 %v1134_v20, %v513_v1 }
 0x107   : > { %v617_v22 = vsel %vm553_vm11, %v501_v63, %v585_v16  ;;  %764 = vst.msk [vmem:[%s1145_s29 + $0x2c] sm:$0xf] %vm752_vm2, %v931_v17  ;;  %780 = vst.msk [vmem:[%s1145_s29 + $0x6c] sm:$0xf] %vm752_vm2, %v947_v18  ;;  %v461_v28 = vadd.f32 %v992_v2, %v1134_v20  ;;  %vm558_vm13 = vcmp.ge.f32.partialorder %v522_v24, 0.0  ;;  %v525_v31 = vadd.f32 %v1008_v6, %v1134_v20 }
 0x108   : > { %v945_v25 = vpack.c.bf16 %v617_v22, %v617_v22  ;;  %762 = vst.msk [vmem:[%s1145_s29 + $0x24] sm:$0xf] %vm752_vm2, %v929_v21  ;;  %v606_v29 = vsel %vm542_vm12, %v458_v0, %v574_v23  ;;  %v590_v30 = vmul.f32 0.2, %v522_v24  ;;  %vm540_vm14 = vcmp.ge.f32.partialorder %v450_v26, 0.0 }
 0x109   : > { %v934_v32 = vpack.c.bf16 %v606_v29, %v606_v29  ;;  %v572_v33 = vmul.f32 0.2, %v450_v26  ;;  %vm556_vm15 = vcmp.ge.f32.partialorder %v514_v27, 0.0  ;;  %v588_v35 = vmul.f32 0.2, %v514_v27 }
 0x10a   : > { %778 = vst.msk [vmem:[%s1145_s29 + $0x64] sm:$0xf] %vm752_vm2, %v945_v25  ;;  %v622_v34 = vsel %vm558_vm13, %v522_v24, %v590_v30  ;;  %vm543_vm0 = vcmp.ge.f32.partialorder %v461_v28, 0.0  ;;  %v575_v36 = vmul.f32 0.2, %v461_v28  ;;  %vm559_vm1 = vcmp.ge.f32.partialorder %v525_v31, 0.0 }
 0x10b   : > { %767 = vst.msk [vmem:[%s1145_s29 + $0x38] sm:$0xf] %vm752_vm2, %v934_v32  ;;  %v950_v37 = vpack.c.bf16 %v622_v34, %v622_v34  ;;  %v604_v38 = vsel %vm540_vm14, %v450_v26, %v572_v33  ;;  %v591_v39 = vmul.f32 0.2, %v525_v31  ;;  %v620_v41 = vsel %vm556_vm15, %v514_v27, %v588_v35 }
 0x10c   : > { %v932_v40 = vpack.c.bf16 %v604_v38, %v604_v38  ;;  %v607_v42 = vsel %vm543_vm0, %v461_v28, %v575_v36  ;;  %v453_v43 = vadd.f32 %v1134_v20, %v452_v7  ;;  %v948_v44 = vpack.c.bf16 %v620_v41, %v620_v41 }
 0x10d   : > { %783 = vst.msk [vmem:[%s1145_s29 + $0x78] sm:$0xf] %vm752_vm2, %v950_v37  ;;  %v935_v45 = vpack.c.bf16 %v607_v42, %v607_v42  ;;  %v623_v46 = vsel %vm559_vm1, %v525_v31, %v591_v39  ;;  %v517_v47 = vadd.f32 %v1134_v20, %v516_v12 }
 0x10e   : > { %765 = vst.msk [vmem:[%s1145_s29 + $0x30] sm:$0xf] %vm752_vm2, %v932_v40  ;;  %v951_v48 = vpack.c.bf16 %v623_v46, %v623_v46  ;;  %vm541_vm3 = vcmp.ge.f32.partialorder %v453_v43, 0.0  ;;  %v573_v49 = vmul.f32 0.2, %v453_v43 }
 0x10f   : > { %781 = vst.msk [vmem:[%s1145_s29 + $0x70] sm:$0xf] %vm752_vm2, %v948_v44  ;;  %768 = vst.msk [vmem:[%s1145_s29 + $0x3c] sm:$0xf] %vm752_vm2, %v935_v45  ;;  %vm557_vm4 = vcmp.ge.f32.partialorder %v517_v47, 0.0 }
 0x110   : > { %v589_v50 = vmul.f32 0.2, %v517_v47  ;;  %784 = vst.msk [vmem:[%s1145_s29 + $0x7c] sm:$0xf] %vm752_vm2, %v951_v48  ;;  %v605_v51 = vsel %vm541_vm3, %v453_v43, %v573_v49 }
 0x111   : > { %v933_v52 = vpack.c.bf16 %v605_v51, %v605_v51 }
 0x112   : > { %v621_v53 = vsel %vm557_vm4, %v517_v47, %v589_v50 }
 0x113   : > { %v949_v54 = vpack.c.bf16 %v621_v53, %v621_v53  ;;  %766 = vst.msk [vmem:[%s1145_s29 + $0x34] sm:$0xf] %vm752_vm2, %v933_v52 }
 0x115   : > { %782 = vst.msk [vmem:[%s1145_s29 + $0x74] sm:$0xf] %vm752_vm2, %v949_v54 }
 0x116 PF: > { %s13_s12 = sadd.s32 1, %s1050_s12  }
 0x117   : > { %p10_p4 = scmp.ge.s32.totalorder %s13_s12, 4  }
 0x119   :  { %12 = sbr.rel (!%p10_p4) target bundleno = 1 (0x1), region = 62 }

// kernel: encoder_depth_fwd.15
= control target key start
LH: loop header
LB: loop body
LE: loop exit
PB: predicated region body
PF: predicated region fallthrough
CT: control target
= control target key end

     0   :  { %s910_s12 = smov 0   ;;  %s1083_s0 = inlined_call_operand.vmem [shape: bf16[512,72], index: 0, kind: input, shape index: {}]   ;;  %s1084_s1 = inlined_call_operand.vmem [shape: bf16[72,8], index: 1, kind: input, shape index: {}]   ;;  %s1085_s2 = inlined_call_operand.vmem [shape: f32[1,8], index: 2, kind: input, shape index: {}]   ;;  %s1086_s3 = inlined_call_operand.vmem [shape: f32[512,8], index: 3, kind: output, shape index: {}]  }
   0x1 LB: > { %s729_s13 = sadd.s32 4294967295, %s888_s12   ;;  %p733_p0 = scmp.ge.s32.totalorder %s888_s12, 1  ;;  %s888_s12 = sphi %s910_s12, %s13_s12  }
   0x2   : > { %p138_p1 = scmp.lt.s32.totalorder %s888_s12, 3 }
   0x4   : > { %p139_p2 = pnand %p733_p0, %p138_p1 }
   0x5   : > { %v861_v0 = vld [vmem:[%s1084_s1] sm:$0xff] (!%p139_p2)   ;;  %v862_v1 = vld [vmem:[%s1084_s1 + $0x8] sm:$0xff] (!%p139_p2)   ;;  %s734_s18 = sshll.u32 (!%p139_p2), %s729_s13, 5  ;;  %v863_v2 = vld [vmem:[%s1084_s1 + $0x10] sm:$0xff] (!%p139_p2)   ;;  %vm330_vm0 = vcmask (!%p139_p2), 588800   ;;  %vm379_vm1 = vcmask (!%p139_p2), 1043456  }
   0x6   : > { %142 = sbr.rel (%p139_p2) target bundleno = 275 (0x113), region = 32  ;;  %799 = vmatprep.subr.bf16.mxu0 (!%p139_p2), %v861_v0  ;;  %841 = vmatprep.subr.bf16.mxu1 (!%p139_p2), %v861_v0  ;;  %p163_p3 = scmp.lt.s32.totalorder (!%p139_p2), %s734_s18, 63  ;;  %v864_v3 = vld [vmem:[%s1084_s1 + $0x18] sm:$0xff] (!%p139_p2)   ;;  %v865_v6 = vld [vmem:[%s1084_s1 + $0x20] ss:$0 sps:$4 sm:$0xff] (!%p139_p2)   ;;  %vm640_vm2 = vcmask (!%p139_p2), 64512  }
   0x7   : > { %800 = vmatpush3.bf16.msra.mxu0 (!%p139_p2), %v861_v0  ;;  %846 = vmatpush3.bf16.msra.mxu1 (!%p139_p2), %v861_v0  ;;  %v381_v7 = vsel (!%p139_p2), %vm379_vm1, %v865_v6, 0  ;;  %v976_v22 = vld [vmem:[%s1085_s2] ss:$0 sm:$0xff] (!%p139_p2) }
   0x8   : > { %801 = vmatprep.subr.bf16.mxu0 (!%p139_p2), %v862_v1  ;;  %842 = vmatprep.subr.bf16.mxu1 (!%p139_p2), %v862_v1 }
   0xb   : > { %802 = vmatpush3.bf16.msra.mxu0 (!%p139_p2), %v862_v1  ;;  %847 = vmatpush3.bf16.msra.mxu1 (!%p139_p2), %v862_v1 }
   0xc   : > { %803 = vmatprep.subr.bf16.mxu0 (!%p139_p2), %v863_v2  ;;  %843 = vmatprep.subr.bf16.mxu1 (!%p139_p2), %v863_v2 }
   0xd   : > { %s1088_s18 = smov (!%p163_p3, %s734_s18), 63 }
   0xe   : > { %s735_s21 = sshll.u32 %s1088_s18, 2  ;;  %s737_s4 = sshll.u32 %s1088_s18, 3 }
   0xf   : > { %s936_s26 = scalar_lea.vmem %s1083_s0, %s735_s21  ;;  %804 = vmatpush3.bf16.msra.mxu0 %v863_v2  ;;  %848 = vmatpush3.bf16.msra.mxu1 %v863_v2  ;;  %s986_s7 = scalar_lea.vmem %s1086_s3, %s737_s4 }
  0x10   : > { %v866_v4 = vld [vmem:[%s936_s26] sm:$0xff]   ;;  %805 = vmatprep.subr.bf16.mxu0 %v864_v3  ;;  %844 = vmatprep.subr.bf16.mxu1 %v864_v3  ;;  %v868_v8 = vld [vmem:[%s936_s26 + $0x8] sm:$0xff]   ;;  %v870_v10 = vld [vmem:[%s936_s26 + $0x10] sm:$0xff]  }
  0x11   : > { %v867_v5 = vld [vmem:[%s936_s26 + $0x40] sm:$0xff]   ;;  %809 = vmatprep.mubr.msk.bf16.mxu0 %vm330_vm0, %v866_v4  ;;  %v869_v9 = vld [vmem:[%s936_s26 + $0x48] sm:$0xff]   ;;  %v871_v11 = vld [vmem:[%s936_s26 + $0x50] sm:$0xff]  }
  0x12   : > { %825 = vmatprep.mubr.msk.bf16.mxu1 %vm330_vm0, %v867_v5  ;;  %v872_v12 = vld [vmem:[%s936_s26 + $0x18] sm:$0xff]   ;;  %v874_v14 = vld [vmem:[%s936_s26 + $0x20] sm:$0xff]   ;;  %v876_v16 = vld [vmem:[%s936_s26 + $0x28] sm:$0xff]  }
  0x13   : > { %806 = vmatpush3.bf16.msra.mxu0 %v864_v3  ;;  %849 = vmatpush3.bf16.msra.mxu1 %v864_v3  ;;  %v873_v13 = vld [vmem:[%s936_s26 + $0x58] sm:$0xff]   ;;  %v875_v15 = vld [vmem:[%s936_s26 + $0x60] sm:$0xff]   ;;  %v877_v17 = vld [vmem:[%s936_s26 + $0x68] sm:$0xff]  }
  0x14   : > { %851 = vmatprep.subr.msk.bf16.mxu0 %vm379_vm1, %v865_v6  ;;  %852 = vmatprep.subr.msk.bf16.mxu1 %vm379_vm1, %v865_v6  ;;  %v878_v18 = vld [vmem:[%s936_s26 + $0x30] sm:$0xff]   ;;  %v880_v20 = vld [vmem:[%s936_s26 + $0x38] sm:$0xff]  }
  0x15   : > { %v879_v19 = vld [vmem:[%s936_s26 + $0x70] sm:$0xff]   ;;  %v881_v21 = vld [vmem:[%s936_s26 + $0x78] sm:$0xff]  }
  0x17   : > { %808 = vmatpush3.bf16.msra.mxu0 %v381_v7  ;;  %850 = vmatpush3.bf16.msra.mxu1 %v381_v7 }
  0x1a   : > { %810 = vmatmul.mubr.msk.bf16.vlgmr.msra.gmra.mrb[0].mxu0 %vm330_vm0, %v868_v8  ;;  %826 = vmatmul.mubr.msk.bf16.vlgmr.msra.gmra.mrb[0].mxu1 %vm330_vm0, %v869_v9 }
  0x1b   : > { %813 = vmatprep.mubr.msk.bf16.mxu0 %vm330_vm0, %v870_v10  ;;  %829 = vmatprep.mubr.msk.bf16.mxu1 %vm330_vm0, %v871_v11 }
  0x22   : > { %814 = vmatmul.mubr.msk.bf16.gmra.mrb[4].mxu0 %vm330_vm0, %v872_v12  ;;  %830 = vmatmul.mubr.msk.bf16.gmra.mrb[4].mxu1 %vm330_vm0, %v873_v13 }
  0x23   : > { %817 = vmatprep.mubr.msk.bf16.mxu0 %vm330_vm0, %v874_v14  ;;  %833 = vmatprep.mubr.msk.bf16.mxu1 %vm330_vm0, %v875_v15 }
  0x2a   : > { %818 = vmatmul.mubr.msk.bf16.gmra.mrb[8].mxu0 %vm330_vm0, %v876_v16  ;;  %834 = vmatmul.mubr.msk.bf16.gmra.mrb[8].mxu1 %vm330_vm0, %v877_v17 }
  0x2b   : > { %821 = vmatprep.mubr.msk.bf16.mxu0 %vm330_vm0, %v878_v18  ;;  %837 = vmatprep.mubr.msk.bf16.mxu1 %vm330_vm0, %v879_v19 }
  0x32   : > { %822 = vmatmul.mubr.msk.bf16.gmra.mrb[12].mxu0 %vm330_vm0, %v880_v20  ;;  %838 = vmatmul.mubr.msk.bf16.gmra.mrb[12].mxu1 %vm330_vm0, %v881_v21 }
  0xed   : > { %v811_v23 = vpop.f32.mrb[0].mxu0  ;;  %v827_v24 = vpop.f32.mrb[0].mxu1 }
  0xee   : > { %v426_v25 = vadd.f32 %v811_v23, %v976_v22  ;;  %v490_v26 = vadd.f32 %v827_v24, %v976_v22  ;;  %v417_v27 = vpop.f32.mrb[1].mxu0  ;;  %v481_v28 = vpop.f32.mrb[1].mxu1 }
  0xef   : > { %v418_v29 = vadd.f32 %v976_v22, %v417_v27  ;;  %v482_v30 = vadd.f32 %v976_v22, %v481_v28  ;;  %v812_v31 = vpop.f32.mrb[2].mxu0  ;;  %v828_v32 = vpop.f32.mrb[2].mxu1 }
  0xf0   : > { %vm546_vm3 = vcmp.ge.f32.partialorder %v426_v25, 0.0  ;;  %v578_v33 = vmul.f32 0.2, %v426_v25  ;;  %vm562_vm4 = vcmp.ge.f32.partialorder %v490_v26, 0.0  ;;  %v594_v34 = vmul.f32 0.2, %v490_v26 }
  0xf1   : > { %vm544_vm5 = vcmp.ge.f32.partialorder %v418_v29, 0.0  ;;  %v576_v35 = vmul.f32 0.2, %v418_v29  ;;  %vm560_vm6 = vcmp.ge.f32.partialorder %v482_v30, 0.0  ;;  %v592_v36 = vmul.f32 0.2, %v482_v30 }
  0xf2   : > { %v610_v37 = vsel %vm546_vm3, %v426_v25, %v578_v33  ;;  %v626_v38 = vsel %vm562_vm4, %v490_v26, %v594_v34  ;;  %v429_v39 = vadd.f32 %v812_v31, %v976_v22  ;;  %v493_v40 = vadd.f32 %v828_v32, %v976_v22  ;;  %v420_v41 = vpop.f32.mrb[3].mxu0  ;;  %v484_v42 = vpop.f32.mrb[3].mxu1 }
  0xf3   : > { %643 = vst.msk [vmem:[%s986_s7 + $0x10] sm:$0xff] %vm640_vm2, %v610_v37  ;;  %659 = vst.msk [vmem:[%s986_s7 + $0x90] sm:$0xff] %vm640_vm2, %v626_v38  ;;  %v608_v43 = vsel %vm544_vm5, %v418_v29, %v576_v35  ;;  %v624_v44 = vsel %vm560_vm6, %v482_v30, %v592_v36  ;;  %v421_v45 = vadd.f32 %v976_v22, %v420_v41 }
  0xf4   : > { %v485_v46 = vadd.f32 %v976_v22, %v484_v42  ;;  %641 = vst.msk [vmem:[%s986_s7] sm:$0xff] %vm640_vm2, %v608_v43  ;;  %657 = vst.msk [vmem:[%s986_s7 + $0x80] sm:$0xff] %vm640_vm2, %v624_v44  ;;  %vm547_vm7 = vcmp.ge.f32.partialorder %v429_v39, 0.0  ;;  %v579_v47 = vmul.f32 0.2, %v429_v39  ;;  %vm563_vm8 = vcmp.ge.f32.partialorder %v493_v40, 0.0 }
  0xf5   : > { %v595_v48 = vmul.f32 0.2, %v493_v40  ;;  %vm545_vm9 = vcmp.ge.f32.partialorder %v421_v45, 0.0  ;;  %v577_v49 = vmul.f32 0.2, %v421_v45  ;;  %v815_v53 = vpop.f32.mrb[4].mxu0 }
  0xf6   : > { %vm561_vm10 = vcmp.ge.f32.partialorder %v485_v46, 0.0  ;;  %v593_v50 = vmul.f32 0.2, %v485_v46  ;;  %v611_v51 = vsel %vm547_vm7, %v429_v39, %v579_v47  ;;  %v831_v54 = vpop.f32.mrb[4].mxu1  ;;  %v442_v57 = vadd.f32 %v815_v53, %v976_v22  ;;  %v433_v59 = vpop.f32.mrb[5].mxu0 }
  0xf7   : > { %v627_v52 = vsel %vm563_vm8, %v493_v40, %v595_v48  ;;  %644 = vst.msk [vmem:[%s986_s7 + $0x18] sm:$0xff] %vm640_vm2, %v611_v51  ;;  %v609_v55 = vsel %vm545_vm9, %v421_v45, %v577_v49  ;;  %v506_v58 = vadd.f32 %v831_v54, %v976_v22  ;;  %v497_v60 = vpop.f32.mrb[5].mxu1  ;;  %v434_v61 = vadd.f32 %v976_v22, %v433_v59  ;;  %v816_v63 = vpop.f32.mrb[6].mxu0 }
  0xf8   : > { %660 = vst.msk [vmem:[%s986_s7 + $0x98] sm:$0xff] %vm640_vm2, %v627_v52  ;;  %v625_v56 = vsel %vm561_vm10, %v485_v46, %v593_v50  ;;  %642 = vst.msk [vmem:[%s986_s7 + $0x8] sm:$0xff] %vm640_vm2, %v609_v55  ;;  %v498_v62 = vadd.f32 %v976_v22, %v497_v60  ;;  %v832_v0 = vpop.f32.mrb[6].mxu1  ;;  %vm550_vm11 = vcmp.ge.f32.partialorder %v442_v57, 0.0  ;;  %v582_v1 = vmul.f32 0.2, %v442_v57 }
  0xf9   : > { %658 = vst.msk [vmem:[%s986_s7 + $0x88] sm:$0xff] %vm640_vm2, %v625_v56  ;;  %vm566_vm12 = vcmp.ge.f32.partialorder %v506_v58, 0.0  ;;  %v598_v2 = vmul.f32 0.2, %v506_v58  ;;  %vm548_vm13 = vcmp.ge.f32.partialorder %v434_v61, 0.0  ;;  %v445_v7 = vadd.f32 %v816_v63, %v976_v22  ;;  %v436_v9 = vpop.f32.mrb[7].mxu0 }
  0xfa   : > { %v580_v3 = vmul.f32 0.2, %v434_v61  ;;  %vm564_vm14 = vcmp.ge.f32.partialorder %v498_v62, 0.0  ;;  %v596_v4 = vmul.f32 0.2, %v498_v62  ;;  %v614_v5 = vsel %vm550_vm11, %v442_v57, %v582_v1  ;;  %v500_v10 = vpop.f32.mrb[7].mxu1 }
  0xfb   : > { %v630_v6 = vsel %vm566_vm12, %v506_v58, %v598_v2  ;;  %v509_v8 = vadd.f32 %v832_v0, %v976_v22  ;;  %647 = vst.msk [vmem:[%s986_s7 + $0x30] sm:$0xff] %vm640_vm2, %v614_v5  ;;  %v437_v13 = vadd.f32 %v976_v22, %v436_v9  ;;  %v501_v14 = vadd.f32 %v976_v22, %v500_v10 }
  0xfc   : > { %663 = vst.msk [vmem:[%s986_s7 + $0xb0] sm:$0xff] %vm640_vm2, %v630_v6  ;;  %v612_v11 = vsel %vm548_vm13, %v434_v61, %v580_v3  ;;  %v628_v12 = vsel %vm564_vm14, %v498_v62, %v596_v4  ;;  %vm551_vm15 = vcmp.ge.f32.partialorder %v445_v7, 0.0  ;;  %v583_v15 = vmul.f32 0.2, %v445_v7 }
  0xfd   : > { %645 = vst.msk [vmem:[%s986_s7 + $0x20] sm:$0xff] %vm640_vm2, %v612_v11  ;;  %661 = vst.msk [vmem:[%s986_s7 + $0xa0] sm:$0xff] %vm640_vm2, %v628_v12  ;;  %vm567_vm0 = vcmp.ge.f32.partialorder %v509_v8, 0.0  ;;  %v599_v16 = vmul.f32 0.2, %v509_v8  ;;  %vm549_vm1 = vcmp.ge.f32.partialorder %v437_v13, 0.0 }
  0xfe   : > { %v581_v17 = vmul.f32 0.2, %v437_v13  ;;  %vm565_vm3 = vcmp.ge.f32.partialorder %v501_v14, 0.0  ;;  %v597_v18 = vmul.f32 0.2, %v501_v14  ;;  %v615_v19 = vsel %vm551_vm15, %v445_v7, %v583_v15  ;;  %v819_v21 = vpop.f32.mrb[8].mxu0 }
  0xff   : > { %v631_v20 = vsel %vm567_vm0, %v509_v8, %v599_v16  ;;  %v835_v23 = vpop.f32.mrb[8].mxu1  ;;  %648 = vst.msk [vmem:[%s986_s7 + $0x38] sm:$0xff] %vm640_vm2, %v615_v19  ;;  %v458_v26 = vadd.f32 %v819_v21, %v976_v22  ;;  %v449_v28 = vpop.f32.mrb[9].mxu0 }
 0x100   : > { %664 = vst.msk [vmem:[%s986_s7 + $0xb8] sm:$0xff] %vm640_vm2, %v631_v20  ;;  %v613_v24 = vsel %vm549_vm1, %v437_v13, %v581_v17  ;;  %v629_v25 = vsel %vm565_vm3, %v501_v14, %v597_v18  ;;  %v522_v27 = vadd.f32 %v835_v23, %v976_v22  ;;  %v513_v29 = vpop.f32.mrb[9].mxu1  ;;  %v450_v30 = vadd.f32 %v976_v22, %v449_v28  ;;  %v820_v32 = vpop.f32.mrb[10].mxu0 }
 0x101   : > { %646 = vst.msk [vmem:[%s986_s7 + $0x28] sm:$0xff] %vm640_vm2, %v613_v24  ;;  %662 = vst.msk [vmem:[%s986_s7 + $0xa8] sm:$0xff] %vm640_vm2, %v629_v25  ;;  %v514_v31 = vadd.f32 %v976_v22, %v513_v29  ;;  %v836_v33 = vpop.f32.mrb[10].mxu1  ;;  %vm554_vm4 = vcmp.ge.f32.partialorder %v458_v26, 0.0  ;;  %v586_v34 = vmul.f32 0.2, %v458_v26  ;;  %v461_v40 = vadd.f32 %v820_v32, %v976_v22 }
 0x102   : > { %vm570_vm5 = vcmp.ge.f32.partialorder %v522_v27, 0.0  ;;  %v602_v35 = vmul.f32 0.2, %v522_v27  ;;  %vm552_vm6 = vcmp.ge.f32.partialorder %v450_v30, 0.0  ;;  %v584_v36 = vmul.f32 0.2, %v450_v30 }
 0x103   : > { %vm568_vm7 = vcmp.ge.f32.partialorder %v514_v31, 0.0  ;;  %v600_v37 = vmul.f32 0.2, %v514_v31  ;;  %v618_v38 = vsel %vm554_vm4, %v458_v26, %v586_v34  ;;  %v525_v41 = vadd.f32 %v836_v33, %v976_v22  ;;  %v452_v42 = vpop.f32.mrb[11].mxu0  ;;  %v516_v43 = vpop.f32.mrb[11].mxu1 }
 0x104   : > { %v634_v39 = vsel %vm570_vm5, %v522_v27, %v602_v35  ;;  %651 = vst.msk [vmem:[%s986_s7 + $0x50] sm:$0xff] %vm640_vm2, %v618_v38  ;;  %v616_v44 = vsel %vm552_vm6, %v450_v30, %v584_v36  ;;  %v453_v46 = vadd.f32 %v976_v22, %v452_v42  ;;  %v517_v47 = vadd.f32 %v976_v22, %v516_v43 }
 0x105   : > { %667 = vst.msk [vmem:[%s986_s7 + $0xd0] sm:$0xff] %vm640_vm2, %v634_v39  ;;  %v632_v45 = vsel %vm568_vm7, %v514_v31, %v600_v37  ;;  %v823_v48 = vpop.f32.mrb[12].mxu0  ;;  %v839_v49 = vpop.f32.mrb[12].mxu1  ;;  %649 = vst.msk [vmem:[%s986_s7 + $0x40] sm:$0xff] %vm640_vm2, %v616_v44  ;;  %vm555_vm8 = vcmp.ge.f32.partialorder %v461_v40, 0.0  ;;  %vm571_vm9 = vcmp.ge.f32.partialorder %v525_v41, 0.0 }
 0x106   : > { %665 = vst.msk [vmem:[%s986_s7 + $0xc0] sm:$0xff] %vm640_vm2, %v632_v45  ;;  %v587_v50 = vmul.f32 0.2, %v461_v40  ;;  %v603_v51 = vmul.f32 0.2, %v525_v41  ;;  %vm553_vm10 = vcmp.ge.f32.partialorder %v453_v46, 0.0  ;;  %v474_v56 = vadd.f32 %v823_v48, %v976_v22 }
 0x107   : > { %v585_v52 = vmul.f32 0.2, %v453_v46  ;;  %vm569_vm11 = vcmp.ge.f32.partialorder %v517_v47, 0.0  ;;  %v601_v53 = vmul.f32 0.2, %v517_v47  ;;  %v538_v57 = vadd.f32 %v839_v49, %v976_v22  ;;  %v465_v58 = vpop.f32.mrb[13].mxu0 }
 0x108   : > { %v619_v54 = vsel %vm555_vm8, %v461_v40, %v587_v50  ;;  %v635_v55 = vsel %vm571_vm9, %v525_v41, %v603_v51  ;;  %v529_v59 = vpop.f32.mrb[13].mxu1  ;;  %v466_v62 = vadd.f32 %v976_v22, %v465_v58  ;;  %v824_v0 = vpop.f32.mrb[14].mxu0  ;;  %vm558_vm12 = vcmp.ge.f32.partialorder %v474_v56, 0.0 }
 0x109   : > { %652 = vst.msk [vmem:[%s986_s7 + $0x58] sm:$0xff] %vm640_vm2, %v619_v54  ;;  %668 = vst.msk [vmem:[%s986_s7 + $0xd8] sm:$0xff] %vm640_vm2, %v635_v55  ;;  %v617_v60 = vsel %vm553_vm10, %v453_v46, %v585_v52  ;;  %v633_v61 = vsel %vm569_vm11, %v517_v47, %v601_v53  ;;  %v530_v63 = vadd.f32 %v976_v22, %v529_v59  ;;  %v840_v1 = vpop.f32.mrb[14].mxu1  ;;  %v590_v2 = vmul.f32 0.2, %v474_v56  ;;  %v468_v10 = vpop.f32.mrb[15].mxu0 }
 0x10a   : > { %650 = vst.msk [vmem:[%s986_s7 + $0x48] sm:$0xff] %vm640_vm2, %v617_v60  ;;  %666 = vst.msk [vmem:[%s986_s7 + $0xc8] sm:$0xff] %vm640_vm2, %v633_v61  ;;  %vm574_vm13 = vcmp.ge.f32.partialorder %v538_v57, 0.0  ;;  %v606_v3 = vmul.f32 0.2, %v538_v57  ;;  %vm556_vm14 = vcmp.ge.f32.partialorder %v466_v62, 0.0  ;;  %v477_v8 = vadd.f32 %v824_v0, %v976_v22 }
 0x10b   : > { %v588_v4 = vmul.f32 0.2, %v466_v62  ;;  %vm572_vm15 = vcmp.ge.f32.partialorder %v530_v63, 0.0  ;;  %v604_v5 = vmul.f32 0.2, %v530_v63  ;;  %v622_v6 = vsel %vm558_vm12, %v474_v56, %v590_v2  ;;  %v532_v11 = vpop.f32.mrb[15].mxu1 }
 0x10c   : > { %v638_v7 = vsel %vm574_vm13, %v538_v57, %v606_v3  ;;  %v541_v9 = vadd.f32 %v840_v1, %v976_v22  ;;  %655 = vst.msk [vmem:[%s986_s7 + $0x70] sm:$0xff] %vm640_vm2, %v622_v6  ;;  %v469_v14 = vadd.f32 %v976_v22, %v468_v10  ;;  %v533_v15 = vadd.f32 %v976_v22, %v532_v11 }
 0x10d   : > { %671 = vst.msk [vmem:[%s986_s7 + $0xf0] sm:$0xff] %vm640_vm2, %v638_v7  ;;  %v620_v12 = vsel %vm556_vm14, %v466_v62, %v588_v4  ;;  %v636_v13 = vsel %vm572_vm15, %v530_v63, %v604_v5  ;;  %vm559_vm0 = vcmp.ge.f32.partialorder %v477_v8, 0.0  ;;  %v591_v16 = vmul.f32 0.2, %v477_v8 }
 0x10e   : > { %653 = vst.msk [vmem:[%s986_s7 + $0x60] sm:$0xff] %vm640_vm2, %v620_v12  ;;  %669 = vst.msk [vmem:[%s986_s7 + $0xe0] sm:$0xff] %vm640_vm2, %v636_v13  ;;  %vm575_vm1 = vcmp.ge.f32.partialorder %v541_v9, 0.0  ;;  %v607_v17 = vmul.f32 0.2, %v541_v9  ;;  %vm557_vm3 = vcmp.ge.f32.partialorder %v469_v14, 0.0 }
 0x10f   : > { %v589_v18 = vmul.f32 0.2, %v469_v14  ;;  %vm573_vm4 = vcmp.ge.f32.partialorder %v533_v15, 0.0  ;;  %v605_v19 = vmul.f32 0.2, %v533_v15  ;;  %v623_v20 = vsel %vm559_vm0, %v477_v8, %v591_v16 }
 0x110   : > { %v639_v21 = vsel %vm575_vm1, %v541_v9, %v607_v17  ;;  %656 = vst.msk [vmem:[%s986_s7 + $0x78] sm:$0xff] %vm640_vm2, %v623_v20 }
 0x111   : > { %672 = vst.msk [vmem:[%s986_s7 + $0xf8] sm:$0xff] %vm640_vm2, %v639_v21  ;;  %v621_v22 = vsel %vm557_vm3, %v469_v14, %v589_v18  ;;  %v637_v23 = vsel %vm573_vm4, %v533_v15, %v605_v19 }
 0x112   : > { %654 = vst.msk [vmem:[%s986_s7 + $0x68] sm:$0xff] %vm640_vm2, %v621_v22  ;;  %670 = vst.msk [vmem:[%s986_s7 + $0xe8] sm:$0xff] %vm640_vm2, %v637_v23 }
 0x113 PF: > { %s13_s12 = sadd.s32 1, %s888_s12  }
 0x114   : > { %p10_p4 = scmp.ge.s32.totalorder %s13_s12, 4  }
 0x116   :  { %12 = sbr.rel (!%p10_p4) target bundleno = 1 (0x1), region = 62 }

// kernel: encoder_depth_fwd.16
= control target key start
LH: loop header
LB: loop body
LE: loop exit
PB: predicated region body
PF: predicated region fallthrough
CT: control target
= control target key end

     0   :  { %s574_s12 = smov 0   ;;  %s638_s0 = inlined_call_operand.vmem [shape: bf16[128,72], index: 0, kind: input, shape index: {}]   ;;  %s639_s1 = inlined_call_operand.vmem [shape: bf16[72,16], index: 1, kind: input, shape index: {}]   ;;  %s640_s2 = inlined_call_operand.vmem [shape: f32[1,16], index: 2, kind: input, shape index: {}]   ;;  %s641_s3 = inlined_call_operand.vmem [shape: bf16[128,16], index: 3, kind: output, shape index: {}]  }
   0x1 LB: > { %s449_s13 = sadd.s32 4294967295, %s552_s12   ;;  %p453_p0 = scmp.ge.s32.totalorder %s552_s12, 1  ;;  %s552_s12 = sphi %s574_s12, %s13_s12  }
   0x2   : > { %p138_p1 = scmp.lt.s32.totalorder %s552_s12, 3 }
   0x4   : > { %p139_p2 = pnand %p453_p0, %p138_p1 }
   0x5   : > { %v537_v0 = vld [vmem:[%s639_s1] sm:$0xff] (!%p139_p2)   ;;  %v538_v1 = vld [vmem:[%s639_s1 + $0x8] sm:$0xff] (!%p139_p2)   ;;  %s454_s18 = sshll.u32 (!%p139_p2), %s449_s13, 3  ;;  %v539_v2 = vld [vmem:[%s639_s1 + $0x10] sm:$0xff] (!%p139_p2)   ;;  %vm246_vm0 = vcmask (!%p139_p2), 588800   ;;  %vm259_vm1 = vcmask (!%p139_p2), 1043456  }
   0x6   : > { %142 = sbr.rel (%p139_p2) target bundleno = 254 (0xfe), region = 32  ;;  %499 = vmatprep.subr.bf16.mxu0 (!%p139_p2), %v537_v0  ;;  %517 = vmatprep.subr.bf16.mxu1 (!%p139_p2), %v537_v0  ;;  %p163_p3 = scmp.lt.s32.totalorder (!%p139_p2), %s454_s18, 15  ;;  %v540_v3 = vld [vmem:[%s639_s1 + $0x18] sm:$0xff] (!%p139_p2)   ;;  %v541_v6 = vld [vmem:[%s639_s1 + $0x20] ss:$0 sps:$4 sm:$0xff] (!%p139_p2)   ;;  %vm384_vm2 = vcmask (!%p139_p2), 125952  }
   0x7   : > { %500 = vmatpush3.bf16.msra.mxu0 (!%p139_p2), %v537_v0  ;;  %522 = vmatpush3.bf16.msra.mxu1 (!%p139_p2), %v537_v0  ;;  %v261_v7 = vsel (!%p139_p2), %vm259_vm1, %v541_v6, 0  ;;  %v458_v10 = vld [vmem:[%s640_s2] ss:$0 sm:$0xff] (!%p139_p2) }
   0x8   : > { %501 = vmatprep.subr.bf16.mxu0 (!%p139_p2), %v538_v1  ;;  %518 = vmatprep.subr.bf16.mxu1 (!%p139_p2), %v538_v1 }
   0xb   : > { %502 = vmatpush3.bf16.msra.mxu0 (!%p139_p2), %v538_v1  ;;  %523 = vmatpush3.bf16.msra.mxu1 (!%p139_p2), %v538_v1 }
   0xc   : > { %503 = vmatprep.subr.bf16.mxu0 (!%p139_p2), %v539_v2  ;;  %519 = vmatprep.subr.bf16.mxu1 (!%p139_p2), %v539_v2 }
   0xd   : > { %s643_s18 = smov (!%p163_p3, %s454_s18), 15 }
   0xe   : > { %s455_s21 = sshll.u32 %s643_s18, 2 }
   0xf   : > { %s166_s26 = scalar_lea.vmem %s638_s0, %s455_s21  ;;  %504 = vmatpush3.bf16.msra.mxu0 %v539_v2  ;;  %524 = vmatpush3.bf16.msra.mxu1 %v539_v2  ;;  %s617_s6 = scalar_lea.vmem %s641_s3, %s455_s21 }
  0x10   : > { %v542_v4 = vld [vmem:[%s166_s26] sm:$0xff]   ;;  %v543_v5 = vld [vmem:[%s166_s26 + $0x10] sm:$0xff]   ;;  %505 = vmatprep.subr.bf16.mxu0 %v540_v3  ;;  %520 = vmatprep.subr.bf16.mxu1 %v540_v3  ;;  %v544_v8 = vld [vmem:[%s166_s26 + $0x8] sm:$0xff]  }
  0x11   : > { %509 = vmatprep.mubr.msk.bf16.mxu0 %vm246_vm0, %v542_v4  ;;  %513 = vmatprep.mubr.msk.bf16.mxu1 %vm246_vm0, %v543_v5  ;;  %v545_v9 = vld [vmem:[%s166_s26 + $0x18] sm:$0xff]  }
  0x13   : > { %506 = vmatpush3.bf16.msra.mxu0 %v540_v3  ;;  %525 = vmatpush3.bf16.msra.mxu1 %v540_v3 }
  0x14   : > { %527 = vmatprep.subr.msk.bf16.mxu0 %vm259_vm1, %v541_v6  ;;  %528 = vmatprep.subr.msk.bf16.mxu1 %vm259_vm1, %v541_v6 }
  0x17   : > { %508 = vmatpush3.bf16.msra.mxu0 %v261_v7  ;;  %526 = vmatpush3.bf16.msra.mxu1 %v261_v7 }
  0x1a   : > { %510 = vmatmul.mubr.msk.bf16.vlgmr.msra.gmra.mrb[0].mxu0 %vm246_vm0, %v544_v8  ;;  %514 = vmatmul.mubr.msk.bf16.vlgmr.msra.gmra.mrb[0].mxu1 %vm246_vm0, %v545_v9 }
  0xed   : > { %v511_v11 = vpop.f32.mrb[0].mxu0  ;;  %v515_v12 = vpop.f32.mrb[0].mxu1 }
  0xee   : > { %v306_v13 = vadd.f32 %v511_v11, %v458_v10  ;;  %v322_v14 = vadd.f32 %v515_v12, %v458_v10  ;;  %v297_v15 = vpop.f32.mrb[1].mxu0  ;;  %v313_v16 = vpop.f32.mrb[1].mxu1 }
  0xef   : > { %v298_v17 = vadd.f32 %v458_v10, %v297_v15  ;;  %v314_v18 = vadd.f32 %v458_v10, %v313_v16  ;;  %v512_v19 = vpop.f32.mrb[2].mxu0  ;;  %v516_v20 = vpop.f32.mrb[2].mxu1 }
  0xf0   : > { %vm330_vm3 = vcmp.ge.f32.partialorder %v306_v13, 0.0  ;;  %v338_v21 = vmul.f32 0.2, %v306_v13  ;;  %vm334_vm4 = vcmp.ge.f32.partialorder %v322_v14, 0.0  ;;  %v342_v22 = vmul.f32 0.2, %v322_v14 }
  0xf1   : > { %vm328_vm5 = vcmp.ge.f32.partialorder %v298_v17, 0.0  ;;  %v336_v23 = vmul.f32 0.2, %v298_v17  ;;  %vm332_vm6 = vcmp.ge.f32.partialorder %v314_v18, 0.0  ;;  %v340_v24 = vmul.f32 0.2, %v314_v18 }
  0xf2   : > { %v346_v25 = vsel %vm330_vm3, %v306_v13, %v338_v21  ;;  %v350_v26 = vsel %vm334_vm4, %v322_v14, %v342_v22  ;;  %v309_v27 = vadd.f32 %v512_v19, %v458_v10  ;;  %v325_v28 = vadd.f32 %v516_v20, %v458_v10  ;;  %v300_v29 = vpop.f32.mrb[3].mxu0  ;;  %v316_v30 = vpop.f32.mrb[3].mxu1 }
  0xf3   : > { %v484_v31 = vpack.c.bf16 %v346_v25, %v346_v25  ;;  %v488_v32 = vpack.c.bf16 %v350_v26, %v350_v26  ;;  %v344_v33 = vsel %vm328_vm5, %v298_v17, %v336_v23  ;;  %v348_v34 = vsel %vm332_vm6, %v314_v18, %v340_v24 }
  0xf4   : > { %v482_v35 = vpack.c.bf16 %v344_v33, %v344_v33  ;;  %v486_v36 = vpack.c.bf16 %v348_v34, %v348_v34  ;;  %vm331_vm7 = vcmp.ge.f32.partialorder %v309_v27, 0.0  ;;  %v339_v37 = vmul.f32 0.2, %v309_v27 }
  0xf5   : > { %387 = vst.msk [vmem:[%s617_s6 + $0x8] sm:$0xf] %vm384_vm2, %v484_v31  ;;  %391 = vst.msk [vmem:[%s617_s6 + $0x18] sm:$0xf] %vm384_vm2, %v488_v32  ;;  %vm335_vm8 = vcmp.ge.f32.partialorder %v325_v28, 0.0  ;;  %v301_v39 = vadd.f32 %v458_v10, %v300_v29  ;;  %v317_v40 = vadd.f32 %v458_v10, %v316_v30 }
  0xf6   : > { %v343_v38 = vmul.f32 0.2, %v325_v28  ;;  %385 = vst.msk [vmem:[%s617_s6] sm:$0xf] %vm384_vm2, %v482_v35  ;;  %389 = vst.msk [vmem:[%s617_s6 + $0x10] sm:$0xf] %vm384_vm2, %v486_v36  ;;  %v347_v41 = vsel %vm331_vm7, %v309_v27, %v339_v37 }
  0xf7   : > { %v485_v42 = vpack.c.bf16 %v347_v41, %v347_v41  ;;  %vm329_vm9 = vcmp.ge.f32.partialorder %v301_v39, 0.0  ;;  %v337_v44 = vmul.f32 0.2, %v301_v39  ;;  %vm333_vm10 = vcmp.ge.f32.partialorder %v317_v40, 0.0 }
  0xf8   : > { %v351_v43 = vsel %vm335_vm8, %v325_v28, %v343_v38  ;;  %v341_v46 = vmul.f32 0.2, %v317_v40 }
  0xf9   : > { %v489_v45 = vpack.c.bf16 %v351_v43, %v351_v43  ;;  %388 = vst.msk [vmem:[%s617_s6 + $0xc] sm:$0xf] %vm384_vm2, %v485_v42  ;;  %v345_v47 = vsel %vm329_vm9, %v301_v39, %v337_v44 }
  0xfa   : > { %v483_v48 = vpack.c.bf16 %v345_v47, %v345_v47  ;;  %v349_v49 = vsel %vm333_vm10, %v317_v40, %v341_v46 }
  0xfb   : > { %392 = vst.msk [vmem:[%s617_s6 + $0x1c] sm:$0xf] %vm384_vm2, %v489_v45  ;;  %v487_v50 = vpack.c.bf16 %v349_v49, %v349_v49 }
  0xfc   : > { %386 = vst.msk [vmem:[%s617_s6 + $0x4] sm:$0xf] %vm384_vm2, %v483_v48 }
  0xfd   : > { %390 = vst.msk [vmem:[%s617_s6 + $0x14] sm:$0xf] %vm384_vm2, %v487_v50 }
  0xfe PF: > { %s13_s12 = sadd.s32 1, %s552_s12  }
  0xff   : > { %p10_p4 = scmp.ge.s32.totalorder %s13_s12, 4  }
 0x101   :  { %12 = sbr.rel (!%p10_p4) target bundleno = 1 (0x1), region = 62 }

// kernel: encoder_depth_fwd.17
= control target key start
LH: loop header
LB: loop body
LE: loop exit
PB: predicated region body
PF: predicated region fallthrough
CT: control target
= control target key end

     0   :  { %s579_s12 = smov 0   ;;  %s665_s0 = inlined_call_operand.vmem [shape: bf16[128,144], index: 0, kind: input, shape index: {}]   ;;  %s666_s1 = inlined_call_operand.vmem [shape: bf16[144,16], index: 1, kind: input, shape index: {}]   ;;  %s667_s2 = inlined_call_operand.vmem [shape: f32[1,16], index: 2, kind: input, shape index: {}]   ;;  %s668_s3 = inlined_call_operand.vmem [shape: f32[128,16], index: 3, kind: output, shape index: {}]  }
   0x1 LB: > { %s467_s13 = sadd.s32 4294967295, %s556_s12   ;;  %p471_p0 = scmp.ge.s32.totalorder %s556_s12, 1  ;;  %s556_s12 = sphi %s579_s12, %s13_s12  }
   0x2   : > { %p139_p1 = scmp.lt.s32.totalorder %s556_s12, 3 }
   0x4   : > { %p140_p2 = pnand %p471_p0, %p139_p1 }
   0x5   : > { %v529_v0 = vld [vmem:[%s666_s1] sm:$0xff] (!%p140_p2)   ;;  %v558_v1 = vmov (!%p140_p2), 0   ;;  %s472_s16 = sshll.u32 (!%p140_p2), %s467_s13, 3  ;;  %v530_v2 = vld [vmem:[%s666_s1 + $0x8] sm:$0xff] (!%p140_p2)   ;;  %v531_v3 = vld [vmem:[%s666_s1 + $0x10] sm:$0xff] (!%p140_p2)   ;;  %vm301_vm0 = vcmask (!%p140_p2), 130048  }
   0x6   : > { %143 = sbr.rel (%p140_p2) target bundleno = 272 (0x110), region = 32  ;;  %314 = vmatprep.subr.bf16.mxu0 (!%p140_p2), %v558_v1  ;;  %502 = vmatprep.subr.bf16.mxu1 (!%p140_p2), %v558_v1  ;;  %p165_p3 = scmp.lt.s32.totalorder (!%p140_p2), %s472_s16, 15  ;;  %v532_v4 = vld [vmem:[%s666_s1 + $0x18] sm:$0xff] (!%p140_p2)   ;;  %v533_v7 = vld [vmem:[%s666_s1 + $0x20] sm:$0xff] (!%p140_p2)   ;;  %v534_v8 = vld [vmem:[%s666_s1 + $0x28] sm:$0xff] (!%p140_p2)  }
   0x7   : > { %315 = vmatpush1.bf16.msra.mxu0 (!%p140_p2), %v529_v0  ;;  %511 = vmatpush1.bf16.msra.mxu1 (!%p140_p2), %v529_v0  ;;  %v535_v9 = vld [vmem:[%s666_s1 + $0x30] sm:$0xff] (!%p140_p2)   ;;  %v536_v10 = vld [vmem:[%s666_s1 + $0x38] sm:$0xff] (!%p140_p2)   ;;  %v537_v11 = vld [vmem:[%s666_s1 + $0x40] sm:$0xff] (!%p140_p2)  }
   0x8   : > { %316 = vmatprep.subr.bf16.mxu0 (!%p140_p2), %v558_v1  ;;  %503 = vmatprep.subr.bf16.mxu1 (!%p140_p2), %v558_v1  ;;  %v477_v18 = vld [vmem:[%s667_s2] ss:$0 sm:$0xff] (!%p140_p2) }
   0xb   : > { %317 = vmatpush1.bf16.msra.mxu0 (!%p140_p2), %v530_v2  ;;  %512 = vmatpush1.bf16.msra.mxu1 (!%p140_p2), %v530_v2 }
   0xc   : > { %318 = vmatprep.subr.bf16.mxu0 (!%p140_p2), %v558_v1  ;;  %504 = vmatprep.subr.bf16.mxu1 (!%p140_p2), %v558_v1 }
   0xd   : > { %s670_s16 = smov (!%p165_p3, %s472_s16), 15 }
   0xe   : > { %s501_s21 = sshll.u32 %s670_s16, 3 }
   0xf   : > { %s604_s24 = scalar_lea.vmem %s665_s0, %s501_s21  ;;  %319 = vmatpush1.bf16.msra.mxu0 %v531_v3  ;;  %513 = vmatpush1.bf16.msra.mxu1 %v531_v3  ;;  %s644_s15 = scalar_lea.vmem %s668_s3, %s501_s21 }
  0x10   : > { %v540_v5 = vld [vmem:[%s604_s24 + $0x4] ss:$8 sps:$4 sm:$0xff]   ;;  %320 = vmatprep.subr.bf16.mxu0 %v558_v1  ;;  %505 = vmatprep.subr.bf16.mxu1 %v558_v1  ;;  %v538_v12 = vld [vmem:[%s604_s24] ss:$8 sps:$4 sm:$0xff]   ;;  %v544_v14 = vld [vmem:[%s604_s24 + $0x14] ss:$8 sps:$4 sm:$0xff]  }
  0x11   : > { %v543_v6 = vld [vmem:[%s604_s24 + $0x24] ss:$8 sps:$4 sm:$0xff]   ;;  %495 = vmatprep.mubr.msk.bf16.mxu0 %vm301_vm0, %v540_v5  ;;  %v541_v13 = vld [vmem:[%s604_s24 + $0x20] ss:$8 sps:$4 sm:$0xff]   ;;  %v546_v15 = vld [vmem:[%s604_s24 + $0x34] ss:$8 sps:$4 sm:$0xff]  }
  0x12   : > { %497 = vmatprep.mubr.msk.bf16.mxu1 %vm301_vm0, %v543_v6  ;;  %v548_v16 = vld [vmem:[%s604_s24 + $0x10] ss:$8 sps:$4 sm:$0xff]  }
  0x13   : > { %321 = vmatpush1.bf16.msra.mxu0 %v532_v4  ;;  %514 = vmatpush1.bf16.msra.mxu1 %v532_v4  ;;  %v549_v17 = vld [vmem:[%s604_s24 + $0x30] ss:$8 sps:$4 sm:$0xff]  }
  0x14   : > { %322 = vmatprep.subr.bf16.mxu0 %v558_v1  ;;  %506 = vmatprep.subr.bf16.mxu1 %v558_v1 }
  0x17   : > { %323 = vmatpush1.bf16.msra.mxu0 %v533_v7  ;;  %515 = vmatpush1.bf16.msra.mxu1 %v533_v7 }
  0x18   : > { %324 = vmatprep.subr.bf16.mxu0 %v558_v1  ;;  %507 = vmatprep.subr.bf16.mxu1 %v558_v1 }
  0x1b   : > { %325 = vmatpush1.bf16.msra.mxu0 %v534_v8  ;;  %516 = vmatpush1.bf16.msra.mxu1 %v534_v8 }
  0x1c   : > { %326 = vmatprep.subr.bf16.mxu0 %v558_v1  ;;  %508 = vmatprep.subr.bf16.mxu1 %v558_v1 }
  0x1f   : > { %327 = vmatpush1.bf16.msra.mxu0 %v535_v9  ;;  %517 = vmatpush1.bf16.msra.mxu1 %v535_v9 }
  0x20   : > { %328 = vmatprep.subr.bf16.mxu0 %v558_v1  ;;  %509 = vmatprep.subr.bf16.mxu1 %v558_v1 }
  0x23   : > { %329 = vmatpush1.bf16.msra.mxu0 %v536_v10  ;;  %518 = vmatpush1.bf16.msra.mxu1 %v536_v10 }
  0x24   : > { %330 = vmatprep.subr.bf16.mxu0 %v558_v1  ;;  %510 = vmatprep.subr.bf16.mxu1 %v558_v1 }
  0x27   : > { %331 = vmatpush1.bf16.msra.mxu0 %v537_v11  ;;  %519 = vmatpush1.bf16.msra.mxu1 %v537_v11 }
  0x2a   : > { %347 = vmatmul.mubr.bf16.vlgmr.msra.gmra.mrb[0].mxu0 %v538_v12  ;;  %363 = vmatmul.mubr.bf16.vlgmr.msra.gmra.mrb[0].mxu1 %v541_v13 }
  0x2b   : > { %496 = vmatprep.mubr.msk.bf16.mxu0 %vm301_vm0, %v544_v14  ;;  %498 = vmatprep.mubr.msk.bf16.mxu1 %vm301_vm0, %v546_v15 }
  0x32   : > { %355 = vmatmul.mubr.bf16.gmra.mrb[4].mxu0 %v548_v16  ;;  %371 = vmatmul.mubr.bf16.gmra.mrb[4].mxu1 %v549_v17 }
  0xfd   : > { %v348_v19 = vpop.f32.mrb[0].mxu0  ;;  %v364_v20 = vpop.f32.mrb[0].mxu1 }
  0xfe   : > { %v349_v21 = vadd.f32 %v477_v18, %v348_v19  ;;  %v365_v22 = vadd.f32 %v477_v18, %v364_v20  ;;  %v350_v23 = vpop.f32.mrb[1].mxu0  ;;  %v366_v24 = vpop.f32.mrb[1].mxu1 }
  0xff   : > { %v351_v25 = vpop.f32.mrb[2].mxu0  ;;  %v367_v26 = vpop.f32.mrb[2].mxu1 }
 0x100   : > { %vm379_vm1 = vcmp.ge.f32.partialorder %v349_v21, 0.0  ;;  %v387_v27 = vmul.f32 0.2, %v349_v21  ;;  %vm383_vm2 = vcmp.ge.f32.partialorder %v365_v22, 0.0  ;;  %v391_v28 = vmul.f32 0.2, %v365_v22 }
 0x101   : > { %v352_v29 = vadd.f32 %v477_v18, %v351_v25  ;;  %v368_v30 = vadd.f32 %v477_v18, %v367_v26  ;;  %v353_v31 = vpop.f32.mrb[3].mxu0  ;;  %v369_v32 = vpop.f32.mrb[3].mxu1 }
 0x102   : > { %v395_v33 = vsel %vm379_vm1, %v349_v21, %v387_v27  ;;  %v399_v34 = vsel %vm383_vm2, %v365_v22, %v391_v28 }
 0x103   : > { %403 = vst.msk [vmem:[%s644_s15] sm:$0xff] %vm301_vm0, %v395_v33  ;;  %407 = vst.msk [vmem:[%s644_s15 + $0x20] sm:$0xff] %vm301_vm0, %v399_v34  ;;  %vm380_vm3 = vcmp.ge.f32.partialorder %v352_v29, 0.0  ;;  %v388_v35 = vmul.f32 0.2, %v352_v29  ;;  %vm384_vm4 = vcmp.ge.f32.partialorder %v368_v30, 0.0 }
 0x104   : > { %v392_v36 = vmul.f32 0.2, %v368_v30 }
 0x105   : > { %v396_v37 = vsel %vm380_vm3, %v352_v29, %v388_v35  ;;  %v356_v39 = vpop.f32.mrb[4].mxu0  ;;  %v372_v40 = vpop.f32.mrb[4].mxu1 }
 0x106   : > { %v400_v38 = vsel %vm384_vm4, %v368_v30, %v392_v36  ;;  %404 = vst.msk [vmem:[%s644_s15 + $0x8] sm:$0xff] %vm301_vm0, %v396_v37  ;;  %v357_v41 = vadd.f32 %v477_v18, %v356_v39  ;;  %v373_v42 = vadd.f32 %v477_v18, %v372_v40  ;;  %v358_v43 = vpop.f32.mrb[5].mxu0  ;;  %v374_v44 = vpop.f32.mrb[5].mxu1 }
 0x107   : > { %408 = vst.msk [vmem:[%s644_s15 + $0x28] sm:$0xff] %vm301_vm0, %v400_v38  ;;  %v359_v45 = vpop.f32.mrb[6].mxu0  ;;  %v375_v46 = vpop.f32.mrb[6].mxu1 }
 0x108   : > { %vm381_vm5 = vcmp.ge.f32.partialorder %v357_v41, 0.0  ;;  %v389_v47 = vmul.f32 0.2, %v357_v41  ;;  %vm385_vm6 = vcmp.ge.f32.partialorder %v373_v42, 0.0  ;;  %v393_v48 = vmul.f32 0.2, %v373_v42 }
 0x109   : > { %v360_v49 = vadd.f32 %v477_v18, %v359_v45  ;;  %v376_v50 = vadd.f32 %v477_v18, %v375_v46  ;;  %v361_v51 = vpop.f32.mrb[7].mxu0  ;;  %v377_v52 = vpop.f32.mrb[7].mxu1 }
 0x10a   : > { %v397_v53 = vsel %vm381_vm5, %v357_v41, %v389_v47  ;;  %v401_v54 = vsel %vm385_vm6, %v373_v42, %v393_v48 }
 0x10b   : > { %405 = vst.msk [vmem:[%s644_s15 + $0x10] sm:$0xff] %vm301_vm0, %v397_v53  ;;  %409 = vst.msk [vmem:[%s644_s15 + $0x30] sm:$0xff] %vm301_vm0, %v401_v54  ;;  %vm382_vm7 = vcmp.ge.f32.partialorder %v360_v49, 0.0  ;;  %v390_v55 = vmul.f32 0.2, %v360_v49  ;;  %vm386_vm8 = vcmp.ge.f32.partialorder %v376_v50, 0.0 }
 0x10c   : > { %v394_v56 = vmul.f32 0.2, %v376_v50 }
 0x10d   : > { %v398_v57 = vsel %vm382_vm7, %v360_v49, %v390_v55 }
 0x10e   : > { %v402_v58 = vsel %vm386_vm8, %v376_v50, %v394_v56  ;;  %406 = vst.msk [vmem:[%s644_s15 + $0x18] sm:$0xff] %vm301_vm0, %v398_v57 }
 0x10f   : > { %410 = vst.msk [vmem:[%s644_s15 + $0x38] sm:$0xff] %vm301_vm0, %v402_v58 }
 0x110 PF: > { %s13_s12 = sadd.s32 1, %s556_s12  }
 0x111   : > { %p10_p4 = scmp.ge.s32.totalorder %s13_s12, 4  }
 0x113   :  { %12 = sbr.rel (!%p10_p4) target bundleno = 1 (0x1), region = 62 }

// kernel: encoder_depth_fwd.18
= control target key start
LH: loop header
LB: loop body
LE: loop exit
PB: predicated region body
PF: predicated region fallthrough
CT: control target
= control target key end

     0   :  { %v267_v0 = vmov 0   ;;  %vm116_vm0 = vcmask 130048   ;;  %vm200_vm3 = vcmask 257024   ;;  %s342_s1 = inlined_call_operand.vmem [shape: bf16[144,32], index: 1, kind: input, shape index: {}]   ;;  %s343_s0 = inlined_call_operand.vmem [shape: bf16[32,144], index: 0, kind: input, shape index: {}]   ;;  %s344_s2 = inlined_call_operand.vmem [shape: f32[1,32], index: 2, kind: input, shape index: {}]   ;;  %s345_s3 = inlined_call_operand.vmem [shape: bf16[32,32], index: 3, kind: output, shape index: {}]  }
   0x1   :  { %123 = vmatprep.subr.bf16.mxu0 %v267_v0  ;;  %233 = vmatprep.subr.bf16.mxu1 %v267_v0  ;;  %v252_v1 = vld [vmem:[%s342_s1] sm:$0xff]   ;;  %v253_v2 = vld [vmem:[%s342_s1 + $0x8] sm:$0xff]   ;;  %v254_v3 = vld [vmem:[%s342_s1 + $0x10] sm:$0xff]  }
   0x2   :  { %124 = vmatpush1.bf16.msra.mxu0 %v252_v1  ;;  %242 = vmatpush1.bf16.msra.mxu1 %v252_v1  ;;  %v255_v4 = vld [vmem:[%s342_s1 + $0x18] sm:$0xff]   ;;  %v263_v5 = vld [vmem:[%s343_s0 + $0x4] ss:$8 sps:$4 sm:$0xff]   ;;  %v258_v9 = vld [vmem:[%s342_s1 + $0x30] sm:$0xff]  }
   0x3   :  { %125 = vmatprep.subr.bf16.mxu0 %v267_v0  ;;  %234 = vmatprep.subr.bf16.mxu1 %v267_v0  ;;  %v266_v6 = vld [vmem:[%s343_s0 + $0x14] ss:$8 sps:$4 sm:$0xff]   ;;  %v256_v7 = vld [vmem:[%s342_s1 + $0x20] sm:$0xff]   ;;  %v257_v8 = vld [vmem:[%s342_s1 + $0x28] sm:$0xff]  }
   0x4   :  { %223 = vmatprep.mubr.msk.bf16.mxu0 %vm116_vm0, %v263_v5  ;;  %224 = vmatprep.mubr.msk.bf16.mxu1 %vm116_vm0, %v266_v6  ;;  %v259_v10 = vld [vmem:[%s342_s1 + $0x38] sm:$0xff]   ;;  %v260_v11 = vld [vmem:[%s342_s1 + $0x40] sm:$0xff]  }
   0x5   :  { %v261_v12 = vld [vmem:[%s343_s0] ss:$8 sps:$4 sm:$0xff]   ;;  %v264_v13 = vld [vmem:[%s343_s0 + $0x10] ss:$8 sps:$4 sm:$0xff]  }
   0x6   :  { %126 = vmatpush1.bf16.msra.mxu0 %v253_v2  ;;  %243 = vmatpush1.bf16.msra.mxu1 %v253_v2  ;;  %v209_v14 = vld [vmem:[%s344_s2] ss:$0 sm:$0xff] }
   0x7   :  { %127 = vmatprep.subr.bf16.mxu0 %v267_v0  ;;  %235 = vmatprep.subr.bf16.mxu1 %v267_v0 }
   0xa   :  { %128 = vmatpush1.bf16.msra.mxu0 %v254_v3  ;;  %244 = vmatpush1.bf16.msra.mxu1 %v254_v3 }
   0xb   :  { %129 = vmatprep.subr.bf16.mxu0 %v267_v0  ;;  %236 = vmatprep.subr.bf16.mxu1 %v267_v0 }
   0xe   :  { %130 = vmatpush1.bf16.msra.mxu0 %v255_v4  ;;  %245 = vmatpush1.bf16.msra.mxu1 %v255_v4 }
   0xf   :  { %131 = vmatprep.subr.bf16.mxu0 %v267_v0  ;;  %237 = vmatprep.subr.bf16.mxu1 %v267_v0 }
  0x12   :  { %132 = vmatpush1.bf16.msra.mxu0 %v256_v7  ;;  %246 = vmatpush1.bf16.msra.mxu1 %v256_v7 }
  0x13   :  { %133 = vmatprep.subr.bf16.mxu0 %v267_v0  ;;  %238 = vmatprep.subr.bf16.mxu1 %v267_v0 }
  0x16   :  { %134 = vmatpush1.bf16.msra.mxu0 %v257_v8  ;;  %247 = vmatpush1.bf16.msra.mxu1 %v257_v8 }
  0x17   :  { %135 = vmatprep.subr.bf16.mxu0 %v267_v0  ;;  %239 = vmatprep.subr.bf16.mxu1 %v267_v0 }
  0x1a   :  { %136 = vmatpush1.bf16.msra.mxu0 %v258_v9  ;;  %248 = vmatpush1.bf16.msra.mxu1 %v258_v9 }
  0x1b   :  { %137 = vmatprep.subr.bf16.mxu0 %v267_v0  ;;  %240 = vmatprep.subr.bf16.mxu1 %v267_v0 }
  0x1e   :  { %138 = vmatpush1.bf16.msra.mxu0 %v259_v10  ;;  %249 = vmatpush1.bf16.msra.mxu1 %v259_v10 }
  0x1f   :  { %139 = vmatprep.subr.bf16.mxu0 %v267_v0  ;;  %241 = vmatprep.subr.bf16.mxu1 %v267_v0 }
  0x22   :  { %140 = vmatpush1.bf16.msra.mxu0 %v260_v11  ;;  %250 = vmatpush1.bf16.msra.mxu1 %v260_v11 }
  0x25   :  { %156 = vmatmul.mubr.bf16.vlgmr.msra.gmra.mrb[0].mxu0 %v261_v12  ;;  %164 = vmatmul.mubr.bf16.vlgmr.msra.gmra.mrb[0].mxu1 %v264_v13 }
  0xf8   :  { %v157_v15 = vpop.f32.mrb[0].mxu0  ;;  %v165_v16 = vpop.f32.mrb[0].mxu1 }
  0xf9   :  { %v158_v17 = vadd.f32 %v209_v14, %v157_v15  ;;  %v166_v18 = vadd.f32 %v209_v14, %v165_v16  ;;  %v159_v19 = vpop.f32.mrb[1].mxu0  ;;  %v167_v20 = vpop.f32.mrb[1].mxu1 }
  0xfa   :  { %v160_v21 = vpop.f32.mrb[2].mxu0  ;;  %v168_v22 = vpop.f32.mrb[2].mxu1 }
  0xfb   :  { %vm172_vm1 = vcmp.ge.f32.partialorder %v158_v17, 0.0  ;;  %v176_v23 = vmul.f32 0.2, %v158_v17  ;;  %vm174_vm2 = vcmp.ge.f32.partialorder %v166_v18, 0.0  ;;  %v178_v24 = vmul.f32 0.2, %v166_v18 }
  0xfc   :  { %v161_v25 = vadd.f32 %v209_v14, %v160_v21  ;;  %v169_v26 = vadd.f32 %v209_v14, %v168_v22  ;;  %v162_v27 = vpop.f32.mrb[3].mxu0  ;;  %v170_v28 = vpop.f32.mrb[3].mxu1 }
  0xfd   :  { %v180_v29 = vsel %vm172_vm1, %v158_v17, %v176_v23  ;;  %v182_v30 = vsel %vm174_vm2, %v166_v18, %v178_v24 }
  0xfe   :  { %v229_v31 = vpack.c.bf16 %v180_v29, %v180_v29  ;;  %v231_v32 = vpack.c.bf16 %v182_v30, %v182_v30  ;;  %vm173_vm4 = vcmp.ge.f32.partialorder %v161_v25, 0.0  ;;  %v177_v33 = vmul.f32 0.2, %v161_v25 }
  0xff   :  { %vm175_vm5 = vcmp.ge.f32.partialorder %v169_v26, 0.0  ;;  %v179_v34 = vmul.f32 0.2, %v169_v26 }
 0x100   :  { %201 = vst.msk [vmem:[%s345_s3] sm:$0xf] %vm200_vm3, %v229_v31  ;;  %203 = vst.msk [vmem:[%s345_s3 + $0x8] sm:$0xf] %vm200_vm3, %v231_v32  ;;  %v181_v35 = vsel %vm173_vm4, %v161_v25, %v177_v33 }
 0x101   :  { %v230_v36 = vpack.c.bf16 %v181_v35, %v181_v35  ;;  %v183_v37 = vsel %vm175_vm5, %v169_v26, %v179_v34 }
 0x102   :  { %v232_v38 = vpack.c.bf16 %v183_v37, %v183_v37 }
 0x103   :  { %202 = vst.msk [vmem:[%s345_s3 + $0x4] sm:$0xf] %vm200_vm3, %v230_v36 }
 0x104   :  { %204 = vst.msk [vmem:[%s345_s3 + $0xc] sm:$0xf] %vm200_vm3, %v232_v38 }

// kernel: encoder_depth_fwd.19
= control target key start
LH: loop header
LB: loop body
LE: loop exit
PB: predicated region body
PF: predicated region fallthrough
CT: control target
= control target key end

     0   :  { %vm204_vm0 = vcmask 261120   ;;  %s535_s1 = inlined_call_operand.vmem [shape: bf16[288,32], index: 1, kind: input, shape index: {}]   ;;  %s536_s0 = inlined_call_operand.vmem [shape: bf16[32,288], index: 0, kind: input, shape index: {}]   ;;  %s537_s2 = inlined_call_operand.vmem [shape: f32[1,32], index: 2, kind: input, shape index: {}]   ;;  %s538_s3 = inlined_call_operand.vmem [shape: f32[32,32], index: 3, kind: output, shape index: {}]  }
   0x1   :  { %v396_v0 = vld [vmem:[%s535_s1 + $0x40] sm:$0xff]   ;;  %v398_v2 = vld [vmem:[%s535_s1 + $0x48] sm:$0xff]   ;;  %v400_v4 = vld [vmem:[%s535_s1 + $0x50] sm:$0xff]  }
   0x2   :  { %v397_v1 = vld [vmem:[%s535_s1] sm:$0xff]   ;;  %356 = vmatprep.subr.bf16.mxu0 %v396_v0  ;;  %v399_v3 = vld [vmem:[%s535_s1 + $0x8] sm:$0xff]   ;;  %v401_v5 = vld [vmem:[%s535_s1 + $0x10] sm:$0xff]  }
   0x3   :  { %357 = vmatpush3.bf16.msra.mxu0 %v397_v1  ;;  %v402_v6 = vld [vmem:[%s535_s1 + $0x58] sm:$0xff]   ;;  %v404_v8 = vld [vmem:[%s535_s1 + $0x60] sm:$0xff]   ;;  %v406_v11 = vld [vmem:[%s535_s1 + $0x68] sm:$0xff]  }
   0x4   :  { %358 = vmatprep.subr.bf16.mxu0 %v398_v2  ;;  %v403_v7 = vld [vmem:[%s535_s1 + $0x18] sm:$0xff]   ;;  %v405_v9 = vld [vmem:[%s535_s1 + $0x20] sm:$0xff]   ;;  %v407_v12 = vld [vmem:[%s535_s1 + $0x28] sm:$0xff]  }
   0x5   :  { %v411_v10 = vld [vmem:[%s535_s1 + $0x80] sm:$0xff]   ;;  %v408_v13 = vld [vmem:[%s535_s1 + $0x70] sm:$0xff]   ;;  %v416_v15 = vld [vmem:[%s535_s1 + $0x88] sm:$0xff]  }
   0x6   :  { %388 = vmatprep.subr.bf16.mxu1 %v411_v10  ;;  %v415_v14 = vld [vmem:[%s536_s0 + $0x4] ss:$12 sps:$4 sm:$0xff]   ;;  %v417_v16 = vld [vmem:[%s536_s0 + $0x8] ss:$12 sps:$4 sm:$0xff]   ;;  %v418_v17 = vld [vmem:[%s536_s0 + $0x20] ss:$12 sps:$4 sm:$0xff]  }
   0x7   :  { %359 = vmatpush3.bf16.msra.mxu0 %v399_v3  ;;  %389 = vmatpush3.bf16.msra.mxu1 %v411_v10  ;;  %v409_v18 = vld [vmem:[%s535_s1 + $0x30] sm:$0xff]   ;;  %v410_v19 = vld [vmem:[%s535_s1 + $0x78] sm:$0xff]   ;;  %v413_v21 = vld [vmem:[%s536_s0] ss:$12 sps:$4 sm:$0xff]  }
   0x8   :  { %360 = vmatprep.subr.bf16.mxu0 %v400_v4  ;;  %243 = vmatprep.mubr.bf16.mxu0 %v415_v14  ;;  %v412_v20 = vld [vmem:[%s535_s1 + $0x38] sm:$0xff]   ;;  %v329_v30 = vld [vmem:[%s537_s2] ss:$0 sm:$0xff] }
   0x9   :  { %390 = vmatprep.subr.bf16.mxu1 %v416_v15  ;;  %392 = vmatprep.mubr.msk.bf16.mxu1 %vm204_vm0, %v417_v16  ;;  %v419_v22 = vld [vmem:[%s536_s0 + $0x1c] ss:$12 sps:$4 sm:$0xff]   ;;  %v421_v23 = vld [vmem:[%s536_s0 + $0x18] ss:$12 sps:$4 sm:$0xff]  }
   0xb   :  { %361 = vmatpush3.bf16.msra.mxu0 %v401_v5  ;;  %391 = vmatpush3.bf16.msra.mxu1 %v416_v15 }
   0xc   :  { %362 = vmatprep.subr.bf16.mxu0 %v402_v6 }
   0xe   :  { %393 = vmatmul.mubr.msk.bf16.vlgmr.msra.gmra.mrb[0].mxu1 %vm204_vm0, %v418_v17 }
   0xf   :  { %363 = vmatpush3.bf16.msra.mxu0 %v403_v7 }
  0x10   :  { %364 = vmatprep.subr.bf16.mxu0 %v404_v8 }
  0x13   :  { %365 = vmatpush3.bf16.msra.mxu0 %v405_v9 }
  0x14   :  { %366 = vmatprep.subr.bf16.mxu0 %v406_v11 }
  0x17   :  { %367 = vmatpush3.bf16.msra.mxu0 %v407_v12 }
  0x18   :  { %368 = vmatprep.subr.bf16.mxu0 %v408_v13 }
  0x1b   :  { %369 = vmatpush3.bf16.msra.mxu0 %v409_v18 }
  0x1c   :  { %370 = vmatprep.subr.bf16.mxu0 %v410_v19 }
  0x1f   :  { %371 = vmatpush3.bf16.msra.mxu0 %v412_v20 }
  0x22   :  { %244 = vmatmul.mubr.bf16.vlgmr.msra.gmra.mrb[0].mxu0 %v413_v21 }
  0x23   :  { %251 = vmatprep.mubr.bf16.mxu0 %v419_v22 }
  0x2a   :  { %252 = vmatmul.mubr.bf16.gmra.mrb[4].mxu0 %v421_v23 }
  0xe1   :  { %v394_v24 = vpop.f32.mrb[0].mxu1 }
  0xe2   :  { %v294_v25 = vpop.f32.mrb[1].mxu1 }
  0xe3   :  { %v395_v26 = vpop.f32.mrb[2].mxu1 }
  0xe4   :  { %v297_v27 = vpop.f32.mrb[3].mxu1 }
  0xf5   :  { %v372_v28 = vpop.f32.mrb[0].mxu0 }
  0xf6   :  { %v373_v29 = vpop.f32.mrb[1].mxu0 }
  0xf7   :  { %v374_v31 = vadd.f32 %v373_v29, %v372_v28  ;;  %v375_v32 = vpop.f32.mrb[2].mxu0 }
  0xf8   :  { %v376_v33 = vpop.f32.mrb[3].mxu0 }
  0xf9   :  { %v377_v34 = vadd.f32 %v376_v33, %v375_v32  ;;  %v246_v35 = vadd.f32 %v374_v31, %v329_v30 }
  0xfb   :  { %v295_v36 = vadd.f32 %v294_v25, %v246_v35  ;;  %v249_v37 = vadd.f32 %v377_v34, %v329_v30 }
  0xfd   :  { %vm309_vm1 = vcmp.ge.f32.partialorder %v295_v36, 0.0  ;;  %v313_v38 = vmul.f32 0.2, %v295_v36  ;;  %v298_v39 = vadd.f32 %v297_v27, %v249_v37  ;;  %v378_v40 = vpop.f32.mrb[4].mxu0 }
  0xfe   :  { %v379_v41 = vpop.f32.mrb[5].mxu0 }
  0xff   :  { %v317_v42 = vsel %vm309_vm1, %v295_v36, %v313_v38  ;;  %vm310_vm2 = vcmp.ge.f32.partialorder %v298_v39, 0.0  ;;  %v314_v43 = vmul.f32 0.2, %v298_v39  ;;  %v380_v44 = vadd.f32 %v379_v41, %v378_v40  ;;  %v381_v45 = vpop.f32.mrb[6].mxu0 }
 0x100   :  { %321 = vst.msk [vmem:[%s538_s3] sm:$0xff] %vm204_vm0, %v317_v42  ;;  %v382_v46 = vpop.f32.mrb[7].mxu0 }
 0x101   :  { %v318_v47 = vsel %vm310_vm2, %v298_v39, %v314_v43  ;;  %v254_v48 = vadd.f32 %v380_v44, %v329_v30  ;;  %v383_v49 = vadd.f32 %v382_v46, %v381_v45 }
 0x102   :  { %322 = vst.msk [vmem:[%s538_s3 + $0x8] sm:$0xff] %vm204_vm0, %v318_v47 }
 0x103   :  { %v303_v50 = vadd.f32 %v394_v24, %v254_v48  ;;  %v257_v51 = vadd.f32 %v383_v49, %v329_v30 }
 0x105   :  { %vm311_vm3 = vcmp.ge.f32.partialorder %v303_v50, 0.0  ;;  %v315_v52 = vmul.f32 0.2, %v303_v50  ;;  %v306_v53 = vadd.f32 %v395_v26, %v257_v51 }
 0x107   :  { %v319_v54 = vsel %vm311_vm3, %v303_v50, %v315_v52  ;;  %vm312_vm4 = vcmp.ge.f32.partialorder %v306_v53, 0.0  ;;  %v316_v55 = vmul.f32 0.2, %v306_v53 }
 0x108   :  { %323 = vst.msk [vmem:[%s538_s3 + $0x10] sm:$0xff] %vm204_vm0, %v319_v54 }
 0x109   :  { %v320_v56 = vsel %vm312_vm4, %v306_v53, %v316_v55 }
 0x10a   :  { %324 = vst.msk [vmem:[%s538_s3 + $0x18] sm:$0xff] %vm204_vm0, %v320_v56 }

// kernel: encoder_depth_fwd.20
= control target key start
LH: loop header
LB: loop body
LE: loop exit
PB: predicated region body
PF: predicated region fallthrough
CT: control target
= control target key end

     0   :  { %v376_v1 = vmov 0.0   ;;  %vm377_vm0 = vmmov 0   ;;  %vm185_vm1 = vcmask 261120   ;;  %vm285_vm3 = vcmask 519168   ;;  %s470_s1 = inlined_call_operand.vmem [shape: bf16[288,64], index: 1, kind: input, shape index: {}]   ;;  %s471_s0 = inlined_call_operand.vmem [shape: bf16[16,288], index: 0, kind: input, shape index: {}]   ;;  %s472_s2 = inlined_call_operand.vmem [shape: f32[1,64], index: 2, kind: input, shape index: {}]   ;;  %s473_s3 = inlined_call_operand.vmem [shape: bf16[16,64], index: 3, kind: output, shape index: {}]  }
   0x1   :  { %v354_v0 = vld [vmem:[%s470_s1 + $0x40] sm:$0xff]   ;;  %344 = vmatprep.subr.bf16.mxu1 %v376_v1  ;;  %348 = vmatprep.mubr.msk.bf16.mxu1 %vm377_vm0, %v376_v1  ;;  %v356_v3 = vld [vmem:[%s470_s1 + $0x48] sm:$0xff]   ;;  %v358_v5 = vld [vmem:[%s470_s1 + $0x50] sm:$0xff]  }
   0x2   :  { %v355_v2 = vld [vmem:[%s470_s1] sm:$0xff]   ;;  %319 = vmatprep.subr.bf16.mxu0 %v354_v0  ;;  %v357_v4 = vld [vmem:[%s470_s1 + $0x8] sm:$0xff]   ;;  %v359_v6 = vld [vmem:[%s470_s1 + $0x10] sm:$0xff]  }
   0x3   :  { %320 = vmatpush3.bf16.msra.mxu0 %v355_v2  ;;  %v360_v7 = vld [vmem:[%s470_s1 + $0x58] sm:$0xff]   ;;  %v362_v9 = vld [vmem:[%s470_s1 + $0x60] sm:$0xff]   ;;  %v364_v12 = vld [vmem:[%s470_s1 + $0x68] sm:$0xff]  }
   0x4   :  { %321 = vmatprep.subr.bf16.mxu0 %v356_v3  ;;  %v361_v8 = vld [vmem:[%s470_s1 + $0x18] sm:$0xff]   ;;  %v368_v10 = vld [vmem:[%s470_s1 + $0x80] sm:$0xff]   ;;  %v365_v13 = vld [vmem:[%s470_s1 + $0x28] sm:$0xff]  }
   0x5   :  { %v363_v11 = vld [vmem:[%s470_s1 + $0x20] sm:$0xff]   ;;  %345 = vmatpush3.bf16.msra.mxu1 %v368_v10  ;;  %v374_v15 = vld [vmem:[%s470_s1 + $0x88] sm:$0xff]   ;;  %v366_v16 = vld [vmem:[%s470_s1 + $0x70] sm:$0xff]  }
   0x6   :  { %346 = vmatprep.subr.bf16.mxu1 %v376_v1  ;;  %v373_v14 = vld [vmem:[%s471_s0 + $0x4] ss:$12 sps:$4 sm:$0xff]   ;;  %v375_v17 = vld [vmem:[%s471_s0 + $0x8] ss:$12 sps:$4 sm:$0xff]   ;;  %v369_v19 = vld [vmem:[%s470_s1 + $0x78] sm:$0xff]  }
   0x7   :  { %322 = vmatpush3.bf16.msra.mxu0 %v357_v4  ;;  %221 = vmatprep.mubr.bf16.mxu0 %v373_v14  ;;  %v367_v18 = vld [vmem:[%s470_s1 + $0x30] sm:$0xff]   ;;  %v370_v20 = vld [vmem:[%s470_s1 + $0x38] sm:$0xff]   ;;  %v371_v21 = vld [vmem:[%s471_s0] ss:$12 sps:$4 sm:$0xff]  }
   0x8   :  { %323 = vmatprep.subr.bf16.mxu0 %v358_v5  ;;  %v292_v28 = vld [vmem:[%s472_s2] ss:$0 sm:$0xff] }
   0x9   :  { %347 = vmatpush3.bf16.msra.mxu1 %v374_v15 }
   0xb   :  { %324 = vmatpush3.bf16.msra.mxu0 %v359_v6 }
   0xc   :  { %325 = vmatprep.subr.bf16.mxu0 %v360_v7  ;;  %349 = vmatmul.mubr.msk.bf16.vlgmr.msra.gmra.mrb[0].mxu1 %vm185_vm1, %v375_v17 }
   0xf   :  { %326 = vmatpush3.bf16.msra.mxu0 %v361_v8 }
  0x10   :  { %327 = vmatprep.subr.bf16.mxu0 %v362_v9 }
  0x13   :  { %328 = vmatpush3.bf16.msra.mxu0 %v363_v11 }
  0x14   :  { %329 = vmatprep.subr.bf16.mxu0 %v364_v12 }
  0x17   :  { %330 = vmatpush3.bf16.msra.mxu0 %v365_v13 }
  0x18   :  { %331 = vmatprep.subr.bf16.mxu0 %v366_v16 }
  0x1b   :  { %332 = vmatpush3.bf16.msra.mxu0 %v367_v18 }
  0x1c   :  { %333 = vmatprep.subr.bf16.mxu0 %v369_v19 }
  0x1f   :  { %334 = vmatpush3.bf16.msra.mxu0 %v370_v20 }
  0x22   :  { %222 = vmatmul.mubr.bf16.vlgmr.msra.gmra.mrb[0].mxu0 %v371_v21 }
  0xdf   :  { %v264_v22 = vpop.f32.mrb[0].mxu1 }
  0xe0   :  { %v350_v23 = vpop.f32.mrb[1].mxu1 }
  0xe1   :  { %v267_v24 = vpop.f32.mrb[2].mxu1 }
  0xe2   :  { %v351_v25 = vpop.f32.mrb[3].mxu1 }
  0xf5   :  { %v335_v26 = vpop.f32.mrb[0].mxu0 }
  0xf6   :  { %v336_v27 = vpop.f32.mrb[1].mxu0 }
  0xf7   :  { %v337_v29 = vadd.f32 %v336_v27, %v335_v26  ;;  %v338_v30 = vpop.f32.mrb[2].mxu0 }
  0xf8   :  { %v339_v31 = vpop.f32.mrb[3].mxu0 }
  0xf9   :  { %v224_v32 = vadd.f32 %v337_v29, %v292_v28  ;;  %v340_v33 = vadd.f32 %v339_v31, %v338_v30 }
  0xfb   :  { %v265_v34 = vadd.f32 %v264_v22, %v224_v32  ;;  %v227_v35 = vadd.f32 %v340_v33, %v292_v28 }
  0xfd   :  { %vm271_vm2 = vcmp.ge.f32.partialorder %v265_v34, 0.0  ;;  %v273_v36 = vmul.f32 0.2, %v265_v34  ;;  %v268_v37 = vadd.f32 %v267_v24, %v227_v35 }
  0xff   :  { %v275_v38 = vsel %vm271_vm2, %v265_v34, %v273_v36  ;;  %vm272_vm4 = vcmp.ge.f32.partialorder %v268_v37, 0.0  ;;  %v274_v39 = vmul.f32 0.2, %v268_v37 }
 0x100   :  { %v317_v40 = vpack.c.bf16 %v275_v38, %v275_v38 }
 0x101   :  { %v276_v41 = vsel %vm272_vm4, %v268_v37, %v274_v39 }
 0x102   :  { %286 = vst.msk [vmem:[%s473_s3] sm:$0xf] %vm285_vm3, %v317_v40  ;;  %v318_v42 = vpack.c.bf16 %v276_v41, %v276_v41 }
 0x104   :  { %287 = vst.msk [vmem:[%s473_s3 + $0x4] sm:$0xf] %vm285_vm3, %v318_v42 }

// kernel: encoder_depth_fwd.21
= control target key start
LH: loop header
LB: loop body
LE: loop exit
PB: predicated region body
PF: predicated region fallthrough
CT: control target
= control target key end

     0   :  { %v629_v33 = vmov 0.0   ;;  %vm630_vm0 = vmmov 0   ;;  %vm341_vm1 = vcmask 523264   ;;  %s786_s1 = inlined_call_operand.vmem [shape: bf16[576,64], index: 1, kind: input, shape index: {}]   ;;  %s787_s0 = inlined_call_operand.vmem [shape: bf16[16,576], index: 0, kind: input, shape index: {}]   ;;  %s788_s2 = inlined_call_operand.vmem [shape: f32[1,64], index: 2, kind: input, shape index: {}]   ;;  %s789_s3 = inlined_call_operand.vmem [shape: f32[16,64], index: 3, kind: output, shape index: {}]  }
   0x1   :  { %v586_v0 = vld [vmem:[%s786_s1 + $0x40] sm:$0xff]   ;;  %v590_v4 = vld [vmem:[%s786_s1 + $0x48] sm:$0xff]   ;;  %v594_v8 = vld [vmem:[%s786_s1 + $0x50] sm:$0xff]  }
   0x2   :  { %v587_v1 = vld [vmem:[%s786_s1] sm:$0xff]   ;;  %523 = vmatprep.subr.bf16.mxu0 %v586_v0  ;;  %v591_v5 = vld [vmem:[%s786_s1 + $0x8] sm:$0xff]   ;;  %v595_v9 = vld [vmem:[%s786_s1 + $0x10] sm:$0xff]  }
   0x3   :  { %v588_v2 = vld [vmem:[%s786_s1 + $0xc0] sm:$0xff]   ;;  %524 = vmatpush3.bf16.msra.mxu0 %v587_v1  ;;  %v592_v6 = vld [vmem:[%s786_s1 + $0xc8] sm:$0xff]   ;;  %v596_v10 = vld [vmem:[%s786_s1 + $0xd0] sm:$0xff]  }
   0x4   :  { %v589_v3 = vld [vmem:[%s786_s1 + $0x80] sm:$0xff]   ;;  %545 = vmatprep.subr.bf16.mxu1 %v588_v2  ;;  %525 = vmatprep.subr.bf16.mxu0 %v590_v4  ;;  %v593_v7 = vld [vmem:[%s786_s1 + $0x88] sm:$0xff]   ;;  %v597_v11 = vld [vmem:[%s786_s1 + $0x90] sm:$0xff]  }
   0x5   :  { %546 = vmatpush3.bf16.msra.mxu1 %v589_v3  ;;  %v598_v12 = vld [vmem:[%s786_s1 + $0x58] sm:$0xff]   ;;  %v602_v16 = vld [vmem:[%s786_s1 + $0x60] sm:$0xff]   ;;  %v606_v20 = vld [vmem:[%s786_s1 + $0x68] sm:$0xff]  }
   0x6   :  { %547 = vmatprep.subr.bf16.mxu1 %v592_v6  ;;  %v599_v13 = vld [vmem:[%s786_s1 + $0x18] sm:$0xff]   ;;  %v603_v17 = vld [vmem:[%s786_s1 + $0x20] sm:$0xff]   ;;  %v607_v21 = vld [vmem:[%s786_s1 + $0x28] sm:$0xff]  }
   0x7   :  { %526 = vmatpush3.bf16.msra.mxu0 %v591_v5  ;;  %v600_v14 = vld [vmem:[%s786_s1 + $0xd8] sm:$0xff]   ;;  %v604_v18 = vld [vmem:[%s786_s1 + $0xe0] sm:$0xff]   ;;  %v608_v22 = vld [vmem:[%s786_s1 + $0xe8] sm:$0xff]  }
   0x8   :  { %527 = vmatprep.subr.bf16.mxu0 %v594_v8  ;;  %v601_v15 = vld [vmem:[%s786_s1 + $0x98] sm:$0xff]   ;;  %v605_v19 = vld [vmem:[%s786_s1 + $0xa0] sm:$0xff]   ;;  %v609_v23 = vld [vmem:[%s786_s1 + $0xa8] sm:$0xff]  }
   0x9   :  { %548 = vmatpush3.bf16.msra.mxu1 %v593_v7  ;;  %v610_v24 = vld [vmem:[%s786_s1 + $0x70] sm:$0xff]   ;;  %v614_v28 = vld [vmem:[%s786_s1 + $0x78] sm:$0xff]   ;;  %v623_v36 = vld [vmem:[%s787_s0 + $0xc] ss:$20 sps:$4 sm:$0xff]  }
   0xa   :  { %549 = vmatprep.subr.bf16.mxu1 %v596_v10  ;;  %v611_v25 = vld [vmem:[%s786_s1 + $0x30] sm:$0xff]   ;;  %v615_v29 = vld [vmem:[%s786_s1 + $0x38] sm:$0xff]   ;;  %v624_v37 = vld [vmem:[%s786_s1 + $0x100] sm:$0xff]   ;;  %418 = vmatprep.mubr.bf16.mxu1 %v623_v36 }
   0xb   :  { %528 = vmatpush3.bf16.msra.mxu0 %v595_v9  ;;  %v612_v26 = vld [vmem:[%s786_s1 + $0xf0] sm:$0xff]   ;;  %v616_v30 = vld [vmem:[%s786_s1 + $0xf8] sm:$0xff]   ;;  %v625_v38 = vld [vmem:[%s786_s1 + $0x108] sm:$0xff]  }
   0xc   :  { %529 = vmatprep.subr.bf16.mxu0 %v598_v12  ;;  %v613_v27 = vld [vmem:[%s786_s1 + $0xb0] sm:$0xff]   ;;  %v619_v32 = vld [vmem:[%s787_s0 + $0x4] ss:$20 sps:$4 sm:$0xff]   ;;  %v621_v35 = vld [vmem:[%s787_s0 + $0x8] ss:$20 sps:$4 sm:$0xff]  }
   0xd   :  { %550 = vmatpush3.bf16.msra.mxu1 %v597_v11  ;;  %v617_v31 = vld [vmem:[%s787_s0] ss:$20 sps:$4 sm:$0xff]   ;;  %v620_v34 = vld [vmem:[%s786_s1 + $0xb8] sm:$0xff]   ;;  %377 = vmatprep.mubr.bf16.mxu0 %v619_v32  ;;  %v628_v41 = vld [vmem:[%s787_s0 + $0x10] ss:$20 sps:$4 sm:$0xff]  }
   0xe   :  { %551 = vmatprep.subr.bf16.mxu1 %v600_v14  ;;  %v626_v39 = vld [vmem:[%s786_s1 + $0x110] sm:$0xff]   ;;  %v627_v40 = vld [vmem:[%s786_s1 + $0x118] sm:$0xff]   ;;  %v480_v43 = vld [vmem:[%s788_s2] ss:$0 sm:$0xff] }
   0xf   :  { %530 = vmatpush3.bf16.msra.mxu0 %v599_v13 }
  0x10   :  { %531 = vmatprep.subr.bf16.mxu0 %v602_v16 }
  0x11   :  { %552 = vmatpush3.bf16.msra.mxu1 %v601_v15 }
  0x12   :  { %553 = vmatprep.subr.bf16.mxu1 %v604_v18 }
  0x13   :  { %532 = vmatpush3.bf16.msra.mxu0 %v603_v17 }
  0x14   :  { %533 = vmatprep.subr.bf16.mxu0 %v606_v20 }
  0x15   :  { %554 = vmatpush3.bf16.msra.mxu1 %v605_v19 }
  0x16   :  { %555 = vmatprep.subr.bf16.mxu1 %v608_v22 }
  0x17   :  { %534 = vmatpush3.bf16.msra.mxu0 %v607_v21 }
  0x18   :  { %535 = vmatprep.subr.bf16.mxu0 %v610_v24 }
  0x19   :  { %556 = vmatpush3.bf16.msra.mxu1 %v609_v23 }
  0x1a   :  { %557 = vmatprep.subr.bf16.mxu1 %v612_v26 }
  0x1b   :  { %536 = vmatpush3.bf16.msra.mxu0 %v611_v25 }
  0x1c   :  { %537 = vmatprep.subr.bf16.mxu0 %v614_v28 }
  0x1d   :  { %558 = vmatpush3.bf16.msra.mxu1 %v613_v27 }
  0x1e   :  { %559 = vmatprep.subr.bf16.mxu1 %v616_v30 }
  0x1f   :  { %538 = vmatpush3.bf16.msra.mxu0 %v615_v29 }
  0x20   :  { %572 = vmatprep.subr.bf16.mxu0 %v629_v33 }
  0x21   :  { %560 = vmatpush3.bf16.msra.mxu1 %v620_v34 }
  0x22   :  { %378 = vmatmul.mubr.bf16.vlgmr.msra.gmra.mrb[0].mxu0 %v617_v31 }
  0x23   :  { %580 = vmatprep.mubr.msk.bf16.mxu0 %vm630_vm0, %v629_v33  ;;  %573 = vmatpush3.bf16.msra.mxu0 %v624_v37 }
  0x24   :  { %419 = vmatmul.mubr.bf16.vlgmr.msra.gmra.mrb[0].mxu1 %v621_v35  ;;  %574 = vmatprep.subr.bf16.mxu0 %v629_v33 }
  0x27   :  { %575 = vmatpush3.bf16.msra.mxu0 %v625_v38 }
  0x28   :  { %576 = vmatprep.subr.bf16.mxu0 %v629_v33 }
  0x2b   :  { %577 = vmatpush3.bf16.msra.mxu0 %v626_v39 }
  0x2c   :  { %578 = vmatprep.subr.bf16.mxu0 %v629_v33 }
  0x2f   :  { %579 = vmatpush3.bf16.msra.mxu0 %v627_v40 }
  0x32   :  { %581 = vmatmul.mubr.msk.bf16.vlgmr.msra.gmra.mrb[4].mxu0 %vm341_vm1, %v628_v41 }
  0xf5   :  { %v539_v42 = vpop.f32.mrb[0].mxu0 }
  0xf6   :  { %v540_v44 = vpop.f32.mrb[1].mxu0 }
  0xf7   :  { %v541_v45 = vadd.f32 %v540_v44, %v539_v42  ;;  %v542_v46 = vpop.f32.mrb[2].mxu0  ;;  %v561_v47 = vpop.f32.mrb[0].mxu1 }
  0xf8   :  { %v543_v48 = vpop.f32.mrb[3].mxu0  ;;  %v562_v51 = vpop.f32.mrb[1].mxu1 }
  0xf9   :  { %v380_v49 = vadd.f32 %v541_v45, %v480_v43  ;;  %v544_v50 = vadd.f32 %v543_v48, %v542_v46  ;;  %v563_v52 = vadd.f32 %v562_v51, %v561_v47  ;;  %v564_v53 = vpop.f32.mrb[2].mxu1 }
  0xfa   :  { %v565_v55 = vpop.f32.mrb[3].mxu1 }
  0xfb   :  { %v383_v54 = vadd.f32 %v544_v50, %v480_v43  ;;  %v566_v56 = vadd.f32 %v565_v55, %v564_v53  ;;  %v421_v57 = vadd.f32 %v563_v52, %v380_v49 }
  0xfd   :  { %v424_v58 = vadd.f32 %v566_v56, %v383_v54 }
 0x105   :  { %v461_v59 = vpop.f32.mrb[4].mxu0 }
 0x106   :  { %v462_v60 = vadd.f32 %v461_v59, %v421_v57  ;;  %v582_v61 = vpop.f32.mrb[5].mxu0 }
 0x107   :  { %v464_v62 = vpop.f32.mrb[6].mxu0 }
 0x108   :  { %vm468_vm2 = vcmp.ge.f32.partialorder %v462_v60, 0.0  ;;  %v470_v63 = vmul.f32 0.2, %v462_v60  ;;  %v465_v0 = vadd.f32 %v464_v62, %v424_v58  ;;  %v583_v1 = vpop.f32.mrb[7].mxu0 }
 0x10a   :  { %v472_v2 = vsel %vm468_vm2, %v462_v60, %v470_v63  ;;  %vm469_vm3 = vcmp.ge.f32.partialorder %v465_v0, 0.0  ;;  %v471_v3 = vmul.f32 0.2, %v465_v0 }
 0x10b   :  { %474 = vst.msk [vmem:[%s789_s3] sm:$0xff] %vm341_vm1, %v472_v2 }
 0x10c   :  { %v473_v4 = vsel %vm469_vm3, %v465_v0, %v471_v3 }
 0x10d   :  { %475 = vst.msk [vmem:[%s789_s3 + $0x8] sm:$0xff] %vm341_vm1, %v473_v4 }

// kernel: encoder_depth_fwd.22
= control target key start
LH: loop header
LB: loop body
LE: loop exit
PB: predicated region body
PF: predicated region fallthrough
CT: control target
= control target key end

     0   :  { %v642_v33 = vmov 0.0   ;;  %vm643_vm0 = vmmov 0   ;;  %vm341_vm1 = vcmask 523264   ;;  %vm482_vm3 = vcmask 519168   ;;  %s796_s1 = inlined_call_operand.vmem [shape: bf16[576,64], index: 1, kind: input, shape index: {}]   ;;  %s797_s0 = inlined_call_operand.vmem [shape: bf16[16,576], index: 0, kind: input, shape index: {}]   ;;  %s798_s2 = inlined_call_operand.vmem [shape: f32[1,64], index: 2, kind: input, shape index: {}]   ;;  %s799_s3 = inlined_call_operand.vmem [shape: bf16[16,64], index: 3, kind: output, shape index: {}]  }
   0x1   :  { %v599_v0 = vld [vmem:[%s796_s1 + $0x40] sm:$0xff]   ;;  %v603_v4 = vld [vmem:[%s796_s1 + $0x48] sm:$0xff]   ;;  %v607_v8 = vld [vmem:[%s796_s1 + $0x50] sm:$0xff]  }
   0x2   :  { %v600_v1 = vld [vmem:[%s796_s1] sm:$0xff]   ;;  %536 = vmatprep.subr.bf16.mxu0 %v599_v0  ;;  %v604_v5 = vld [vmem:[%s796_s1 + $0x8] sm:$0xff]   ;;  %v608_v9 = vld [vmem:[%s796_s1 + $0x10] sm:$0xff]  }
   0x3   :  { %v601_v2 = vld [vmem:[%s796_s1 + $0xc0] sm:$0xff]   ;;  %537 = vmatpush3.bf16.msra.mxu0 %v600_v1  ;;  %v605_v6 = vld [vmem:[%s796_s1 + $0xc8] sm:$0xff]   ;;  %v609_v10 = vld [vmem:[%s796_s1 + $0xd0] sm:$0xff]  }
   0x4   :  { %v602_v3 = vld [vmem:[%s796_s1 + $0x80] sm:$0xff]   ;;  %558 = vmatprep.subr.bf16.mxu1 %v601_v2  ;;  %538 = vmatprep.subr.bf16.mxu0 %v603_v4  ;;  %v606_v7 = vld [vmem:[%s796_s1 + $0x88] sm:$0xff]   ;;  %v610_v11 = vld [vmem:[%s796_s1 + $0x90] sm:$0xff]  }
   0x5   :  { %559 = vmatpush3.bf16.msra.mxu1 %v602_v3  ;;  %v611_v12 = vld [vmem:[%s796_s1 + $0x58] sm:$0xff]   ;;  %v615_v16 = vld [vmem:[%s796_s1 + $0x60] sm:$0xff]   ;;  %v619_v20 = vld [vmem:[%s796_s1 + $0x68] sm:$0xff]  }
   0x6   :  { %560 = vmatprep.subr.bf16.mxu1 %v605_v6  ;;  %v612_v13 = vld [vmem:[%s796_s1 + $0x18] sm:$0xff]   ;;  %v616_v17 = vld [vmem:[%s796_s1 + $0x20] sm:$0xff]   ;;  %v620_v21 = vld [vmem:[%s796_s1 + $0x28] sm:$0xff]  }
   0x7   :  { %539 = vmatpush3.bf16.msra.mxu0 %v604_v5  ;;  %v613_v14 = vld [vmem:[%s796_s1 + $0xd8] sm:$0xff]   ;;  %v617_v18 = vld [vmem:[%s796_s1 + $0xe0] sm:$0xff]   ;;  %v621_v22 = vld [vmem:[%s796_s1 + $0xe8] sm:$0xff]  }
   0x8   :  { %540 = vmatprep.subr.bf16.mxu0 %v607_v8  ;;  %v614_v15 = vld [vmem:[%s796_s1 + $0x98] sm:$0xff]   ;;  %v618_v19 = vld [vmem:[%s796_s1 + $0xa0] sm:$0xff]   ;;  %v622_v23 = vld [vmem:[%s796_s1 + $0xa8] sm:$0xff]  }
   0x9   :  { %561 = vmatpush3.bf16.msra.mxu1 %v606_v7  ;;  %v623_v24 = vld [vmem:[%s796_s1 + $0x70] sm:$0xff]   ;;  %v627_v28 = vld [vmem:[%s796_s1 + $0x78] sm:$0xff]   ;;  %v636_v36 = vld [vmem:[%s797_s0 + $0xc] ss:$20 sps:$4 sm:$0xff]  }
   0xa   :  { %562 = vmatprep.subr.bf16.mxu1 %v609_v10  ;;  %v624_v25 = vld [vmem:[%s796_s1 + $0x30] sm:$0xff]   ;;  %v628_v29 = vld [vmem:[%s796_s1 + $0x38] sm:$0xff]   ;;  %v637_v37 = vld [vmem:[%s796_s1 + $0x100] sm:$0xff]   ;;  %418 = vmatprep.mubr.bf16.mxu1 %v636_v36 }
   0xb   :  { %541 = vmatpush3.bf16.msra.mxu0 %v608_v9  ;;  %v625_v26 = vld [vmem:[%s796_s1 + $0xf0] sm:$0xff]   ;;  %v629_v30 = vld [vmem:[%s796_s1 + $0xf8] sm:$0xff]   ;;  %v638_v38 = vld [vmem:[%s796_s1 + $0x108] sm:$0xff]  }
   0xc   :  { %542 = vmatprep.subr.bf16.mxu0 %v611_v12  ;;  %v626_v27 = vld [vmem:[%s796_s1 + $0xb0] sm:$0xff]   ;;  %v632_v32 = vld [vmem:[%s797_s0 + $0x4] ss:$20 sps:$4 sm:$0xff]   ;;  %v634_v35 = vld [vmem:[%s797_s0 + $0x8] ss:$20 sps:$4 sm:$0xff]  }
   0xd   :  { %563 = vmatpush3.bf16.msra.mxu1 %v610_v11  ;;  %v630_v31 = vld [vmem:[%s797_s0] ss:$20 sps:$4 sm:$0xff]   ;;  %v633_v34 = vld [vmem:[%s796_s1 + $0xb8] sm:$0xff]   ;;  %377 = vmatprep.mubr.bf16.mxu0 %v632_v32  ;;  %v641_v41 = vld [vmem:[%s797_s0 + $0x10] ss:$20 sps:$4 sm:$0xff]  }
   0xe   :  { %564 = vmatprep.subr.bf16.mxu1 %v613_v14  ;;  %v639_v39 = vld [vmem:[%s796_s1 + $0x110] sm:$0xff]   ;;  %v640_v40 = vld [vmem:[%s796_s1 + $0x118] sm:$0xff]   ;;  %v489_v43 = vld [vmem:[%s798_s2] ss:$0 sm:$0xff] }
   0xf   :  { %543 = vmatpush3.bf16.msra.mxu0 %v612_v13 }
  0x10   :  { %544 = vmatprep.subr.bf16.mxu0 %v615_v16 }
  0x11   :  { %565 = vmatpush3.bf16.msra.mxu1 %v614_v15 }
  0x12   :  { %566 = vmatprep.subr.bf16.mxu1 %v617_v18 }
  0x13   :  { %545 = vmatpush3.bf16.msra.mxu0 %v616_v17 }
  0x14   :  { %546 = vmatprep.subr.bf16.mxu0 %v619_v20 }
  0x15   :  { %567 = vmatpush3.bf16.msra.mxu1 %v618_v19 }
  0x16   :  { %568 = vmatprep.subr.bf16.mxu1 %v621_v22 }
  0x17   :  { %547 = vmatpush3.bf16.msra.mxu0 %v620_v21 }
  0x18   :  { %548 = vmatprep.subr.bf16.mxu0 %v623_v24 }
  0x19   :  { %569 = vmatpush3.bf16.msra.mxu1 %v622_v23 }
  0x1a   :  { %570 = vmatprep.subr.bf16.mxu1 %v625_v26 }
  0x1b   :  { %549 = vmatpush3.bf16.msra.mxu0 %v624_v25 }
  0x1c   :  { %550 = vmatprep.subr.bf16.mxu0 %v627_v28 }
  0x1d   :  { %571 = vmatpush3.bf16.msra.mxu1 %v626_v27 }
  0x1e   :  { %572 = vmatprep.subr.bf16.mxu1 %v629_v30 }
  0x1f   :  { %551 = vmatpush3.bf16.msra.mxu0 %v628_v29 }
  0x20   :  { %585 = vmatprep.subr.bf16.mxu0 %v642_v33 }
  0x21   :  { %573 = vmatpush3.bf16.msra.mxu1 %v633_v34 }
  0x22   :  { %378 = vmatmul.mubr.bf16.vlgmr.msra.gmra.mrb[0].mxu0 %v630_v31 }
  0x23   :  { %593 = vmatprep.mubr.msk.bf16.mxu0 %vm643_vm0, %v642_v33  ;;  %586 = vmatpush3.bf16.msra.mxu0 %v637_v37 }
  0x24   :  { %419 = vmatmul.mubr.bf16.vlgmr.msra.gmra.mrb[0].mxu1 %v634_v35  ;;  %587 = vmatprep.subr.bf16.mxu0 %v642_v33 }
  0x27   :  { %588 = vmatpush3.bf16.msra.mxu0 %v638_v38 }
  0x28   :  { %589 = vmatprep.subr.bf16.mxu0 %v642_v33 }
  0x2b   :  { %590 = vmatpush3.bf16.msra.mxu0 %v639_v39 }
  0x2c   :  { %591 = vmatprep.subr.bf16.mxu0 %v642_v33 }
  0x2f   :  { %592 = vmatpush3.bf16.msra.mxu0 %v640_v40 }
  0x32   :  { %594 = vmatmul.mubr.msk.bf16.vlgmr.msra.gmra.mrb[4].mxu0 %vm341_vm1, %v641_v41 }
  0xf5   :  { %v552_v42 = vpop.f32.mrb[0].mxu0 }
  0xf6   :  { %v553_v44 = vpop.f32.mrb[1].mxu0 }
  0xf7   :  { %v554_v45 = vadd.f32 %v553_v44, %v552_v42  ;;  %v555_v46 = vpop.f32.mrb[2].mxu0  ;;  %v574_v47 = vpop.f32.mrb[0].mxu1 }
  0xf8   :  { %v556_v48 = vpop.f32.mrb[3].mxu0  ;;  %v575_v51 = vpop.f32.mrb[1].mxu1 }
  0xf9   :  { %v380_v49 = vadd.f32 %v554_v45, %v489_v43  ;;  %v557_v50 = vadd.f32 %v556_v48, %v555_v46  ;;  %v576_v52 = vadd.f32 %v575_v51, %v574_v47  ;;  %v577_v53 = vpop.f32.mrb[2].mxu1 }
  0xfa   :  { %v578_v55 = vpop.f32.mrb[3].mxu1 }
  0xfb   :  { %v383_v54 = vadd.f32 %v557_v50, %v489_v43  ;;  %v579_v56 = vadd.f32 %v578_v55, %v577_v53  ;;  %v421_v57 = vadd.f32 %v576_v52, %v380_v49 }
  0xfd   :  { %v424_v58 = vadd.f32 %v579_v56, %v383_v54 }
 0x105   :  { %v461_v59 = vpop.f32.mrb[4].mxu0 }
 0x106   :  { %v462_v60 = vadd.f32 %v461_v59, %v421_v57  ;;  %v595_v61 = vpop.f32.mrb[5].mxu0 }
 0x107   :  { %v464_v62 = vpop.f32.mrb[6].mxu0 }
 0x108   :  { %vm468_vm2 = vcmp.ge.f32.partialorder %v462_v60, 0.0  ;;  %v470_v63 = vmul.f32 0.2, %v462_v60  ;;  %v465_v0 = vadd.f32 %v464_v62, %v424_v58  ;;  %v596_v1 = vpop.f32.mrb[7].mxu0 }
 0x10a   :  { %v472_v2 = vsel %vm468_vm2, %v462_v60, %v470_v63  ;;  %vm469_vm4 = vcmp.ge.f32.partialorder %v465_v0, 0.0  ;;  %v471_v3 = vmul.f32 0.2, %v465_v0 }
 0x10b   :  { %v534_v4 = vpack.c.bf16 %v472_v2, %v472_v2 }
 0x10c   :  { %v473_v5 = vsel %vm469_vm4, %v465_v0, %v471_v3 }
 0x10d   :  { %483 = vst.msk [vmem:[%s799_s3] sm:$0xf] %vm482_vm3, %v534_v4  ;;  %v535_v6 = vpack.c.bf16 %v473_v5, %v473_v5 }
 0x10f   :  { %484 = vst.msk [vmem:[%s799_s3 + $0x4] sm:$0xf] %vm482_vm3, %v535_v6 }

</bundles_post_ra>
